<compile_context>
chip_gen: v7x
topology: tpu7x:2x2x1
jax: 0.10.0
libtpu: 0.0.40
codegen_flags: <defaults>
</compile_context>

<pallas_src>
import numpy as np
import jax
import jax.numpy as jnp
from jax.experimental import pallas as pl
from jax.experimental.pallas import tpu as pltpu

BN_EPS = 1e-5        # nn.BatchNorm2d default eps
C_PU = 32            # PoolandUp(32, 32) is hard-coded inside SeFeature
C_HALF = C_PU // 2   # PoolandUp inter_channels

# Fixed row order of the packed mask slab.
_MASK_ORDER = ('mEw', 'mOw', 'mEh', 'mOh', 'mL', 'mR', 'mT', 'mB',
               'cwm2', 'cwm1', 'cw0', 'cwp1', 'cwp2',
               'chm2', 'chm1', 'ch0', 'chp1', 'chp2')
MIDX = {k: i for i, k in enumerate(_MASK_ORDER)}


# ----------------------------------------------------------------------------
# Host-side constant builders (numpy, built once)
# ----------------------------------------------------------------------------
def _axis_bilinear(dst, src):
    """(dst, src) bilinear interpolation matrix, align_corners=True (PyTorch)."""
    mtx = np.zeros((dst, src), np.float32)
    for i in range(dst):
        c = i * (src - 1) / (dst - 1) if dst > 1 else 0.0
        i0 = int(np.floor(c))
        i1 = min(i0 + 1, src - 1)
        f = c - i0
        mtx[i, i0] += 1.0 - f
        mtx[i, i1] += f
    return mtx


def _offset_weights(full, half):
    """Bilinear (align_corners) upsample weights re-expressed on the 2x
    nearest-replicated grid: returns (5, full) weights for offsets -2..+2."""
    u = _axis_bilinear(full, half)
    out = np.zeros((5, full), np.float32)
    for x in range(full):
        for c in range(half):
            wgt = u[x, c]
            if wgt != 0.0:
                d = 2 * c - x           # source sample c lives at replicated pos 2c
                assert -2 <= d <= 2, (full, half, x, c, d)
                out[d + 2, x] += wgt
    return out


def _build_masks(n, h, w):
    """(18, m) lane-dense f32 constant rows (parity, border, upsample weights)."""
    m = n * h * w
    i = np.arange(m)
    wp = i % w                 # column within the row
    hp = (i // w) % h          # row within the image
    cw = _offset_weights(w, w // 2)
    ch = _offset_weights(h, h // 2)
    rows = {
        'mEw': (wp % 2 == 0), 'mOw': (wp % 2 == 1),     # 2x2 pool pairing (w / h)
        'mEh': (hp % 2 == 0), 'mOh': (hp % 2 == 1),
        'mL': (wp > 0), 'mR': (wp < w - 1),             # depthwise tap validity
        'mT': (hp > 0), 'mB': (hp < h - 1),
        'cwm2': cw[0][wp], 'cwm1': cw[1][wp], 'cw0': cw[2][wp],
        'cwp1': cw[3][wp], 'cwp2': cw[4][wp],
        'chm2': ch[0][hp], 'chm1': ch[1][hp], 'ch0': ch[2][hp],
        'chp1': ch[3][hp], 'chp2': ch[4][hp],
    }
    return np.stack([np.asarray(rows[k], np.float32) for k in _MASK_ORDER], axis=0)


# ----------------------------------------------------------------------------
# Kernel
# ----------------------------------------------------------------------------
def _make_kernel(cin, width, c_mid, m, wcol):
    w = width
    # Packed param slab row offsets; the same rows carry the matching BN
    # gamma/beta in columns [wcol, wcol+2).
    R_W1 = 0
    R_DW = R_W1 + c_mid
    R_W3 = R_DW + c_mid
    R_C1 = R_W3 + C_PU
    R_WO = R_C1 + C_HALF
    n_rows = R_WO + C_PU

    def shift(x, d):
        """result[:, i] = x[:, i + d]; zero padded at the flat-array ends."""
        if d == 0:
            return x
        c, length = x.shape
        pad = jnp.zeros((c, abs(d)), x.dtype)
        if d > 0:
            return jnp.concatenate([x[:, d:], pad], axis=1)
        return jnp.concatenate([pad, x[:, :length + d]], axis=1)

    def kernel(x_ref, p_ref, k_ref, o_ref):
        params = p_ref[...]
        masks = k_ref[...]

        def mrow(name):
            i = MIDX[name]
            return masks[i:i + 1, :]                      # (1, m)

        def wmat(r0, rows, cols):
            return params[r0:r0 + rows, 0:cols]

        def bn_relu(y, r0, c, relu):
            # Training-mode BatchNorm over the m spatial locations + optional ReLU.
            g = params[r0:r0 + c, wcol:wcol + 1]          # (c, 1)
            b = params[r0:r0 + c, wcol + 1:wcol + 2]
            # Fused moment pass: one lane reduction over [y ; y*y].
            stats = jnp.sum(jnp.concatenate([y, y * y], axis=0),
                            axis=-1, keepdims=True) * (1.0 / m)
            mean = stats[0:c]
            var = jnp.maximum(stats[c:2 * c] - mean * mean, 0.0)
            scale = g * jax.lax.rsqrt(var + BN_EPS)
            out = y * scale + (b - mean * scale)
            return jnp.maximum(out, 0.0) if relu else out

        # ---- block[0]: SegConv 1x1 (cin -> c_mid) + BN + ReLU ---------------
        x = x_ref[...]                                     # (cin, m)
        y = jnp.dot(wmat(R_W1, c_mid, cin), x, preferred_element_type=jnp.float32)
        y = bn_relu(y, R_W1, c_mid, True)                  # (c_mid, m)

        # ---- block[1]: SegConv2 depthwise 3x3 (pad 1) + BN + ReLU -----------
        # Lanes are (n, h, w) row-major: a (dh, dw) spatial shift is a lane
        # shift of dh*w + dw; image/row-boundary taps are killed by the
        # precomputed lane-dense border masks.
        wdw = wmat(R_DW, c_mid, 9)                         # (c_mid, 9)
        hmask = {-1: mrow('mT'), 0: None, 1: mrow('mB')}
        wmask = {-1: mrow('mL'), 0: None, 1: mrow('mR')}
        acc = jnp.zeros_like(y)
        for dh in (-1, 0, 1):
            for dw in (-1, 0, 1):
                t = (dh + 1) * 3 + (dw + 1)
                v = shift(y, dh * w + dw) * wdw[:, t:t + 1]
                if hmask[dh] is not None:
                    v = v * hmask[dh]
                if wmask[dw] is not None:
                    v = v * wmask[dw]
                acc = acc + v
        y = bn_relu(acc, R_DW, c_mid, True)                # (c_mid, m)

        # ---- block[2..3]: 1x1 conv (c_mid -> 32) + BN (no ReLU) -------------
        out1 = jnp.dot(wmat(R_W3, C_PU, c_mid), y, preferred_element_type=jnp.float32)
        out1 = bn_relu(out1, R_W3, C_PU, False)            # (32, m)

        # ---- PoolandUp ------------------------------------------------------
        # Shared SegConv(32->16): the 1x1 conv commutes with pooling, so it is
        # applied once; the two BatchNorms keep their own (per-call) statistics.
        a = jnp.dot(wmat(R_C1, C_HALF, C_PU), out1, preferred_element_type=jnp.float32)
        xa = bn_relu(a, R_C1, C_HALF, True)                # conv1(out1), (16, m)

        # AdaptiveAvgPool2d(H/2) == 2x2 mean; kept replicated at full res so BN
        # stats over the replicated grid equal stats over the pooled grid.
        hpair = a + mrow('mEw') * shift(a, 1) + mrow('mOw') * shift(a, -1)
        blk = (hpair + mrow('mEh') * shift(hpair, w)
                     + mrow('mOh') * shift(hpair, -w))
        cp1 = bn_relu(0.25 * blk, R_C1, C_HALF, True)      # replicated cp1, (16, m)

        # Bilinear (align_corners=True) upsample evaluated from the replicated
        # grid: separable, 5 lane offsets per axis with per-position weights.
        cu = (mrow('cwm2') * shift(cp1, -2) + mrow('cwm1') * shift(cp1, -1)
              + mrow('cw0') * cp1
              + mrow('cwp1') * shift(cp1, 1) + mrow('cwp2') * shift(cp1, 2))
        ucp1 = (mrow('chm2') * shift(cu, -2 * w) + mrow('chm1') * shift(cu, -w)
                + mrow('ch0') * cu
                + mrow('chp1') * shift(cu, w) + mrow('chp2') * shift(cu, 2 * w))

        # out = SegConv(concat([xa, ucp1]) -> 32): sublane concat + one matmul.
        z = jnp.dot(wmat(R_WO, C_PU, C_PU),
                    jnp.concatenate([xa, ucp1], axis=0),
                    preferred_element_type=jnp.float32)
        o_ref[...] = bn_relu(z, R_WO, C_PU, True)          # (32, m)

    return kernel, n_rows


# ----------------------------------------------------------------------------
# Forward builder
# ----------------------------------------------------------------------------
def make_sefeature_forward(n, cin, height, width, t=2):
    """Returns a jitted forward for SeFeature(cin, 32, t) on NCHW float32 input."""
    assert height == width and height % 2 == 0, \
        "PoolandUp assumes square, even spatial dims"
    c_mid = cin * t
    m = n * height * width
    wcol = max(cin, c_mid, 9, C_PU)
    kernel, n_rows = _make_kernel(cin, width, c_mid, m, wcol)

    mask = jnp.asarray(_build_masks(n, height, width))     # (18, m)

    vmem = pl.BlockSpec(memory_space=pltpu.MemorySpace.VMEM)
    call = pl.pallas_call(
        kernel,
        out_shape=jax.ShapeDtypeStruct((C_PU, m), jnp.float32),
        in_specs=[vmem, vmem, vmem],
        out_specs=vmem,
        compiler_params=pltpu.CompilerParams(vmem_limit_bytes=32 * 1024 * 1024),
    )

    def pack_params(p):
        def blockrow(wt, g, b, rows, cols):
            pieces = [wt.reshape(rows, cols).astype(jnp.float32)]
            if cols < wcol:
                pieces.append(jnp.zeros((rows, wcol - cols), jnp.float32))
            pieces.append(g.reshape(rows, 1).astype(jnp.float32))
            pieces.append(b.reshape(rows, 1).astype(jnp.float32))
            return jnp.concatenate(pieces, axis=1)
        slab = jnp.concatenate([
            blockrow(p['w1'],  p['g1'],  p['b1'],  c_mid,  cin),
            blockrow(p['wdw'], p['g2'],  p['b2'],  c_mid,  9),
            blockrow(p['w3'],  p['g3'],  p['b3'],  C_PU,   c_mid),
            blockrow(p['wc1'], p['gc1'], p['bc1'], C_HALF, C_PU),
            blockrow(p['wo'],  p['go'],  p['bo'],  C_PU,   C_PU),
        ], axis=0)
        assert slab.shape == (n_rows, wcol + 2)
        return slab

    @jax.jit
    def forward(x_nchw, p):
        # (N, C, H, W) -> (C, N*H*W): channels on sublanes, locations on lanes.
        x2d = jnp.transpose(x_nchw, (1, 0, 2, 3)).reshape(cin, m)
        out2d = call(x2d, pack_params(p), mask)            # (32, m)
        return jnp.transpose(out2d.reshape(C_PU, n, height, width), (1, 0, 2, 3))

    return forward


# ----------------------------------------------------------------------------
# Parameters (mirror PyTorch defaults: U(-1/sqrt(fan_in), ..) conv, BN gamma=1, beta=0)
# ----------------------------------------------------------------------------
def init_params(key, cin, t=2):
    c_mid = cin * t

    def conv_w(k, co, ci, kh, kw):
        bound = 1.0 / float(ci * kh * kw) ** 0.5
        return jax.random.uniform(k, (co, ci, kh, kw), jnp.float32, -bound, bound)

    ks = jax.random.split(key, 5)
    ones, zeros = jnp.ones, jnp.zeros
    return {
        'w1':  conv_w(ks[0], c_mid, cin, 1, 1),
        'g1':  ones((c_mid,), jnp.float32), 'b1': zeros((c_mid,), jnp.float32),
        'wdw': conv_w(ks[1], c_mid, 1, 3, 3),
        'g2':  ones((c_mid,), jnp.float32), 'b2': zeros((c_mid,), jnp.float32),
        'w3':  conv_w(ks[2], C_PU, c_mid, 1, 1),
        'g3':  ones((C_PU,), jnp.float32), 'b3': zeros((C_PU,), jnp.float32),
        'wc1': conv_w(ks[3], C_HALF, C_PU, 1, 1),
        'gc1': ones((C_HALF,), jnp.float32), 'bc1': zeros((C_HALF,), jnp.float32),
        'wo':  conv_w(ks[4], C_PU, C_PU, 1, 1),
        'go':  ones((C_PU,), jnp.float32), 'bo': zeros((C_PU,), jnp.float32),
    }


# ----------------------------------------------------------------------------
# Pure-JAX reference (training-mode BN) for a correctness cross-check
# ----------------------------------------------------------------------------
def sefeature_reference(x_nchw, p):
    hi = jax.lax.Precision.HIGHEST

    def bn(x, g, b, relu):
        mean = jnp.mean(x, axis=(0, 2, 3), keepdims=True)
        var = jnp.mean((x - mean) ** 2, axis=(0, 2, 3), keepdims=True)
        y = (x - mean) * jax.lax.rsqrt(var + BN_EPS)
        y = y * g.reshape(1, -1, 1, 1) + b.reshape(1, -1, 1, 1)
        return jnp.maximum(y, 0.0) if relu else y

    def conv(x, w, groups=1, padding=0):
        return jax.lax.conv_general_dilated(
            x, w, (1, 1), [(padding, padding)] * 2,
            dimension_numbers=('NCHW', 'OIHW', 'NCHW'),
            feature_group_count=groups, precision=hi)

    y = bn(conv(x_nchw, p['w1']), p['g1'], p['b1'], True)
    y = bn(conv(y, p['wdw'], groups=y.shape[1], padding=1), p['g2'], p['b2'], True)
    out1 = bn(conv(y, p['w3']), p['g3'], p['b3'], False)

    n, c, h, w = out1.shape
    p1 = out1.reshape(n, c, h // 2, 2, w // 2, 2).mean(axis=(3, 5))
    cp1 = bn(conv(p1, p['wc1']), p['gc1'], p['bc1'], True)
    uh = jnp.asarray(_axis_bilinear(h, h // 2))
    uw = jnp.asarray(_axis_bilinear(w, w // 2))
    ucp1 = jnp.einsum('ha,nkab,wb->nkhw', uh, cp1, uw, precision=hi)
    xa = bn(conv(out1, p['wc1']), p['gc1'], p['bc1'], True)   # same-size upsample == identity
    cat = jnp.concatenate([xa, ucp1], axis=1)
    return bn(conv(cat, p['wo']), p['go'], p['bo'], True)


# ----------------------------------------------------------------------------
if __name__ == "__main__":
    key = jax.random.PRNGKey(0)
    pkey, xkey = jax.random.split(key)

    N, CIN, H, W, T = 2, 4, 16, 16, 2
    params = init_params(pkey, CIN, T)
    x = jax.random.normal(xkey, (N, CIN, H, W), dtype=jnp.float32)

    forward = make_sefeature_forward(N, CIN, H, W, T)
    out = jax.block_until_ready(forward(x, params))

    assert out.shape == (N, C_PU, H, W), out.shape
    assert bool(jnp.all(jnp.isfinite(out)))
    assert bool(jnp.all(out >= 0.0))            # final SegConv ReLU

    ref = jax.block_until_ready(sefeature_reference(x, params))
    max_err = float(jnp.max(jnp.abs(out - ref)))
    assert max_err < 5e-2, f"kernel vs reference mismatch: max abs err = {max_err}"

    print("KERNEL_OK")
</pallas_src>

<mosaic_0001>
module attributes {stable_mosaic.version = 11 : i64} {
  func.func @kernel(%arg0: memref<4x512xf32, #tpu.memory_space<vmem>>, %arg1: memref<96x34xf32, #tpu.memory_space<vmem>>, %arg2: memref<18x512xf32, #tpu.memory_space<vmem>>, %arg3: memref<32x512xf32, #tpu.memory_space<vmem>>) attributes {dimension_semantics = [], scalar_prefetch = 0 : i64, scratch_operands = 0 : i64, tpu.core_type = #tpu.core_type<tc>} {
    %c0 = arith.constant 0 : index
    %c0_0 = arith.constant 0 : index
    %0 = vector.load %arg1[%c0, %c0_0] : memref<96x34xf32, #tpu.memory_space<vmem>>, vector<96x34xf32>
    %c0_1 = arith.constant 0 : index
    %c0_2 = arith.constant 0 : index
    %1 = vector.load %arg2[%c0_1, %c0_2] : memref<18x512xf32, #tpu.memory_space<vmem>>, vector<18x512xf32>
    %c0_3 = arith.constant 0 : index
    %c0_4 = arith.constant 0 : index
    %2 = vector.load %arg0[%c0_3, %c0_4] : memref<4x512xf32, #tpu.memory_space<vmem>>, vector<4x512xf32>
    %3 = vector.extract_strided_slice %0 {offsets = [0, 0], sizes = [8, 4], strides = [1, 1]} : vector<96x34xf32> to vector<8x4xf32>
    %cst = arith.constant dense<0.000000e+00> : vector<8x512xf32>
    %4 = tpu.matmul %3, %2, %cst {dimension_numbers = #tpu.dot_dimension_numbers<[1], [0], [0], [1], [0, 0, 1, 1], [], []>} : vector<8x4xf32>, vector<4x512xf32>, vector<8x512xf32> -> vector<8x512xf32>
    %5 = vector.extract_strided_slice %0 {offsets = [0, 32], sizes = [8, 1], strides = [1, 1]} : vector<96x34xf32> to vector<8x1xf32>
    %6 = vector.extract_strided_slice %0 {offsets = [0, 33], sizes = [8, 1], strides = [1, 1]} : vector<96x34xf32> to vector<8x1xf32>
    %7 = arith.mulf %4, %4 : vector<8x512xf32>
    %8 = tpu.concatenate %4, %7 in 0 : vector<8x512xf32>, vector<8x512xf32> -> vector<16x512xf32>
    %cst_5 = arith.constant dense<0.000000e+00> : vector<16xf32>
    %9 = vector.multi_reduction <add>, %8, %cst_5 [1] : vector<16x512xf32> to vector<16xf32>
    %10 = vector.shape_cast %9 : vector<16xf32> to vector<16x1xf32>
    %cst_6 = arith.constant 0.001953125 : f32
    %11 = vector.broadcast %cst_6 : f32 to vector<16x1xf32>
    %12 = arith.mulf %10, %11 : vector<16x1xf32>
    %13 = vector.extract_strided_slice %12 {offsets = [0, 0], sizes = [8, 1], strides = [1, 1]} : vector<16x1xf32> to vector<8x1xf32>
    %14 = vector.extract_strided_slice %12 {offsets = [8, 0], sizes = [8, 1], strides = [1, 1]} : vector<16x1xf32> to vector<8x1xf32>
    %15 = arith.mulf %13, %13 : vector<8x1xf32>
    %16 = arith.subf %14, %15 : vector<8x1xf32>
    %cst_7 = arith.constant 0.000000e+00 : f32
    %17 = vector.broadcast %cst_7 : f32 to vector<8x1xf32>
    %18 = arith.maximumf %16, %17 : vector<8x1xf32>
    %cst_8 = arith.constant 9.99999974E-6 : f32
    %19 = vector.broadcast %cst_8 : f32 to vector<8x1xf32>
    %20 = arith.addf %18, %19 : vector<8x1xf32>
    %21 = math.rsqrt %20 : vector<8x1xf32>
    %22 = arith.mulf %5, %21 : vector<8x1xf32>
    %23 = vector.broadcast %22 : vector<8x1xf32> to vector<8x512xf32>
    %24 = arith.mulf %4, %23 : vector<8x512xf32>
    %25 = arith.mulf %13, %22 : vector<8x1xf32>
    %26 = arith.subf %6, %25 : vector<8x1xf32>
    %27 = vector.broadcast %26 : vector<8x1xf32> to vector<8x512xf32>
    %28 = arith.addf %24, %27 : vector<8x512xf32>
    %cst_9 = arith.constant 0.000000e+00 : f32
    %29 = vector.broadcast %cst_9 : f32 to vector<8x512xf32>
    %30 = arith.maximumf %28, %29 : vector<8x512xf32>
    %31 = vector.extract_strided_slice %0 {offsets = [8, 0], sizes = [8, 9], strides = [1, 1]} : vector<96x34xf32> to vector<8x9xf32>
    %32 = vector.extract_strided_slice %1 {offsets = [6, 0], sizes = [1, 512], strides = [1, 1]} : vector<18x512xf32> to vector<1x512xf32>
    %33 = vector.extract_strided_slice %1 {offsets = [7, 0], sizes = [1, 512], strides = [1, 1]} : vector<18x512xf32> to vector<1x512xf32>
    %34 = vector.extract_strided_slice %1 {offsets = [4, 0], sizes = [1, 512], strides = [1, 1]} : vector<18x512xf32> to vector<1x512xf32>
    %35 = vector.extract_strided_slice %1 {offsets = [5, 0], sizes = [1, 512], strides = [1, 1]} : vector<18x512xf32> to vector<1x512xf32>
    %cst_10 = arith.constant 0.000000e+00 : f32
    %36 = vector.broadcast %cst_10 : f32 to vector<8x512xf32>
    %cst_11 = arith.constant 0.000000e+00 : f32
    %37 = vector.broadcast %cst_11 : f32 to vector<8x17xf32>
    %38 = vector.extract_strided_slice %30 {offsets = [0, 0], sizes = [8, 495], strides = [1, 1]} : vector<8x512xf32> to vector<8x495xf32>
    %39 = tpu.concatenate %37, %38 in 1 : vector<8x17xf32>, vector<8x495xf32> -> vector<8x512xf32>
    %40 = vector.extract_strided_slice %31 {offsets = [0, 0], sizes = [8, 1], strides = [1, 1]} : vector<8x9xf32> to vector<8x1xf32>
    %41 = vector.broadcast %40 : vector<8x1xf32> to vector<8x512xf32>
    %42 = arith.mulf %39, %41 : vector<8x512xf32>
    %43 = vector.broadcast %32 : vector<1x512xf32> to vector<8x512xf32>
    %44 = arith.mulf %42, %43 : vector<8x512xf32>
    %45 = vector.broadcast %34 : vector<1x512xf32> to vector<8x512xf32>
    %46 = arith.mulf %44, %45 : vector<8x512xf32>
    %47 = arith.addf %36, %46 : vector<8x512xf32>
    %cst_12 = arith.constant 0.000000e+00 : f32
    %48 = vector.broadcast %cst_12 : f32 to vector<8x16xf32>
    %49 = vector.extract_strided_slice %30 {offsets = [0, 0], sizes = [8, 496], strides = [1, 1]} : vector<8x512xf32> to vector<8x496xf32>
    %50 = tpu.concatenate %48, %49 in 1 : vector<8x16xf32>, vector<8x496xf32> -> vector<8x512xf32>
    %51 = vector.extract_strided_slice %31 {offsets = [0, 1], sizes = [8, 1], strides = [1, 1]} : vector<8x9xf32> to vector<8x1xf32>
    %52 = vector.broadcast %51 : vector<8x1xf32> to vector<8x512xf32>
    %53 = arith.mulf %50, %52 : vector<8x512xf32>
    %54 = vector.broadcast %32 : vector<1x512xf32> to vector<8x512xf32>
    %55 = arith.mulf %53, %54 : vector<8x512xf32>
    %56 = arith.addf %47, %55 : vector<8x512xf32>
    %cst_13 = arith.constant 0.000000e+00 : f32
    %57 = vector.broadcast %cst_13 : f32 to vector<8x15xf32>
    %58 = vector.extract_strided_slice %30 {offsets = [0, 0], sizes = [8, 497], strides = [1, 1]} : vector<8x512xf32> to vector<8x497xf32>
    %59 = tpu.concatenate %57, %58 in 1 : vector<8x15xf32>, vector<8x497xf32> -> vector<8x512xf32>
    %60 = vector.extract_strided_slice %31 {offsets = [0, 2], sizes = [8, 1], strides = [1, 1]} : vector<8x9xf32> to vector<8x1xf32>
    %61 = vector.broadcast %60 : vector<8x1xf32> to vector<8x512xf32>
    %62 = arith.mulf %59, %61 : vector<8x512xf32>
    %63 = vector.broadcast %32 : vector<1x512xf32> to vector<8x512xf32>
    %64 = arith.mulf %62, %63 : vector<8x512xf32>
    %65 = vector.broadcast %35 : vector<1x512xf32> to vector<8x512xf32>
    %66 = arith.mulf %64, %65 : vector<8x512xf32>
    %67 = arith.addf %56, %66 : vector<8x512xf32>
    %cst_14 = arith.constant 0.000000e+00 : f32
    %68 = vector.broadcast %cst_14 : f32 to vector<8x1xf32>
    %69 = vector.extract_strided_slice %30 {offsets = [0, 0], sizes = [8, 511], strides = [1, 1]} : vector<8x512xf32> to vector<8x511xf32>
    %70 = tpu.concatenate %68, %69 in 1 : vector<8x1xf32>, vector<8x511xf32> -> vector<8x512xf32>
    %71 = vector.extract_strided_slice %31 {offsets = [0, 3], sizes = [8, 1], strides = [1, 1]} : vector<8x9xf32> to vector<8x1xf32>
    %72 = vector.broadcast %71 : vector<8x1xf32> to vector<8x512xf32>
    %73 = arith.mulf %70, %72 : vector<8x512xf32>
    %74 = vector.broadcast %34 : vector<1x512xf32> to vector<8x512xf32>
    %75 = arith.mulf %73, %74 : vector<8x512xf32>
    %76 = arith.addf %67, %75 : vector<8x512xf32>
    %77 = vector.extract_strided_slice %31 {offsets = [0, 4], sizes = [8, 1], strides = [1, 1]} : vector<8x9xf32> to vector<8x1xf32>
    %78 = vector.broadcast %77 : vector<8x1xf32> to vector<8x512xf32>
    %79 = arith.mulf %30, %78 : vector<8x512xf32>
    %80 = arith.addf %76, %79 : vector<8x512xf32>
    %cst_15 = arith.constant 0.000000e+00 : f32
    %81 = vector.broadcast %cst_15 : f32 to vector<8x1xf32>
    %82 = vector.extract_strided_slice %30 {offsets = [0, 1], sizes = [8, 511], strides = [1, 1]} : vector<8x512xf32> to vector<8x511xf32>
    %83 = tpu.concatenate %82, %81 in 1 : vector<8x511xf32>, vector<8x1xf32> -> vector<8x512xf32>
    %84 = vector.extract_strided_slice %31 {offsets = [0, 5], sizes = [8, 1], strides = [1, 1]} : vector<8x9xf32> to vector<8x1xf32>
    %85 = vector.broadcast %84 : vector<8x1xf32> to vector<8x512xf32>
    %86 = arith.mulf %83, %85 : vector<8x512xf32>
    %87 = vector.broadcast %35 : vector<1x512xf32> to vector<8x512xf32>
    %88 = arith.mulf %86, %87 : vector<8x512xf32>
    %89 = arith.addf %80, %88 : vector<8x512xf32>
    %cst_16 = arith.constant 0.000000e+00 : f32
    %90 = vector.broadcast %cst_16 : f32 to vector<8x15xf32>
    %91 = vector.extract_strided_slice %30 {offsets = [0, 15], sizes = [8, 497], strides = [1, 1]} : vector<8x512xf32> to vector<8x497xf32>
    %92 = tpu.concatenate %91, %90 in 1 : vector<8x497xf32>, vector<8x15xf32> -> vector<8x512xf32>
    %93 = vector.extract_strided_slice %31 {offsets = [0, 6], sizes = [8, 1], strides = [1, 1]} : vector<8x9xf32> to vector<8x1xf32>
    %94 = vector.broadcast %93 : vector<8x1xf32> to vector<8x512xf32>
    %95 = arith.mulf %92, %94 : vector<8x512xf32>
    %96 = vector.broadcast %33 : vector<1x512xf32> to vector<8x512xf32>
    %97 = arith.mulf %95, %96 : vector<8x512xf32>
    %98 = vector.broadcast %34 : vector<1x512xf32> to vector<8x512xf32>
    %99 = arith.mulf %97, %98 : vector<8x512xf32>
    %100 = arith.addf %89, %99 : vector<8x512xf32>
    %cst_17 = arith.constant 0.000000e+00 : f32
    %101 = vector.broadcast %cst_17 : f32 to vector<8x16xf32>
    %102 = vector.extract_strided_slice %30 {offsets = [0, 16], sizes = [8, 496], strides = [1, 1]} : vector<8x512xf32> to vector<8x496xf32>
    %103 = tpu.concatenate %102, %101 in 1 : vector<8x496xf32>, vector<8x16xf32> -> vector<8x512xf32>
    %104 = vector.extract_strided_slice %31 {offsets = [0, 7], sizes = [8, 1], strides = [1, 1]} : vector<8x9xf32> to vector<8x1xf32>
    %105 = vector.broadcast %104 : vector<8x1xf32> to vector<8x512xf32>
    %106 = arith.mulf %103, %105 : vector<8x512xf32>
    %107 = vector.broadcast %33 : vector<1x512xf32> to vector<8x512xf32>
    %108 = arith.mulf %106, %107 : vector<8x512xf32>
    %109 = arith.addf %100, %108 : vector<8x512xf32>
    %cst_18 = arith.constant 0.000000e+00 : f32
    %110 = vector.broadcast %cst_18 : f32 to vector<8x17xf32>
    %111 = vector.extract_strided_slice %30 {offsets = [0, 17], sizes = [8, 495], strides = [1, 1]} : vector<8x512xf32> to vector<8x495xf32>
    %112 = tpu.concatenate %111, %110 in 1 : vector<8x495xf32>, vector<8x17xf32> -> vector<8x512xf32>
    %113 = vector.extract_strided_slice %31 {offsets = [0, 8], sizes = [8, 1], strides = [1, 1]} : vector<8x9xf32> to vector<8x1xf32>
    %114 = vector.broadcast %113 : vector<8x1xf32> to vector<8x512xf32>
    %115 = arith.mulf %112, %114 : vector<8x512xf32>
    %116 = vector.broadcast %33 : vector<1x512xf32> to vector<8x512xf32>
    %117 = arith.mulf %115, %116 : vector<8x512xf32>
    %118 = vector.broadcast %35 : vector<1x512xf32> to vector<8x512xf32>
    %119 = arith.mulf %117, %118 : vector<8x512xf32>
    %120 = arith.addf %109, %119 : vector<8x512xf32>
    %121 = vector.extract_strided_slice %0 {offsets = [8, 32], sizes = [8, 1], strides = [1, 1]} : vector<96x34xf32> to vector<8x1xf32>
    %122 = vector.extract_strided_slice %0 {offsets = [8, 33], sizes = [8, 1], strides = [1, 1]} : vector<96x34xf32> to vector<8x1xf32>
    %123 = arith.mulf %120, %120 : vector<8x512xf32>
    %124 = tpu.concatenate %120, %123 in 0 : vector<8x512xf32>, vector<8x512xf32> -> vector<16x512xf32>
    %cst_19 = arith.constant dense<0.000000e+00> : vector<16xf32>
    %125 = vector.multi_reduction <add>, %124, %cst_19 [1] : vector<16x512xf32> to vector<16xf32>
    %126 = vector.shape_cast %125 : vector<16xf32> to vector<16x1xf32>
    %cst_20 = arith.constant 0.001953125 : f32
    %127 = vector.broadcast %cst_20 : f32 to vector<16x1xf32>
    %128 = arith.mulf %126, %127 : vector<16x1xf32>
    %129 = vector.extract_strided_slice %128 {offsets = [0, 0], sizes = [8, 1], strides = [1, 1]} : vector<16x1xf32> to vector<8x1xf32>
    %130 = vector.extract_strided_slice %128 {offsets = [8, 0], sizes = [8, 1], strides = [1, 1]} : vector<16x1xf32> to vector<8x1xf32>
    %131 = arith.mulf %129, %129 : vector<8x1xf32>
    %132 = arith.subf %130, %131 : vector<8x1xf32>
    %cst_21 = arith.constant 0.000000e+00 : f32
    %133 = vector.broadcast %cst_21 : f32 to vector<8x1xf32>
    %134 = arith.maximumf %132, %133 : vector<8x1xf32>
    %cst_22 = arith.constant 9.99999974E-6 : f32
    %135 = vector.broadcast %cst_22 : f32 to vector<8x1xf32>
    %136 = arith.addf %134, %135 : vector<8x1xf32>
    %137 = math.rsqrt %136 : vector<8x1xf32>
    %138 = arith.mulf %121, %137 : vector<8x1xf32>
    %139 = vector.broadcast %138 : vector<8x1xf32> to vector<8x512xf32>
    %140 = arith.mulf %120, %139 : vector<8x512xf32>
    %141 = arith.mulf %129, %138 : vector<8x1xf32>
    %142 = arith.subf %122, %141 : vector<8x1xf32>
    %143 = vector.broadcast %142 : vector<8x1xf32> to vector<8x512xf32>
    %144 = arith.addf %140, %143 : vector<8x512xf32>
    %cst_23 = arith.constant 0.000000e+00 : f32
    %145 = vector.broadcast %cst_23 : f32 to vector<8x512xf32>
    %146 = arith.maximumf %144, %145 : vector<8x512xf32>
    %147 = vector.extract_strided_slice %0 {offsets = [16, 0], sizes = [32, 8], strides = [1, 1]} : vector<96x34xf32> to vector<32x8xf32>
    %cst_24 = arith.constant dense<0.000000e+00> : vector<32x512xf32>
    %148 = tpu.matmul %147, %146, %cst_24 {dimension_numbers = #tpu.dot_dimension_numbers<[1], [0], [0], [1], [0, 0, 1, 1], [], []>} : vector<32x8xf32>, vector<8x512xf32>, vector<32x512xf32> -> vector<32x512xf32>
    %149 = vector.extract_strided_slice %0 {offsets = [16, 32], sizes = [32, 1], strides = [1, 1]} : vector<96x34xf32> to vector<32x1xf32>
    %150 = vector.extract_strided_slice %0 {offsets = [16, 33], sizes = [32, 1], strides = [1, 1]} : vector<96x34xf32> to vector<32x1xf32>
    %151 = arith.mulf %148, %148 : vector<32x512xf32>
    %152 = tpu.concatenate %148, %151 in 0 : vector<32x512xf32>, vector<32x512xf32> -> vector<64x512xf32>
    %cst_25 = arith.constant dense<0.000000e+00> : vector<64xf32>
    %153 = vector.multi_reduction <add>, %152, %cst_25 [1] : vector<64x512xf32> to vector<64xf32>
    %154 = vector.shape_cast %153 : vector<64xf32> to vector<64x1xf32>
    %cst_26 = arith.constant 0.001953125 : f32
    %155 = vector.broadcast %cst_26 : f32 to vector<64x1xf32>
    %156 = arith.mulf %154, %155 : vector<64x1xf32>
    %157 = vector.extract_strided_slice %156 {offsets = [0, 0], sizes = [32, 1], strides = [1, 1]} : vector<64x1xf32> to vector<32x1xf32>
    %158 = vector.extract_strided_slice %156 {offsets = [32, 0], sizes = [32, 1], strides = [1, 1]} : vector<64x1xf32> to vector<32x1xf32>
    %159 = arith.mulf %157, %157 : vector<32x1xf32>
    %160 = arith.subf %158, %159 : vector<32x1xf32>
    %cst_27 = arith.constant 0.000000e+00 : f32
    %161 = vector.broadcast %cst_27 : f32 to vector<32x1xf32>
    %162 = arith.maximumf %160, %161 : vector<32x1xf32>
    %cst_28 = arith.constant 9.99999974E-6 : f32
    %163 = vector.broadcast %cst_28 : f32 to vector<32x1xf32>
    %164 = arith.addf %162, %163 : vector<32x1xf32>
    %165 = math.rsqrt %164 : vector<32x1xf32>
    %166 = arith.mulf %149, %165 : vector<32x1xf32>
    %167 = vector.broadcast %166 : vector<32x1xf32> to vector<32x512xf32>
    %168 = arith.mulf %148, %167 : vector<32x512xf32>
    %169 = arith.mulf %157, %166 : vector<32x1xf32>
    %170 = arith.subf %150, %169 : vector<32x1xf32>
    %171 = vector.broadcast %170 : vector<32x1xf32> to vector<32x512xf32>
    %172 = arith.addf %168, %171 : vector<32x512xf32>
    %173 = vector.extract_strided_slice %0 {offsets = [48, 0], sizes = [16, 32], strides = [1, 1]} : vector<96x34xf32> to vector<16x32xf32>
    %cst_29 = arith.constant dense<0.000000e+00> : vector<16x512xf32>
    %174 = tpu.matmul %173, %172, %cst_29 {dimension_numbers = #tpu.dot_dimension_numbers<[1], [0], [0], [1], [0, 0, 1, 1], [], []>} : vector<16x32xf32>, vector<32x512xf32>, vector<16x512xf32> -> vector<16x512xf32>
    %175 = vector.extract_strided_slice %0 {offsets = [48, 32], sizes = [16, 1], strides = [1, 1]} : vector<96x34xf32> to vector<16x1xf32>
    %176 = vector.extract_strided_slice %0 {offsets = [48, 33], sizes = [16, 1], strides = [1, 1]} : vector<96x34xf32> to vector<16x1xf32>
    %177 = arith.mulf %174, %174 : vector<16x512xf32>
    %178 = tpu.concatenate %174, %177 in 0 : vector<16x512xf32>, vector<16x512xf32> -> vector<32x512xf32>
    %cst_30 = arith.constant dense<0.000000e+00> : vector<32xf32>
    %179 = vector.multi_reduction <add>, %178, %cst_30 [1] : vector<32x512xf32> to vector<32xf32>
    %180 = vector.shape_cast %179 : vector<32xf32> to vector<32x1xf32>
    %cst_31 = arith.constant 0.001953125 : f32
    %181 = vector.broadcast %cst_31 : f32 to vector<32x1xf32>
    %182 = arith.mulf %180, %181 : vector<32x1xf32>
    %183 = vector.extract_strided_slice %182 {offsets = [0, 0], sizes = [16, 1], strides = [1, 1]} : vector<32x1xf32> to vector<16x1xf32>
    %184 = vector.extract_strided_slice %182 {offsets = [16, 0], sizes = [16, 1], strides = [1, 1]} : vector<32x1xf32> to vector<16x1xf32>
    %185 = arith.mulf %183, %183 : vector<16x1xf32>
    %186 = arith.subf %184, %185 : vector<16x1xf32>
    %cst_32 = arith.constant 0.000000e+00 : f32
    %187 = vector.broadcast %cst_32 : f32 to vector<16x1xf32>
    %188 = arith.maximumf %186, %187 : vector<16x1xf32>
    %cst_33 = arith.constant 9.99999974E-6 : f32
    %189 = vector.broadcast %cst_33 : f32 to vector<16x1xf32>
    %190 = arith.addf %188, %189 : vector<16x1xf32>
    %191 = math.rsqrt %190 : vector<16x1xf32>
    %192 = arith.mulf %175, %191 : vector<16x1xf32>
    %193 = vector.broadcast %192 : vector<16x1xf32> to vector<16x512xf32>
    %194 = arith.mulf %174, %193 : vector<16x512xf32>
    %195 = arith.mulf %183, %192 : vector<16x1xf32>
    %196 = arith.subf %176, %195 : vector<16x1xf32>
    %197 = vector.broadcast %196 : vector<16x1xf32> to vector<16x512xf32>
    %198 = arith.addf %194, %197 : vector<16x512xf32>
    %cst_34 = arith.constant 0.000000e+00 : f32
    %199 = vector.broadcast %cst_34 : f32 to vector<16x512xf32>
    %200 = arith.maximumf %198, %199 : vector<16x512xf32>
    %201 = vector.extract_strided_slice %1 {offsets = [0, 0], sizes = [1, 512], strides = [1, 1]} : vector<18x512xf32> to vector<1x512xf32>
    %cst_35 = arith.constant 0.000000e+00 : f32
    %202 = vector.broadcast %cst_35 : f32 to vector<16x1xf32>
    %203 = vector.extract_strided_slice %174 {offsets = [0, 1], sizes = [16, 511], strides = [1, 1]} : vector<16x512xf32> to vector<16x511xf32>
    %204 = tpu.concatenate %203, %202 in 1 : vector<16x511xf32>, vector<16x1xf32> -> vector<16x512xf32>
    %205 = vector.broadcast %201 : vector<1x512xf32> to vector<16x512xf32>
    %206 = arith.mulf %205, %204 : vector<16x512xf32>
    %207 = arith.addf %174, %206 : vector<16x512xf32>
    %208 = vector.extract_strided_slice %1 {offsets = [1, 0], sizes = [1, 512], strides = [1, 1]} : vector<18x512xf32> to vector<1x512xf32>
    %cst_36 = arith.constant 0.000000e+00 : f32
    %209 = vector.broadcast %cst_36 : f32 to vector<16x1xf32>
    %210 = vector.extract_strided_slice %174 {offsets = [0, 0], sizes = [16, 511], strides = [1, 1]} : vector<16x512xf32> to vector<16x511xf32>
    %211 = tpu.concatenate %209, %210 in 1 : vector<16x1xf32>, vector<16x511xf32> -> vector<16x512xf32>
    %212 = vector.broadcast %208 : vector<1x512xf32> to vector<16x512xf32>
    %213 = arith.mulf %212, %211 : vector<16x512xf32>
    %214 = arith.addf %207, %213 : vector<16x512xf32>
    %215 = vector.extract_strided_slice %1 {offsets = [2, 0], sizes = [1, 512], strides = [1, 1]} : vector<18x512xf32> to vector<1x512xf32>
    %cst_37 = arith.constant 0.000000e+00 : f32
    %216 = vector.broadcast %cst_37 : f32 to vector<16x16xf32>
    %217 = vector.extract_strided_slice %214 {offsets = [0, 16], sizes = [16, 496], strides = [1, 1]} : vector<16x512xf32> to vector<16x496xf32>
    %218 = tpu.concatenate %217, %216 in 1 : vector<16x496xf32>, vector<16x16xf32> -> vector<16x512xf32>
    %219 = vector.broadcast %215 : vector<1x512xf32> to vector<16x512xf32>
    %220 = arith.mulf %219, %218 : vector<16x512xf32>
    %221 = arith.addf %214, %220 : vector<16x512xf32>
    %222 = vector.extract_strided_slice %1 {offsets = [3, 0], sizes = [1, 512], strides = [1, 1]} : vector<18x512xf32> to vector<1x512xf32>
    %cst_38 = arith.constant 0.000000e+00 : f32
    %223 = vector.broadcast %cst_38 : f32 to vector<16x16xf32>
    %224 = vector.extract_strided_slice %214 {offsets = [0, 0], sizes = [16, 496], strides = [1, 1]} : vector<16x512xf32> to vector<16x496xf32>
    %225 = tpu.concatenate %223, %224 in 1 : vector<16x16xf32>, vector<16x496xf32> -> vector<16x512xf32>
    %226 = vector.broadcast %222 : vector<1x512xf32> to vector<16x512xf32>
    %227 = arith.mulf %226, %225 : vector<16x512xf32>
    %228 = arith.addf %221, %227 : vector<16x512xf32>
    %cst_39 = arith.constant 2.500000e-01 : f32
    %229 = vector.broadcast %cst_39 : f32 to vector<16x512xf32>
    %230 = arith.mulf %229, %228 : vector<16x512xf32>
    %231 = vector.extract_strided_slice %0 {offsets = [48, 32], sizes = [16, 1], strides = [1, 1]} : vector<96x34xf32> to vector<16x1xf32>
    %232 = vector.extract_strided_slice %0 {offsets = [48, 33], sizes = [16, 1], strides = [1, 1]} : vector<96x34xf32> to vector<16x1xf32>
    %233 = arith.mulf %230, %230 : vector<16x512xf32>
    %234 = tpu.concatenate %230, %233 in 0 : vector<16x512xf32>, vector<16x512xf32> -> vector<32x512xf32>
    %cst_40 = arith.constant dense<0.000000e+00> : vector<32xf32>
    %235 = vector.multi_reduction <add>, %234, %cst_40 [1] : vector<32x512xf32> to vector<32xf32>
    %236 = vector.shape_cast %235 : vector<32xf32> to vector<32x1xf32>
    %cst_41 = arith.constant 0.001953125 : f32
    %237 = vector.broadcast %cst_41 : f32 to vector<32x1xf32>
    %238 = arith.mulf %236, %237 : vector<32x1xf32>
    %239 = vector.extract_strided_slice %238 {offsets = [0, 0], sizes = [16, 1], strides = [1, 1]} : vector<32x1xf32> to vector<16x1xf32>
    %240 = vector.extract_strided_slice %238 {offsets = [16, 0], sizes = [16, 1], strides = [1, 1]} : vector<32x1xf32> to vector<16x1xf32>
    %241 = arith.mulf %239, %239 : vector<16x1xf32>
    %242 = arith.subf %240, %241 : vector<16x1xf32>
    %cst_42 = arith.constant 0.000000e+00 : f32
    %243 = vector.broadcast %cst_42 : f32 to vector<16x1xf32>
    %244 = arith.maximumf %242, %243 : vector<16x1xf32>
    %cst_43 = arith.constant 9.99999974E-6 : f32
    %245 = vector.broadcast %cst_43 : f32 to vector<16x1xf32>
    %246 = arith.addf %244, %245 : vector<16x1xf32>
    %247 = math.rsqrt %246 : vector<16x1xf32>
    %248 = arith.mulf %231, %247 : vector<16x1xf32>
    %249 = vector.broadcast %248 : vector<16x1xf32> to vector<16x512xf32>
    %250 = arith.mulf %230, %249 : vector<16x512xf32>
    %251 = arith.mulf %239, %248 : vector<16x1xf32>
    %252 = arith.subf %232, %251 : vector<16x1xf32>
    %253 = vector.broadcast %252 : vector<16x1xf32> to vector<16x512xf32>
    %254 = arith.addf %250, %253 : vector<16x512xf32>
    %cst_44 = arith.constant 0.000000e+00 : f32
    %255 = vector.broadcast %cst_44 : f32 to vector<16x512xf32>
    %256 = arith.maximumf %254, %255 : vector<16x512xf32>
    %257 = vector.extract_strided_slice %1 {offsets = [8, 0], sizes = [1, 512], strides = [1, 1]} : vector<18x512xf32> to vector<1x512xf32>
    %cst_45 = arith.constant 0.000000e+00 : f32
    %258 = vector.broadcast %cst_45 : f32 to vector<16x2xf32>
    %259 = vector.extract_strided_slice %256 {offsets = [0, 0], sizes = [16, 510], strides = [1, 1]} : vector<16x512xf32> to vector<16x510xf32>
    %260 = tpu.concatenate %258, %259 in 1 : vector<16x2xf32>, vector<16x510xf32> -> vector<16x512xf32>
    %261 = vector.broadcast %257 : vector<1x512xf32> to vector<16x512xf32>
    %262 = arith.mulf %261, %260 : vector<16x512xf32>
    %263 = vector.extract_strided_slice %1 {offsets = [9, 0], sizes = [1, 512], strides = [1, 1]} : vector<18x512xf32> to vector<1x512xf32>
    %cst_46 = arith.constant 0.000000e+00 : f32
    %264 = vector.broadcast %cst_46 : f32 to vector<16x1xf32>
    %265 = vector.extract_strided_slice %256 {offsets = [0, 0], sizes = [16, 511], strides = [1, 1]} : vector<16x512xf32> to vector<16x511xf32>
    %266 = tpu.concatenate %264, %265 in 1 : vector<16x1xf32>, vector<16x511xf32> -> vector<16x512xf32>
    %267 = vector.broadcast %263 : vector<1x512xf32> to vector<16x512xf32>
    %268 = arith.mulf %267, %266 : vector<16x512xf32>
    %269 = arith.addf %262, %268 : vector<16x512xf32>
    %270 = vector.extract_strided_slice %1 {offsets = [10, 0], sizes = [1, 512], strides = [1, 1]} : vector<18x512xf32> to vector<1x512xf32>
    %271 = vector.broadcast %270 : vector<1x512xf32> to vector<16x512xf32>
    %272 = arith.mulf %271, %256 : vector<16x512xf32>
    %273 = arith.addf %269, %272 : vector<16x512xf32>
    %274 = vector.extract_strided_slice %1 {offsets = [11, 0], sizes = [1, 512], strides = [1, 1]} : vector<18x512xf32> to vector<1x512xf32>
    %cst_47 = arith.constant 0.000000e+00 : f32
    %275 = vector.broadcast %cst_47 : f32 to vector<16x1xf32>
    %276 = vector.extract_strided_slice %256 {offsets = [0, 1], sizes = [16, 511], strides = [1, 1]} : vector<16x512xf32> to vector<16x511xf32>
    %277 = tpu.concatenate %276, %275 in 1 : vector<16x511xf32>, vector<16x1xf32> -> vector<16x512xf32>
    %278 = vector.broadcast %274 : vector<1x512xf32> to vector<16x512xf32>
    %279 = arith.mulf %278, %277 : vector<16x512xf32>
    %280 = arith.addf %273, %279 : vector<16x512xf32>
    %281 = vector.extract_strided_slice %1 {offsets = [12, 0], sizes = [1, 512], strides = [1, 1]} : vector<18x512xf32> to vector<1x512xf32>
    %cst_48 = arith.constant 0.000000e+00 : f32
    %282 = vector.broadcast %cst_48 : f32 to vector<16x2xf32>
    %283 = vector.extract_strided_slice %256 {offsets = [0, 2], sizes = [16, 510], strides = [1, 1]} : vector<16x512xf32> to vector<16x510xf32>
    %284 = tpu.concatenate %283, %282 in 1 : vector<16x510xf32>, vector<16x2xf32> -> vector<16x512xf32>
    %285 = vector.broadcast %281 : vector<1x512xf32> to vector<16x512xf32>
    %286 = arith.mulf %285, %284 : vector<16x512xf32>
    %287 = arith.addf %280, %286 : vector<16x512xf32>
    %288 = vector.extract_strided_slice %1 {offsets = [13, 0], sizes = [1, 512], strides = [1, 1]} : vector<18x512xf32> to vector<1x512xf32>
    %cst_49 = arith.constant 0.000000e+00 : f32
    %289 = vector.broadcast %cst_49 : f32 to vector<16x32xf32>
    %290 = vector.extract_strided_slice %287 {offsets = [0, 0], sizes = [16, 480], strides = [1, 1]} : vector<16x512xf32> to vector<16x480xf32>
    %291 = tpu.concatenate %289, %290 in 1 : vector<16x32xf32>, vector<16x480xf32> -> vector<16x512xf32>
    %292 = vector.broadcast %288 : vector<1x512xf32> to vector<16x512xf32>
    %293 = arith.mulf %292, %291 : vector<16x512xf32>
    %294 = vector.extract_strided_slice %1 {offsets = [14, 0], sizes = [1, 512], strides = [1, 1]} : vector<18x512xf32> to vector<1x512xf32>
    %cst_50 = arith.constant 0.000000e+00 : f32
    %295 = vector.broadcast %cst_50 : f32 to vector<16x16xf32>
    %296 = vector.extract_strided_slice %287 {offsets = [0, 0], sizes = [16, 496], strides = [1, 1]} : vector<16x512xf32> to vector<16x496xf32>
    %297 = tpu.concatenate %295, %296 in 1 : vector<16x16xf32>, vector<16x496xf32> -> vector<16x512xf32>
    %298 = vector.broadcast %294 : vector<1x512xf32> to vector<16x512xf32>
    %299 = arith.mulf %298, %297 : vector<16x512xf32>
    %300 = arith.addf %293, %299 : vector<16x512xf32>
    %301 = vector.extract_strided_slice %1 {offsets = [15, 0], sizes = [1, 512], strides = [1, 1]} : vector<18x512xf32> to vector<1x512xf32>
    %302 = vector.broadcast %301 : vector<1x512xf32> to vector<16x512xf32>
    %303 = arith.mulf %302, %287 : vector<16x512xf32>
    %304 = arith.addf %300, %303 : vector<16x512xf32>
    %305 = vector.extract_strided_slice %1 {offsets = [16, 0], sizes = [1, 512], strides = [1, 1]} : vector<18x512xf32> to vector<1x512xf32>
    %cst_51 = arith.constant 0.000000e+00 : f32
    %306 = vector.broadcast %cst_51 : f32 to vector<16x16xf32>
    %307 = vector.extract_strided_slice %287 {offsets = [0, 16], sizes = [16, 496], strides = [1, 1]} : vector<16x512xf32> to vector<16x496xf32>
    %308 = tpu.concatenate %307, %306 in 1 : vector<16x496xf32>, vector<16x16xf32> -> vector<16x512xf32>
    %309 = vector.broadcast %305 : vector<1x512xf32> to vector<16x512xf32>
    %310 = arith.mulf %309, %308 : vector<16x512xf32>
    %311 = arith.addf %304, %310 : vector<16x512xf32>
    %312 = vector.extract_strided_slice %1 {offsets = [17, 0], sizes = [1, 512], strides = [1, 1]} : vector<18x512xf32> to vector<1x512xf32>
    %cst_52 = arith.constant 0.000000e+00 : f32
    %313 = vector.broadcast %cst_52 : f32 to vector<16x32xf32>
    %314 = vector.extract_strided_slice %287 {offsets = [0, 32], sizes = [16, 480], strides = [1, 1]} : vector<16x512xf32> to vector<16x480xf32>
    %315 = tpu.concatenate %314, %313 in 1 : vector<16x480xf32>, vector<16x32xf32> -> vector<16x512xf32>
    %316 = vector.broadcast %312 : vector<1x512xf32> to vector<16x512xf32>
    %317 = arith.mulf %316, %315 : vector<16x512xf32>
    %318 = arith.addf %311, %317 : vector<16x512xf32>
    %319 = vector.extract_strided_slice %0 {offsets = [64, 0], sizes = [32, 32], strides = [1, 1]} : vector<96x34xf32> to vector<32x32xf32>
    %320 = tpu.concatenate %200, %318 in 0 : vector<16x512xf32>, vector<16x512xf32> -> vector<32x512xf32>
    %cst_53 = arith.constant dense<0.000000e+00> : vector<32x512xf32>
    %321 = tpu.matmul %319, %320, %cst_53 {dimension_numbers = #tpu.dot_dimension_numbers<[1], [0], [0], [1], [0, 0, 1, 1], [], []>} : vector<32x32xf32>, vector<32x512xf32>, vector<32x512xf32> -> vector<32x512xf32>
    %322 = vector.extract_strided_slice %0 {offsets = [64, 32], sizes = [32, 1], strides = [1, 1]} : vector<96x34xf32> to vector<32x1xf32>
    %323 = vector.extract_strided_slice %0 {offsets = [64, 33], sizes = [32, 1], strides = [1, 1]} : vector<96x34xf32> to vector<32x1xf32>
    %324 = arith.mulf %321, %321 : vector<32x512xf32>
    %325 = tpu.concatenate %321, %324 in 0 : vector<32x512xf32>, vector<32x512xf32> -> vector<64x512xf32>
    %cst_54 = arith.constant dense<0.000000e+00> : vector<64xf32>
    %326 = vector.multi_reduction <add>, %325, %cst_54 [1] : vector<64x512xf32> to vector<64xf32>
    %327 = vector.shape_cast %326 : vector<64xf32> to vector<64x1xf32>
    %cst_55 = arith.constant 0.001953125 : f32
    %328 = vector.broadcast %cst_55 : f32 to vector<64x1xf32>
    %329 = arith.mulf %327, %328 : vector<64x1xf32>
    %330 = vector.extract_strided_slice %329 {offsets = [0, 0], sizes = [32, 1], strides = [1, 1]} : vector<64x1xf32> to vector<32x1xf32>
    %331 = vector.extract_strided_slice %329 {offsets = [32, 0], sizes = [32, 1], strides = [1, 1]} : vector<64x1xf32> to vector<32x1xf32>
    %332 = arith.mulf %330, %330 : vector<32x1xf32>
    %333 = arith.subf %331, %332 : vector<32x1xf32>
    %cst_56 = arith.constant 0.000000e+00 : f32
    %334 = vector.broadcast %cst_56 : f32 to vector<32x1xf32>
    %335 = arith.maximumf %333, %334 : vector<32x1xf32>
    %cst_57 = arith.constant 9.99999974E-6 : f32
    %336 = vector.broadcast %cst_57 : f32 to vector<32x1xf32>
    %337 = arith.addf %335, %336 : vector<32x1xf32>
    %338 = math.rsqrt %337 : vector<32x1xf32>
    %339 = arith.mulf %322, %338 : vector<32x1xf32>
    %340 = vector.broadcast %339 : vector<32x1xf32> to vector<32x512xf32>
    %341 = arith.mulf %321, %340 : vector<32x512xf32>
    %342 = arith.mulf %330, %339 : vector<32x1xf32>
    %343 = arith.subf %323, %342 : vector<32x1xf32>
    %344 = vector.broadcast %343 : vector<32x1xf32> to vector<32x512xf32>
    %345 = arith.addf %341, %344 : vector<32x512xf32>
    %cst_58 = arith.constant 0.000000e+00 : f32
    %346 = vector.broadcast %cst_58 : f32 to vector<32x512xf32>
    %347 = arith.maximumf %345, %346 : vector<32x512xf32>
    %c0_59 = arith.constant 0 : index
    %c0_60 = arith.constant 0 : index
    %348 = vector.load %arg3[%c0_59, %c0_60] : memref<32x512xf32, #tpu.memory_space<vmem>>, vector<32x512xf32>
    tpu.vector_store %arg3[%c0_59, %c0_60], %347 {strides = array<i32>} : memref<32x512xf32, #tpu.memory_space<vmem>>, vector<32x512xf32>,
    return
  }
}

</mosaic_0001>

<bundles_post_ra>
// kernel: forward.1
= control target key start
LH: loop header
LB: loop body
LE: loop exit
PB: predicated region body
PF: predicated region fallthrough
CT: control target
= control target key end

     0   :  { %vm48_vm0 = vcmask 1043456   ;;  %v4547_v1 = vmov 0.0   ;;  %vm44_vm1 = vcmask 31744   ;;  %v4549_v20 = vmov 32   ;;  %s2820_s20 = smov 17   ;;  %s2821_s21 = smov 15   ;;  %s4541_s0 = inlined_call_operand.vmem [shape: f32[4,512], index: 0, kind: input, shape index: {}]   ;;  %s4542_s1 = inlined_call_operand.vmem [shape: f32[96,34], index: 1, kind: input, shape index: {}]   ;;  %s4543_s2 = inlined_call_operand.vmem [shape: f32[18,512], index: 2, kind: input, shape index: {}]   ;;  %s4544_s3 = inlined_call_operand.vmem [shape: f32[32,512], index: 3, kind: output, shape index: {}]  }
   0x1   :  { %v38_v0 = vld [vmem:[%s4541_s0] sm:$0xff]  ;;  %121 = vmatprep.mubr.f32.mxu0 %v4547_v1  ;;  %v39_v2 = vld [vmem:[%s4541_s0 + $0x8] sm:$0xff]  ;;  %192 = vmatprep.mubr.f32.mxu1 %v4547_v1  ;;  %v4545_v29 = vmov 33   ;;  %s2810_s0 = smov 1   ;;  %v2811_v34 = vmov 0   ;;  %v2812_v35 = vmov 1  }
   0x2   :  { %v42_v3 = vcombine.high %v38_v0, %v38_v0  ;;  %v43_v4 = vcombine.high %v39_v2, %v39_v2  ;;  %v2862_v5 = vld [vmem:[%s4542_s1] sm:$0xff]  ;;  %2747 = vset.pattern.permute.xlu1 %v4549_v20  ;;  %2748 = vset.pattern.permute.xlu0 %v4545_v29  ;;  %v2895_v33 = vld [vmem:[%s4542_s1 + $0x8] sm:$0xff]  ;;  %v2813_v36 = vmov 2   ;;  %v2814_v37 = vmov 3   ;;  %s2822_s22 = smov 16   ;;  %s2823_s23 = smov 127  }
   0x3   :  { %v2815_v38 = vmov 4   ;;  %v2816_v39 = vmov 6   ;;  %v2817_v40 = vmov 8   ;;  %v2818_v43 = vmov 5   ;;  %s2824_s24 = smov 113   ;;  %s2825_s25 = smov 112  }
   0x4   :  { %2665 = vmatprep.subr.msk.mxu0 %vm48_vm0, %v42_v3  ;;  %2668 = vmatprep.subr.msk.mxu1 %vm48_vm0, %v43_v4  ;;  %v2819_v44 = vmov 7   ;;  %s2826_s26 = smov 111   ;;  %vm261_vm2 = vcmask 138240   ;;  %vm364_vm3 = vcmask 121856   ;;  %vm331_vm4 = vcmask 130048   ;;  %s2827_s4 = smov 2  }
   0x5   :  { %2666 = vmatpush1.msk.msra.mxu0 %vm48_vm0, %v38_v0  ;;  %2669 = vmatpush1.msk.msra.mxu1 %vm48_vm0, %v39_v2  ;;  %vm462_vm5 = vcmask 1039360   ;;  %vm417_vm6 = vcmask 7168   ;;  %vm495_vm7 = vcmask 924672   ;;  %vm548_vm8 = vcmask 916480   ;;  %s2828_s5 = smov 126   ;;  %s2829_s13 = smov 32  }
   0x6   :  { %2667 = vmatmul.mubr.msk.f32.vlgmr.msra.gmra.mrb[0].mxu0 %vm44_vm1, %v2862_v5  ;;  %2670 = vmatmul.mubr.msk.f32.vlgmr.msra.gmra.mrb[0].mxu1 %vm44_vm1, %v2862_v5  ;;  %vm581_vm9 = vcmask 908288   ;;  %vm660_vm10 = vcmask 64512   ;;  %vm1035_vm11 = vcmask 261120   ;;  %vm1700_vm12 = vcmask 15360   ;;  %s2830_s14 = smov 96  }
   0x7   :  { %737 = vmatprep.mubr.f32.mxu0 %v4547_v1  ;;  %826 = vmatprep.mubr.f32.mxu1 %v4547_v1  ;;  %vm1917_vm13 = vcmask 1031168   ;;  %vm2206_vm14 = vcmask 785408  }
  0xd9   :  { %v2868_v6 = vpop.f32.mrb[0].mxu0  ;;  %v2870_v7 = vpop.f32.mrb[0].mxu1 }
  0xda   :  { %v199_v8 = vmul.f32 %v2868_v6, %v2868_v6  ;;  %v2874_v9 = vpop.f32.mrb[1].mxu0  ;;  %v2876_v10 = vpop.f32.mrb[1].mxu1  ;;  %v201_v13 = vmul.f32 %v2870_v7, %v2870_v7 }
  0xdb   :  { %v200_v11 = vmul.f32 %v2874_v9, %v2874_v9  ;;  %v203_v12 = vadd.f32 %v2874_v9, %v2868_v6  ;;  %v202_v17 = vmul.f32 %v2876_v10, %v2876_v10 }
  0xdd   :  { %v204_v14 = vadd.f32 %v203_v12, %v2870_v7  ;;  %v208_v15 = vadd.f32 %v200_v11, %v199_v8 }
  0xdf   :  { %v205_v16 = vadd.f32 %v204_v14, %v2876_v10  ;;  %v209_v18 = vadd.f32 %v208_v15, %v201_v13 }
  0xe1   :  { %206 = vadd.xlane.f32.xlu0 %v205_v16  ;;  %v210_v19 = vadd.f32 %v209_v18, %v202_v17  ;;  %v279_v17 = vlaneseq }
  0xe5   :  { %211 = vadd.xlane.f32.xlu0 %v210_v19 }
 0x16e   :  { %v207_v21 = vpop.xlane.xlu0 %206 }
 0x16f   :  { %v213_v22 = vmul.f32 0.001953125, %v207_v21  ;;  %v2999_v21 = vshrl.u32 %v279_v17, 7 }
 0x171   :  { %v215_v24 = vmul.f32 %v213_v22, %v213_v22 }
 0x172   :  { %v212_v23 = vpop.xlane.xlu0 %211 }
 0x173   :  { %v214_v25 = vmul.f32 0.001953125, %v212_v23  ;;  %v3004_v23 = vsub.s32 6, %v2999_v21 }
 0x175   :  { %v216_v26 = vsub.f32 %v214_v25, %v215_v24  ;;  %4562 = vst [vmem:[#allocation2_spill] sm:$0xff] %v3004_v23  ;;  %v3011_v25 = vld [vmem:[%s4543_s2] sm:$0xff] }
 0x177   :  { %v217_v27 = vmax.f32 %v216_v26, 0.0  ;;  %v3014_v26 = vsub.s32 4, %v2999_v21 }
 0x179   :  { %v218_v28 = vadd.f32 1e-05, %v217_v27 }
 0x17b   :  { %2775 = vrsqrt.f32 %v218_v28  ;;  %v3021_v28 = vld [vmem:[%s4543_s2 + $0x8] sm:$0xff] }
 0x185   :  { %v2776_v30 = vpop.eup %2775 }
 0x186   :  { %v220_v31 = vmul.f32 %v2776_v30, %v2862_v5  ;;  %v29_v30 = vld [vmem:[%s4543_s2 + $0x18] sm:$0xff] }
 0x188   :  { %v230_v32 = vmul.f32 %v220_v31, %v213_v22 }
 0x18a   :  { %232 = vrot.lane.b32.xlu1 %v230_v32, %s2810_s0  ;;  %v28_v32 = vld [vmem:[%s4543_s2 + $0x10] sm:$0xff] }
 0x18e   :  { %223 = vperm.xlu1 %2747, %v220_v31   ;;  %v3027_v31 = vsub.s32 5, %v2999_v21 }
 0x190   :  { %4563 = vst [vmem:[#allocation3_spill] sm:$0xff] %v3027_v31 }
 0x192   :  { %2749 = vset.pattern.permute.xlu1 %v2811_v34  ;;  %v282_v34 = vrot.slane %v3011_v25, %v3004_v23 }
 0x193   :  { %272 = vperm.xlu1 %2749, %v2895_v33  }
 0x197   :  { %2750 = vset.pattern.permute.xlu1 %v2812_v35  ;;  %v3036_v35 = vrot.slane %v3011_v25, %v3014_v26 }
 0x198   :  { %341 = vperm.xlu1 %2750, %v2895_v33  }
 0x19c   :  { %2751 = vset.pattern.permute.xlu1 %v2813_v36  ;;  %v3040_v36 = vrot.slane %v3021_v28, %v3004_v23 }
 0x19d   :  { %374 = vperm.xlu1 %2751, %v2895_v33  }
 0x1a1   :  { %2752 = vset.pattern.permute.xlu1 %v2814_v37  ;;  %v3044_v37 = vrot.slane %v3021_v28, %v3014_v26 }
 0x1a2   :  { %427 = vperm.xlu1 %2752, %v2895_v33  }
 0x1a6   :  { %2753 = vset.pattern.permute.xlu1 %v2815_v38  ;;  %v3047_v38 = vrot.slane %v29_v30, %v3004_v23 }
 0x1a7   :  { %443 = vperm.xlu1 %2753, %v2895_v33  }
 0x1ab   :  { %2755 = vset.pattern.permute.xlu1 %v2816_v39 }
 0x1ac   :  { %505 = vperm.xlu1 %2755, %v2895_v33  }
 0x1b0   :  { %2757 = vset.pattern.permute.xlu1 %v2817_v40 }
 0x1b1   :  { %591 = vperm.xlu1 %2757, %v2895_v33  }
 0x1b5   :  { %2758 = vset.pattern.permute.xlu1 %v4549_v20 }
 0x1fc   :  { %v233_v41 = vpop.permute.xlu1 %232 }
 0x1fd   :  { %v235_v42 = vsub.f32 %v2862_v5, %v233_v41 }
 0x1ff   :  { %238 = vperm.xlu0 %2748, %v235_v42   ;;  %v3054_v42 = vrot.slane %v29_v30, %v3027_v31 }
 0x203   :  { %2754 = vset.pattern.permute.xlu0 %v2818_v43  ;;  %v3057_v43 = vrot.slane %v28_v32, %v3004_v23 }
 0x204   :  { %472 = vperm.xlu0 %2754, %v2895_v33  }
 0x208   :  { %2756 = vset.pattern.permute.xlu0 %v2819_v44 }
 0x209   :  { %558 = vperm.xlu0 %2756, %v2895_v33  }
 0x20d   :  { %2759 = vset.pattern.permute.xlu0 %v4545_v29  ;;  %v224_v45 = vpop.permute.xlu1 %223  ;;  %v3101_v29 = vrot.slane %v28_v32, %v3027_v31 }
 0x20e   :  { %v226_v46 = vmul.f32 %v224_v45, %v2868_v6  ;;  %v229_v47 = vmul.f32 %v224_v45, %v2876_v10  ;;  %v228_v49 = vmul.f32 %v224_v45, %v2870_v7  ;;  %v227_v52 = vmul.f32 %v224_v45, %v2874_v9 }
 0x212   :  { %v2968_v59 = vpop.permute.xlu1 %272 }
 0x217   :  { %v2971_v60 = vpop.permute.xlu1 %341 }
 0x21c   :  { %v2973_v61 = vpop.permute.xlu1 %374 }
 0x221   :  { %v2975_v62 = vpop.permute.xlu1 %427 }
 0x226   :  { %v444_v63 = vpop.permute.xlu1 %443 }
 0x22b   :  { %v2979_v2 = vpop.permute.xlu1 %505 }
 0x230   :  { %v2983_v4 = vpop.permute.xlu1 %591 }
 0x27e   :  { %v239_v48 = vpop.permute.xlu0 %238 }
 0x27f   :  { %v241_v50 = vadd.f32 %v239_v48, %v226_v46  ;;  %v244_v51 = vadd.f32 %v239_v48, %v229_v47  ;;  %v243_v53 = vadd.f32 %v239_v48, %v228_v49  ;;  %v242_v56 = vadd.f32 %v239_v48, %v227_v52 }
 0x280   :  { %v3064_v46 = vrot.slane %v28_v32, %v3014_v26  ;;  %v3067_v47 = vrot.slane %v29_v30, %v3014_v26 }
 0x281   :  { %v2913_v54 = vmax.f32 %v241_v50, 0.0  ;;  %v2915_v55 = vmax.f32 %v244_v51, 0.0  ;;  %v2919_v57 = vmax.f32 %v243_v53, 0.0  ;;  %v2921_v58 = vmax.f32 %v242_v56, 0.0 }
 0x283   :  { %259 = vrot.lane.b32.xlu0 %v2915_v55, %s2820_s20  ;;  %253 = vrot.lane.b32.xlu1 %v2913_v54, %s2820_s20  ;;  %v2977_v0 = vpop.permute.xlu0 %472  ;;  %v3070_v48 = vmul.f32 %v444_v63, %v2913_v54  ;;  %v3073_v49 = vmul.f32 %v444_v63, %v2921_v58  ;;  %v3076_v50 = vmul.f32 %v444_v63, %v2919_v57 }
 0x287   :  { %360 = vrot.lane.b32.xlu0 %v2919_v57, %s2821_s21  ;;  %255 = vrot.lane.b32.xlu1 %v2921_v58, %s2820_s20 }
 0x288   :  { %v2981_v3 = vpop.permute.xlu0 %558 }
 0x28b   :  { %362 = vrot.lane.b32.xlu0 %v2915_v55, %s2821_s21  ;;  %257 = vrot.lane.b32.xlu1 %v2919_v57, %s2820_s20 }
 0x28f   :  { %411 = vrot.lane.b32.xlu0 %v2921_v58, %s2810_s0  ;;  %323 = vrot.lane.b32.xlu1 %v2913_v54, %s2822_s22 }
 0x293   :  { %454 = vrot.lane.b32.xlu0 %v2913_v54, %s2823_s23  ;;  %325 = vrot.lane.b32.xlu1 %v2921_v58, %s2822_s22 }
 0x297   :  { %458 = vrot.lane.b32.xlu0 %v2919_v57, %s2823_s23  ;;  %356 = vrot.lane.b32.xlu1 %v2913_v54, %s2821_s21 }
 0x29b   :  { %489 = vrot.lane.b32.xlu0 %v2921_v58, %s2824_s24  ;;  %358 = vrot.lane.b32.xlu1 %v2921_v58, %s2821_s21 }
 0x29f   :  { %460 = vrot.lane.b32.xlu0 %v2915_v55, %s2823_s23  ;;  %327 = vrot.lane.b32.xlu1 %v2919_v57, %s2822_s22 }
 0x2a3   :  { %540 = vrot.lane.b32.xlu0 %v2913_v54, %s2825_s25  ;;  %329 = vrot.lane.b32.xlu1 %v2915_v55, %s2822_s22 }
 0x2a7   :  { %544 = vrot.lane.b32.xlu0 %v2919_v57, %s2825_s25  ;;  %409 = vrot.lane.b32.xlu1 %v2913_v54, %s2810_s0 }
 0x2ab   :  { %575 = vrot.lane.b32.xlu0 %v2921_v58, %s2826_s26  ;;  %413 = vrot.lane.b32.xlu1 %v2919_v57, %s2810_s0 }
 0x2af   :  { %546 = vrot.lane.b32.xlu0 %v2915_v55, %s2825_s25  ;;  %415 = vrot.lane.b32.xlu1 %v2915_v55, %s2810_s0 }
 0x2b3   :  { %456 = vrot.lane.b32.xlu1 %v2921_v58, %s2823_s23 }
 0x2b7   :  { %487 = vrot.lane.b32.xlu1 %v2913_v54, %s2824_s24 }
 0x2bb   :  { %491 = vrot.lane.b32.xlu1 %v2919_v57, %s2824_s24 }
 0x2bf   :  { %493 = vrot.lane.b32.xlu1 %v2915_v55, %s2824_s24 }
 0x2c3   :  { %542 = vrot.lane.b32.xlu1 %v2921_v58, %s2825_s25 }
 0x2c7   :  { %573 = vrot.lane.b32.xlu1 %v2913_v54, %s2826_s26  ;;  %v3086_v54 = vmul.f32 %v444_v63, %v2915_v55 }
 0x2cb   :  { %577 = vrot.lane.b32.xlu1 %v2919_v57, %s2826_s26  ;;  %v3091_v57 = vrot.slane %v3011_v25, %v3027_v31 }
 0x2cf   :  { %579 = vrot.lane.b32.xlu1 %v2915_v55, %s2826_s26 }
 0x2f5   :  { %v260_v5 = vpop.permute.xlu0 %259  ;;  %v254_v6 = vpop.permute.xlu1 %253 }
 0x2f6   :  { %v269_v40 = vsel %vm261_vm2, 0.0, %v254_v6 }
 0x2f7   :  { %v275_v52 = vmul.f32 %v2968_v59, %v269_v40 }
 0x2f9   :  { %v256_v7 = vpop.permute.xlu1 %255  ;;  %v2985_v8 = vpop.permute.xlu0 %360  ;;  %v295_v1 = vmul.f32 %v282_v34, %v275_v52 }
 0x2fa   :  { %v262_v41 = vsel %vm261_vm2, %v254_v6, %v256_v7  ;;  %v3083_v6 = vsub.s32 7, %v2999_v21 }
 0x2fb   :  { %v276_v53 = vmul.f32 %v2968_v59, %v262_v41 }
 0x2fc   :  { %4564 = vst [vmem:[#allocation4_spill] sm:$0xff] %v3083_v6 }
 0x2fd   :  { %v258_v9 = vpop.permute.xlu1 %257  ;;  %v363_v10 = vpop.permute.xlu0 %362  ;;  %v296_v20 = vmul.f32 %v3040_v36, %v276_v53 }
 0x2fe   :  { %v367_v45 = vsel %vm364_vm3, %v2985_v8, %v363_v10  ;;  %v263_v51 = vsel %vm261_vm2, %v256_v7, %v258_v9  ;;  %v3095_v7 = vrot.slane %v3021_v28, %v3027_v31  ;;  %v264_v17 = vsel %vm261_vm2, %v258_v9, %v260_v5 }
 0x2ff   :  { %v380_v58 = vmul.f32 %v2973_v61, %v367_v45  ;;  %v277_v40 = vmul.f32 %v2968_v59, %v263_v51  ;;  %v3112_v9 = vrot.slane %v28_v32, %v3083_v6 }
 0x301   :  { %v324_v11 = vpop.permute.xlu1 %323  ;;  %v2989_v13 = vpop.permute.xlu0 %411  ;;  %v384_v23 = vmul.f32 %v380_v58, %v3047_v38  ;;  %v297_v53 = vmul.f32 %v3057_v43, %v277_v40 }
 0x302   :  { %v339_v41 = vsel %vm331_vm4, 0.0, %v324_v11 }
 0x305   :  { %v2987_v12 = vpop.permute.xlu1 %325  ;;  %v2991_v15 = vpop.permute.xlu0 %454 }
 0x306   :  { %v332_v55 = vsel %vm331_vm4, %v324_v11, %v2987_v12  ;;  %v278_v11 = vmul.f32 %v2968_v59, %v264_v17  ;;  %v3132_v17 = vrot.slane %v29_v30, %v3083_v6 }
 0x307   :  { %v345_v31 = vmul.f32 %v2971_v60, %v332_v55 }
 0x309   :  { %v357_v14 = vpop.permute.xlu1 %356  ;;  %v2997_v19 = vpop.permute.xlu0 %458 }
 0x30a   :  { %v372_v56 = vsel %vm364_vm3, 0.0, %v357_v14 }
 0x30b   :  { %v377_v63 = vmul.f32 %v2973_v61, %v372_v56  ;;  %v344_v56 = vmul.f32 %v2971_v60, %v339_v41  ;;  %v3138_v41 = vrot.slane %v3011_v25, %v3083_v6  ;;  %v317_v25 = vmul.f32 %v3064_v46, %v297_v53 }
 0x30d   :  { %v2993_v16 = vpop.permute.xlu1 %358  ;;  %v3006_v24 = vpop.permute.xlu0 %489  ;;  %v381_v58 = vmul.f32 %v377_v63, %v282_v34 }
 0x30e   :  { %v365_v5 = vsel %vm364_vm3, %v357_v14, %v2993_v16  ;;  %v366_v14 = vsel %vm364_vm3, %v2993_v16, %v2985_v8  ;;  %v3142_v16 = vrot.slane %v3021_v28, %v3083_v6 }
 0x30f   :  { %v378_v59 = vmul.f32 %v2973_v61, %v365_v5  ;;  %v379_v30 = vmul.f32 %v2973_v61, %v366_v14  ;;  %v298_v5 = vmul.f32 %v3047_v38, %v278_v11  ;;  %v401_v28 = vmul.f32 %v3091_v57, %v381_v58 }
 0x311   :  { %v2995_v18 = vpop.permute.xlu1 %327  ;;  %v3059_v44 = vpop.permute.xlu0 %460  ;;  %v382_v6 = vmul.f32 %v378_v59, %v3040_v36 }
 0x312   :  { %v333_v52 = vsel %vm331_vm4, %v2987_v12, %v2995_v18  ;;  %v315_v12 = vmul.f32 %v3036_v35, %v295_v1  ;;  %v404_v1 = vmul.f32 %v3054_v42, %v384_v23  ;;  %v470_v61 = vsel %vm462_vm5, %v3059_v44, 0.0 }
 0x313   :  { %v346_v40 = vmul.f32 %v2971_v60, %v333_v52  ;;  %v349_v52 = vmul.f32 %v345_v31, %v3040_v36 }
 0x315   :  { %v3001_v22 = vpop.permute.xlu1 %329  ;;  %v3106_v45 = vpop.permute.xlu0 %540  ;;  %v350_v23 = vmul.f32 %v346_v40, %v3057_v43 }
 0x316   :  { %v334_v32 = vsel %vm331_vm4, %v2995_v18, %v3001_v22  ;;  %v316_v18 = vmul.f32 %v3044_v37, %v296_v20  ;;  %v348_v22 = vmul.f32 %v344_v56, %v282_v34  ;;  %v465_v20 = vsel %vm462_vm5, %v2997_v19, %v3059_v44 }
 0x317   :  { %v347_v55 = vmul.f32 %v2971_v60, %v334_v32  ;;  %v383_v56 = vmul.f32 %v379_v30, %v3057_v43  ;;  %v318_v44 = vmul.f32 %v3067_v47, %v298_v5  ;;  %v477_v58 = vmul.f32 %v2977_v0, %v465_v20 }
 0x318   :  { %v352_v11 = vadd.f32 %v348_v22, %v315_v12  ;;  %v353_v32 = vadd.f32 %v349_v52, %v316_v18 }
 0x319   :  { %v3016_v27 = vpop.permute.xlu1 %409  ;;  %v3147_v63 = vpop.permute.xlu0 %544  ;;  %v351_v53 = vmul.f32 %v347_v55, %v3047_v38  ;;  %v403_v30 = vmul.f32 %v3101_v29, %v383_v56 }
 0x31a   :  { %v425_v31 = vsel %vm417_vm6, 0.0, %v3016_v27  ;;  %v418_v14 = vsel %vm417_vm6, %v3016_v27, %v2989_v13  ;;  %v354_v27 = vadd.f32 %v350_v23, %v317_v25 }
 0x31b   :  { %v430_v43 = vmul.f32 %v2975_v62, %v425_v31  ;;  %v431_v40 = vmul.f32 %v2975_v62, %v418_v14  ;;  %v355_v55 = vadd.f32 %v351_v53, %v318_v44 }
 0x31c   :  { %v407_v23 = vadd.f32 %v403_v30, %v354_v27 }
 0x31d   :  { %v3049_v39 = vpop.permute.xlu1 %413  ;;  %v3178_v12 = vpop.permute.xlu0 %575  ;;  %v408_v56 = vadd.f32 %v404_v1, %v355_v55 }
 0x31e   :  { %v419_v60 = vsel %vm417_vm6, %v2989_v13, %v3049_v39  ;;  %v402_v13 = vmul.f32 %v3095_v7, %v382_v6 }
 0x31f   :  { %v432_v59 = vmul.f32 %v2975_v62, %v419_v60 }
 0x320   :  { %v406_v44 = vadd.f32 %v402_v13, %v353_v32 }
 0x321   :  { %v416_v10 = vpop.permute.xlu1 %415  ;;  %v436_v20 = vmul.f32 %v432_v59, %v3064_v46 }
 0x322   :  { %v420_v34 = vsel %vm417_vm6, %v3049_v39, %v416_v10  ;;  %v478_v39 = vmul.f32 %v2977_v0, %v470_v61  ;;  %v405_v10 = vadd.f32 %v401_v28, %v352_v11  ;;  %v481_v28 = vmul.f32 %v477_v58, %v3101_v29  ;;  %v547_v11 = vpop.permute.xlu0 %546 }
 0x323   :  { %v433_v38 = vmul.f32 %v2975_v62, %v420_v34  ;;  %v435_v61 = vmul.f32 %v431_v40, %v3044_v37  ;;  %v551_v1 = vsel %vm548_vm8, %v3147_v63, %v547_v11  ;;  %v556_v55 = vsel %vm548_vm8, %v547_v11, 0.0 }
 0x325   :  { %v3114_v51 = vpop.permute.xlu1 %456  ;;  %v437_v25 = vmul.f32 %v433_v38, %v3067_v47  ;;  %v439_v27 = vadd.f32 %v435_v61, %v406_v44 }
 0x326   :  { %v463_v62 = vsel %vm462_vm5, %v2991_v15, %v3114_v51 }
 0x327   :  { %v475_v53 = vmul.f32 %v2977_v0, %v463_v62  ;;  %v451_v62 = vadd.f32 %v3073_v49, %v439_v27 }
 0x329   :  { %v488_v8 = vpop.permute.xlu1 %487 }
 0x32a   :  { %v496_v18 = vsel %vm495_vm7, %v488_v8, %v3006_v24  ;;  %v434_v8 = vmul.f32 %v430_v43, %v3036_v35  ;;  %v441_v43 = vadd.f32 %v437_v25, %v408_v56 }
 0x32b   :  { %v508_v60 = vmul.f32 %v2979_v2, %v496_v18 }
 0x32c   :  { %v438_v59 = vadd.f32 %v434_v8, %v405_v10 }
 0x32d   :  { %v492_v36 = vpop.permute.xlu1 %491  ;;  %v528_v38 = vmul.f32 %v3138_v41, %v508_v60 }
 0x32e   :  { %v497_v5 = vsel %vm495_vm7, %v3006_v24, %v492_v36  ;;  %v464_v24 = vsel %vm462_vm5, %v3114_v51, %v2997_v19  ;;  %v440_v19 = vadd.f32 %v436_v20, %v407_v23 }
 0x32f   :  { %v509_v31 = vmul.f32 %v2979_v2, %v497_v5  ;;  %v476_v51 = vmul.f32 %v2977_v0, %v464_v24  ;;  %v479_v0 = vmul.f32 %v475_v53, %v3091_v57  ;;  %v453_v5 = vadd.f32 %v3086_v54, %v441_v43 }
 0x330   :  { %v452_v18 = vadd.f32 %v3076_v50, %v440_v19  ;;  %v532_v20 = vmul.f32 %v528_v38, %v3036_v35 }
 0x331   :  { %v494_v22 = vpop.permute.xlu1 %493 }
 0x332   :  { %v498_v52 = vsel %vm495_vm7, %v492_v36, %v494_v22  ;;  %v503_v6 = vsel %vm495_vm7, %v494_v22, 0.0  ;;  %v482_v36 = vmul.f32 %v478_v39, %v3054_v42  ;;  %v480_v22 = vmul.f32 %v476_v51, %v3095_v7 }
 0x333   :  { %v510_v34 = vmul.f32 %v2979_v2, %v498_v52  ;;  %v511_v14 = vmul.f32 %v2979_v2, %v503_v6  ;;  %v529_v2 = vmul.f32 %v3142_v16, %v509_v31  ;;  %v450_v52 = vadd.f32 %v3070_v48, %v438_v59 }
 0x334   :  { %v484_v48 = vadd.f32 %v480_v22, %v451_v62  ;;  %v485_v23 = vadd.f32 %v481_v28, %v452_v18  ;;  %v486_v31 = vadd.f32 %v482_v36, %v453_v5 }
 0x335   :  { %v543_v15 = vpop.permute.xlu1 %542  ;;  %v530_v32 = vmul.f32 %v3112_v9, %v510_v34  ;;  %v533_v6 = vmul.f32 %v529_v2, %v3044_v37  ;;  %v483_v24 = vadd.f32 %v479_v0, %v450_v52  ;;  %v563_v37 = vmul.f32 %v2981_v3, %v551_v1 }
 0x336   :  { %v549_v58 = vsel %vm548_vm8, %v3106_v45, %v543_v15  ;;  %v550_v39 = vsel %vm548_vm8, %v543_v15, %v3147_v63  ;;  %v531_v45 = vmul.f32 %v3132_v17, %v511_v14 }
 0x337   :  { %v561_v10 = vmul.f32 %v2981_v3, %v549_v58  ;;  %v562_v63 = vmul.f32 %v2981_v3, %v550_v39  ;;  %v534_v50 = vmul.f32 %v530_v32, %v3064_v46  ;;  %v564_v46 = vmul.f32 %v2981_v3, %v556_v55 }
 0x338   :  { %v535_v60 = vmul.f32 %v531_v45, %v3067_v47  ;;  %v536_v34 = vadd.f32 %v532_v20, %v483_v24  ;;  %v537_v11 = vadd.f32 %v533_v6, %v484_v48  ;;  %v567_v51 = vmul.f32 %v563_v37, %v3112_v9 }
 0x339   :  { %v574_v13 = vpop.permute.xlu1 %573  ;;  %v565_v61 = vmul.f32 %v561_v10, %v3138_v41  ;;  %v566_v35 = vmul.f32 %v562_v63, %v3142_v16  ;;  %v538_v15 = vadd.f32 %v534_v50, %v485_v23 }
 0x33a   :  { %v582_v40 = vsel %vm581_vm9, %v574_v13, %v3178_v12  ;;  %v539_v14 = vadd.f32 %v535_v60, %v486_v31 }
 0x33b   :  { %v594_v30 = vmul.f32 %v2983_v4, %v582_v40  ;;  %v570_v44 = vadd.f32 %v566_v35, %v537_v11  ;;  %v571_v38 = vadd.f32 %v567_v51, %v538_v15 }
 0x33d   :  { %v598_v8 = vmul.f32 %v594_v30, %v3138_v41  ;;  %v578_v25 = vpop.permute.xlu1 %577 }
 0x33e   :  { %v583_v54 = vsel %vm581_vm9, %v3178_v12, %v578_v25  ;;  %v569_v12 = vadd.f32 %v565_v61, %v536_v34 }
 0x33f   :  { %v595_v49 = vmul.f32 %v2983_v4, %v583_v54  ;;  %v602_v47 = vmul.f32 %v598_v8, %v3091_v57  ;;  %v568_v57 = vmul.f32 %v564_v46, %v3132_v17 }
 0x341   :  { %v599_v41 = vmul.f32 %v595_v49, %v3142_v16  ;;  %v580_v56 = vpop.permute.xlu1 %579  ;;  %v606_v58 = vadd.f32 %v602_v47, %v569_v12  ;;  %v572_v27 = vadd.f32 %v568_v57, %v539_v14  ;;  %v4566_v47 = vmov 0.0   ;;  %v3294_v12 = vld [vmem:[%s4542_s1 + $0x28] sm:$0xff] }
 0x342   :  { %v584_v28 = vsel %vm581_vm9, %v578_v25, %v580_v56  ;;  %v589_v53 = vsel %vm581_vm9, %v580_v56, 0.0  ;;  %v4565_v25 = vmov 32   ;;  %v3283_v56 = vld [vmem:[%s4542_s1 + $0x20] sm:$0xff] }
 0x343   :  { %v603_v19 = vmul.f32 %v599_v41, %v3095_v7  ;;  %v596_v3 = vmul.f32 %v2983_v4, %v584_v28  ;;  %v597_v36 = vmul.f32 %v2983_v4, %v589_v53  ;;  %v610_v13 = vmul.f32 %v606_v58, %v606_v58  ;;  %v3272_v41 = vld [vmem:[%s4542_s1 + $0x18] sm:$0xff] }
 0x345   :  { %v600_v16 = vmul.f32 %v596_v3, %v3112_v9  ;;  %v601_v59 = vmul.f32 %v597_v36, %v3132_v17  ;;  %v607_v43 = vadd.f32 %v603_v19, %v570_v44 }
 0x347   :  { %v604_v39 = vmul.f32 %v600_v16, %v3101_v29  ;;  %v605_v7 = vmul.f32 %v601_v59, %v3054_v42  ;;  %v611_v1 = vmul.f32 %v607_v43, %v607_v43  ;;  %v614_v4 = vadd.f32 %v607_v43, %v606_v58 }
 0x349   :  { %v608_v2 = vadd.f32 %v604_v39, %v571_v38  ;;  %v609_v32 = vadd.f32 %v605_v7, %v572_v27  ;;  %v619_v10 = vadd.f32 %v611_v1, %v610_v13 }
 0x34b   :  { %v615_v0 = vadd.f32 %v614_v4, %v608_v2  ;;  %v612_v45 = vmul.f32 %v608_v2, %v608_v2  ;;  %v613_v18 = vmul.f32 %v609_v32, %v609_v32 }
 0x34d   :  { %v616_v40 = vadd.f32 %v615_v0, %v609_v32  ;;  %v620_v9 = vadd.f32 %v619_v10, %v612_v45 }
 0x34f   :  { %617 = vadd.xlane.f32.xlu0 %v616_v40  ;;  %v621_v17 = vadd.f32 %v620_v9, %v613_v18 }
 0x351   :  { %622 = vadd.xlane.f32.xlu1 %v621_v17 }
 0x3dc   :  { %v618_v22 = vpop.xlane.xlu0 %617 }
 0x3dd   :  { %v624_v63 = vmul.f32 0.001953125, %v618_v22 }
 0x3de   :  { %v623_v29 = vpop.xlane.xlu1 %622 }
 0x3df   :  { %v626_v30 = vmul.f32 %v624_v63, %v624_v63  ;;  %v625_v55 = vmul.f32 0.001953125, %v623_v29 }
 0x3e1   :  { %v627_v42 = vsub.f32 %v625_v55, %v626_v30 }
 0x3e3   :  { %v628_v5 = vmax.f32 %v627_v42, 0.0 }
 0x3e5   :  { %v629_v52 = vadd.f32 1e-05, %v628_v5 }
 0x3e7   :  { %2777 = vrsqrt.f32 %v629_v52 }
 0x3f1   :  { %v2778_v20 = vpop.eup %2777 }
 0x3f2   :  { %v631_v62 = vmul.f32 %v2778_v20, %v2895_v33 }
 0x3f4   :  { %634 = vperm.xlu1 %2758, %v631_v62   ;;  %v641_v6 = vmul.f32 %v631_v62, %v624_v63 }
 0x3f6   :  { %643 = vrot.lane.b32.xlu0 %v641_v6, %s2810_s0 }
 0x468   :  { %v644_v50 = vpop.permute.xlu0 %643 }
 0x469   :  { %v646_v8 = vsub.f32 %v2895_v33, %v644_v50  ;;  %v3262_v33 = vld [vmem:[%s4542_s1 + $0x10] sm:$0xff] }
 0x46b   :  { %649 = vperm.xlu0 %2759, %v646_v8  }
 0x46f   :  { %2760 = vset.pattern.permute.xlu0 %v4565_v25 }
 0x473   :  { %v635_v24 = vpop.permute.xlu1 %634 }
 0x474   :  { %v637_v60 = vmul.f32 %v635_v24, %v606_v58  ;;  %v639_v61 = vmul.f32 %v635_v24, %v608_v2  ;;  %v638_v54 = vmul.f32 %v635_v24, %v607_v43  ;;  %v640_v48 = vmul.f32 %v635_v24, %v609_v32 }
 0x4ea   :  { %v650_v23 = vpop.permute.xlu0 %649 }
 0x4eb   :  { %v653_v35 = vadd.f32 %v650_v23, %v638_v54  ;;  %v655_v49 = vadd.f32 %v650_v23, %v640_v48  ;;  %v652_v37 = vadd.f32 %v650_v23, %v637_v60  ;;  %v654_v46 = vadd.f32 %v650_v23, %v639_v61 }
 0x4ed   :  { %v657_v31 = vmax.f32 %v653_v35, 0.0  ;;  %v659_v34 = vmax.f32 %v655_v49, 0.0  ;;  %v656_v15 = vmax.f32 %v652_v37, 0.0  ;;  %v658_v11 = vmax.f32 %v654_v46, 0.0 }
 0x4ef   :  { %673 = vmatprep.subr.mxu0 %v657_v31  ;;  %762 = vmatprep.subr.mxu1 %v659_v34 }
 0x4f0   :  { %674 = vmatpush1.msra.mxu0 %v656_v15  ;;  %763 = vmatpush1.msra.mxu1 %v658_v11 }
 0x4f1   :  { %2671 = vmatmul.mubr.msk.f32.vlgmr.msra.gmra.mrb[2].mxu0 %vm660_vm10, %v3262_v33  ;;  %2675 = vmatmul.mubr.msk.f32.vlgmr.msra.gmra.mrb[2].mxu1 %vm660_vm10, %v3262_v33 }
 0x4f2   :  { %743 = vmatprep.mubr.f32.mxu0 %v4566_v47  ;;  %832 = vmatprep.mubr.f32.mxu1 %v4566_v47 }
 0x4f5   :  { %2672 = vmatmul.mubr.msk.f32.gmra.mrb[4].mxu0 %vm660_vm10, %v3272_v41  ;;  %2676 = vmatmul.mubr.msk.f32.gmra.mrb[4].mxu1 %vm660_vm10, %v3272_v41 }
 0x4f6   :  { %749 = vmatprep.mubr.f32.mxu0 %v4566_v47  ;;  %838 = vmatprep.mubr.f32.mxu1 %v4566_v47 }
 0x4f9   :  { %2673 = vmatmul.mubr.msk.f32.gmra.mrb[6].mxu0 %vm660_vm10, %v3283_v56  ;;  %2677 = vmatmul.mubr.msk.f32.gmra.mrb[6].mxu1 %vm660_vm10, %v3283_v56 }
 0x4fa   :  { %755 = vmatprep.mubr.f32.mxu0 %v4566_v47  ;;  %844 = vmatprep.mubr.f32.mxu1 %v4566_v47 }
 0x4fd   :  { %2674 = vmatmul.mubr.msk.f32.gmra.mrb[8].mxu0 %vm660_vm10, %v3294_v12  ;;  %2678 = vmatmul.mubr.msk.f32.gmra.mrb[8].mxu1 %vm660_vm10, %v3294_v12 }
 0x4fe   :  { %1106 = vmatprep.mubr.f32.mxu0 %v4566_v47  ;;  %1183 = vmatprep.mubr.f32.mxu1 %v4566_v47 }
 0x5c4   :  { %v3303_v28 = vpop.f32.mrb[2].mxu0  ;;  %v3305_v53 = vpop.f32.mrb[2].mxu1 }
 0x5c5   :  { %v851_v14 = vmul.f32 %v3303_v28, %v3303_v28  ;;  %v3309_v44 = vpop.f32.mrb[3].mxu0  ;;  %v3311_v19 = vpop.f32.mrb[3].mxu1  ;;  %v853_v51 = vmul.f32 %v3305_v53, %v3305_v53 }
 0x5c6   :  { %v852_v3 = vmul.f32 %v3309_v44, %v3309_v44  ;;  %v867_v36 = vadd.f32 %v3309_v44, %v3303_v28  ;;  %v854_v7 = vmul.f32 %v3311_v19, %v3311_v19 }
 0x5c8   :  { %v3319_v57 = vpop.f32.mrb[4].mxu0  ;;  %v3321_v58 = vpop.f32.mrb[4].mxu1  ;;  %v868_v16 = vadd.f32 %v867_v36, %v3305_v53  ;;  %v887_v59 = vadd.f32 %v852_v3, %v851_v14 }
 0x5c9   :  { %v855_v43 = vmul.f32 %v3319_v57, %v3319_v57  ;;  %v3326_v38 = vpop.f32.mrb[5].mxu0  ;;  %v857_v39 = vmul.f32 %v3321_v58, %v3321_v58  ;;  %v3330_v27 = vpop.f32.mrb[5].mxu1 }
 0x5ca   :  { %v856_v1 = vmul.f32 %v3326_v38, %v3326_v38  ;;  %v872_v2 = vadd.f32 %v3326_v38, %v3319_v57  ;;  %v869_v32 = vadd.f32 %v868_v16, %v3311_v19  ;;  %v888_v4 = vadd.f32 %v887_v59, %v853_v51 }
 0x5cb   :  { %v858_v63 = vmul.f32 %v3330_v27, %v3330_v27 }
 0x5cc   :  { %870 = vadd.xlane.f32.xlu1 %v869_v32  ;;  %v3339_v13 = vpop.f32.mrb[6].mxu0  ;;  %v3341_v0 = vpop.f32.mrb[6].mxu1  ;;  %v889_v45 = vadd.f32 %v888_v4, %v854_v7  ;;  %v873_v10 = vadd.f32 %v872_v2, %v3321_v58  ;;  %v892_v40 = vadd.f32 %v856_v1, %v855_v43 }
 0x5cd   :  { %v859_v18 = vmul.f32 %v3339_v13, %v3339_v13  ;;  %v3346_v9 = vpop.f32.mrb[7].mxu0  ;;  %v861_v17 = vmul.f32 %v3341_v0, %v3341_v0  ;;  %v3350_v22 = vpop.f32.mrb[7].mxu1 }
 0x5ce   :  { %v860_v29 = vmul.f32 %v3346_v9, %v3346_v9  ;;  %v877_v30 = vadd.f32 %v3346_v9, %v3339_v13  ;;  %v874_v55 = vadd.f32 %v873_v10, %v3330_v27  ;;  %v893_v42 = vadd.f32 %v892_v40, %v857_v39 }
 0x5cf   :  { %v862_v61 = vmul.f32 %v3350_v22, %v3350_v22 }
 0x5d0   :  { %890 = vadd.xlane.f32.xlu1 %v889_v45  ;;  %875 = vadd.xlane.f32.xlu0 %v874_v55  ;;  %v3359_v5 = vpop.f32.mrb[8].mxu0  ;;  %v3361_v52 = vpop.f32.mrb[8].mxu1  ;;  %v894_v20 = vadd.f32 %v893_v42, %v858_v63  ;;  %v878_v62 = vadd.f32 %v877_v30, %v3341_v0  ;;  %v897_v6 = vadd.f32 %v860_v29, %v859_v18 }
 0x5d1   :  { %v863_v50 = vmul.f32 %v3359_v5, %v3359_v5  ;;  %v3366_v8 = vpop.f32.mrb[9].mxu0  ;;  %v865_v24 = vmul.f32 %v3361_v52, %v3361_v52  ;;  %v3370_v60 = vpop.f32.mrb[9].mxu1 }
 0x5d2   :  { %v864_v54 = vmul.f32 %v3366_v8, %v3366_v8  ;;  %v882_v48 = vadd.f32 %v3366_v8, %v3359_v5  ;;  %v879_v23 = vadd.f32 %v878_v62, %v3350_v22  ;;  %v898_v35 = vadd.f32 %v897_v6, %v861_v17 }
 0x5d3   :  { %v866_v34 = vmul.f32 %v3370_v60, %v3370_v60 }
 0x5d4   :  { %895 = vadd.xlane.f32.xlu0 %v894_v20  ;;  %880 = vadd.xlane.f32.xlu1 %v879_v23  ;;  %v899_v49 = vadd.f32 %v898_v35, %v862_v61  ;;  %v883_v37 = vadd.f32 %v882_v48, %v3361_v52  ;;  %v902_v46 = vadd.f32 %v864_v54, %v863_v50 }
 0x5d6   :  { %v884_v31 = vadd.f32 %v883_v37, %v3370_v60  ;;  %v903_v15 = vadd.f32 %v902_v46, %v865_v24 }
 0x5d8   :  { %900 = vadd.xlane.f32.xlu1 %v899_v49  ;;  %885 = vadd.xlane.f32.xlu0 %v884_v31  ;;  %v904_v11 = vadd.f32 %v903_v15, %v866_v34 }
 0x5dc   :  { %905 = vadd.xlane.f32.xlu0 %v904_v11 }
 0x659   :  { %v871_v14 = vpop.xlane.xlu1 %870 }
 0x65a   :  { %v907_v3 = vmul.f32 0.001953125, %v871_v14 }
 0x65c   :  { %v915_v16 = vmul.f32 %v907_v3, %v907_v3 }
 0x65d   :  { %v891_v36 = vpop.xlane.xlu1 %890  ;;  %v876_v51 = vpop.xlane.xlu0 %875 }
 0x65e   :  { %v911_v59 = vmul.f32 0.001953125, %v891_v36  ;;  %v908_v43 = vmul.f32 0.001953125, %v876_v51 }
 0x660   :  { %v919_v39 = vsub.f32 %v911_v59, %v915_v16  ;;  %v916_v32 = vmul.f32 %v908_v43, %v908_v43 }
 0x661   :  { %v896_v7 = vpop.xlane.xlu0 %895  ;;  %v881_v1 = vpop.xlane.xlu1 %880 }
 0x662   :  { %v923_v2 = vmax.f32 %v919_v39, 0.0  ;;  %v912_v4 = vmul.f32 0.001953125, %v896_v7  ;;  %v909_v45 = vmul.f32 0.001953125, %v881_v1 }
 0x664   :  { %v927_v10 = vadd.f32 1e-05, %v923_v2  ;;  %v920_v40 = vsub.f32 %v912_v4, %v916_v32  ;;  %v917_v18 = vmul.f32 %v909_v45, %v909_v45 }
 0x665   :  { %v901_v17 = vpop.xlane.xlu1 %900  ;;  %v886_v63 = vpop.xlane.xlu0 %885 }
 0x666   :  { %2779 = vrsqrt.f32 %v927_v10  ;;  %v924_v29 = vmax.f32 %v920_v40, 0.0  ;;  %v913_v30 = vmul.f32 0.001953125, %v901_v17  ;;  %v910_v55 = vmul.f32 0.001953125, %v886_v63 }
 0x668   :  { %v928_v42 = vadd.f32 1e-05, %v924_v29  ;;  %v921_v20 = vsub.f32 %v913_v30, %v917_v18  ;;  %v918_v50 = vmul.f32 %v910_v55, %v910_v55 }
 0x669   :  { %v906_v62 = vpop.xlane.xlu0 %905 }
 0x66a   :  { %2781 = vrsqrt.f32 %v928_v42  ;;  %v925_v6 = vmax.f32 %v921_v20, 0.0  ;;  %v914_v24 = vmul.f32 0.001953125, %v906_v62 }
 0x66c   :  { %v929_v61 = vadd.f32 1e-05, %v925_v6  ;;  %v922_v54 = vsub.f32 %v914_v24, %v918_v50 }
 0x66e   :  { %2783 = vrsqrt.f32 %v929_v61  ;;  %v926_v48 = vmax.f32 %v922_v54, 0.0 }
 0x670   :  { %v2780_v23 = vpop.eup %2779  ;;  %v930_v35 = vadd.f32 1e-05, %v926_v48 }
 0x671   :  { %v935_v49 = vmul.f32 %v2780_v23, %v3262_v33 }
 0x672   :  { %2785 = vrsqrt.f32 %v930_v35 }
 0x673   :  { %v975_v37 = vmul.f32 %v935_v49, %v907_v3  ;;  %v4567_v3 = vmov 33  }
 0x674   :  { %v2782_v46 = vpop.eup %2781 }
 0x675   :  { %983 = vrot.lane.b32.xlu1 %v975_v37, %s2810_s0  ;;  %v936_v31 = vmul.f32 %v2782_v46, %v3272_v41 }
 0x677   :  { %v976_v34 = vmul.f32 %v936_v31, %v908_v43 }
 0x678   :  { %v2784_v15 = vpop.eup %2783 }
 0x679   :  { %985 = vrot.lane.b32.xlu0 %v976_v34, %s2810_s0  ;;  %v937_v11 = vmul.f32 %v2784_v15, %v3283_v56 }
 0x67b   :  { %v977_v14 = vmul.f32 %v937_v11, %v909_v45 }
 0x67c   :  { %v2786_v36 = vpop.eup %2785 }
 0x67d   :  { %987 = vrot.lane.b32.xlu1 %v977_v14, %s2810_s0  ;;  %941 = vperm.xlu0 %2760, %v935_v49   ;;  %v938_v51 = vmul.f32 %v2786_v36, %v3294_v12 }
 0x67f   :  { %v978_v16 = vmul.f32 %v938_v51, %v910_v55 }
 0x681   :  { %989 = vrot.lane.b32.xlu1 %v978_v16, %s2810_s0  ;;  %2762 = vset.pattern.permute.xlu0 %v4567_v3 }
 0x685   :  { %946 = vperm.xlu1 %2758, %v936_v31  }
 0x689   :  { %951 = vperm.xlu1 %2758, %v937_v11  }
 0x68d   :  { %956 = vperm.xlu1 %2758, %v938_v51  }
 0x691   :  { %2761 = vset.pattern.permute.xlu1 %v4567_v3 }
 0x6e7   :  { %v984_v59 = vpop.permute.xlu1 %983 }
 0x6e8   :  { %v995_v43 = vsub.f32 %v3262_v33, %v984_v59 }
 0x6ea   :  { %1001 = vperm.xlu1 %2761, %v995_v43  }
 0x6eb   :  { %v986_v39 = vpop.permute.xlu0 %985 }
 0x6ec   :  { %v996_v7 = vsub.f32 %v3272_v41, %v986_v39 }
 0x6ee   :  { %1006 = vperm.xlu0 %2762, %v996_v7  }
 0x6ef   :  { %v988_v1 = vpop.permute.xlu1 %987 }
 0x6f0   :  { %v997_v2 = vsub.f32 %v3283_v56, %v988_v1 }
 0x6f2   :  { %1011 = vperm.xlu0 %2762, %v997_v2  }
 0x6f3   :  { %v990_v32 = vpop.permute.xlu1 %989 }
 0x6f4   :  { %v998_v4 = vsub.f32 %v3294_v12, %v990_v32 }
 0x6f6   :  { %1016 = vperm.xlu1 %2761, %v998_v4   ;;  %2764 = vset.pattern.permute.xlu0 %v4565_v25 }
 0x6fa   :  { %2763 = vset.pattern.permute.xlu1 %v4565_v25 }
 0x6fc   :  { %v942_v40 = vpop.permute.xlu0 %941 }
 0x6fd   :  { %v959_v41 = vmul.f32 %v942_v40, %v3303_v28  ;;  %v961_v17 = vmul.f32 %v942_v40, %v3305_v53  ;;  %v960_v56 = vmul.f32 %v942_v40, %v3309_v44  ;;  %v962_v63 = vmul.f32 %v942_v40, %v3311_v19 }
 0x704   :  { %v947_v45 = vpop.permute.xlu1 %946 }
 0x705   :  { %v963_v12 = vmul.f32 %v947_v45, %v3319_v57  ;;  %v965_v29 = vmul.f32 %v947_v45, %v3321_v58  ;;  %v964_v30 = vmul.f32 %v947_v45, %v3326_v38  ;;  %v966_v55 = vmul.f32 %v947_v45, %v3330_v27 }
 0x708   :  { %v952_v10 = vpop.permute.xlu1 %951 }
 0x709   :  { %v967_v57 = vmul.f32 %v952_v10, %v3339_v13  ;;  %v969_v38 = vmul.f32 %v952_v10, %v3341_v0  ;;  %v968_v27 = vmul.f32 %v952_v10, %v3346_v9  ;;  %v970_v23 = vmul.f32 %v952_v10, %v3350_v22 }
 0x70c   :  { %v957_v33 = vpop.permute.xlu1 %956 }
 0x70d   :  { %v971_v35 = vmul.f32 %v957_v33, %v3359_v5  ;;  %v973_v49 = vmul.f32 %v957_v33, %v3361_v52  ;;  %v972_v37 = vmul.f32 %v957_v33, %v3366_v8  ;;  %v974_v46 = vmul.f32 %v957_v33, %v3370_v60  ;;  %v3418_v5 = vld [vmem:[%s4542_s1 + $0x30] sm:$0xff]  ;;  %v3428_v52 = vld [vmem:[%s4542_s1 + $0x38] sm:$0xff] }
 0x769   :  { %v1002_v18 = vpop.permute.xlu1 %1001 }
 0x76a   :  { %v1019_v42 = vadd.f32 %v1002_v18, %v959_v41  ;;  %v1021_v20 = vadd.f32 %v1002_v18, %v961_v17  ;;  %v1020_v6 = vadd.f32 %v1002_v18, %v960_v56  ;;  %v1022_v50 = vadd.f32 %v1002_v18, %v962_v63 }
 0x76d   :  { %v1007_v62 = vpop.permute.xlu0 %1006 }
 0x76e   :  { %v1023_v28 = vadd.f32 %v1007_v62, %v963_v12  ;;  %v1025_v24 = vadd.f32 %v1007_v62, %v965_v29  ;;  %v1024_v53 = vadd.f32 %v1007_v62, %v964_v30  ;;  %v1026_v61 = vadd.f32 %v1007_v62, %v966_v55 }
 0x770   :  { %v2691_v44 = vpack.c.bf16 %v1024_v53, %v1020_v6  ;;  %v2699_v54 = vpack.c.bf16 %v1026_v61, %v1022_v50  ;;  %v2693_v19 = vpack.c.bf16 %v1023_v28, %v1019_v42  ;;  %v2701_v48 = vpack.c.bf16 %v1025_v24, %v1021_v20 }
 0x771   :  { %v1012_v58 = vpop.permute.xlu0 %1011  ;;  %v3518_v24 = vsub.s32 0, %v2999_v21 }
 0x772   :  { %2692 = vmatprep.subr.bf16.mxu0 %v2691_v44  ;;  %2700 = vmatprep.subr.bf16.mxu1 %v2699_v54  ;;  %v1027_v13 = vadd.f32 %v1012_v58, %v967_v57  ;;  %v1029_v31 = vadd.f32 %v1012_v58, %v969_v38  ;;  %v1028_v15 = vadd.f32 %v1012_v58, %v968_v27  ;;  %v3523_v44 = vld [vmem:[%s4543_s2] sm:$0xff]  ;;  %v3534_v57 = vld [vmem:[%s4543_s2 + $0x8] sm:$0xff] }
 0x773   :  { %2694 = vmatpush1.bf16.msra.mxu0 %v2693_v19  ;;  %2702 = vmatpush1.bf16.msra.mxu1 %v2701_v48  ;;  %v1030_v11 = vadd.f32 %v1012_v58, %v970_v23  ;;  %v1339_v54 = vrot.slane %v3523_v44, %v3518_v24  ;;  %v3528_v19 = vsub.s32 1, %v2999_v21  ;;  %v3538_v58 = vrot.slane %v3534_v57, %v3518_v24 }
 0x775   :  { %v1017_v34 = vpop.permute.xlu1 %1016 }
 0x776   :  { %v1031_v0 = vadd.f32 %v1017_v34, %v971_v35  ;;  %v1033_v14 = vadd.f32 %v1017_v34, %v973_v49  ;;  %v1032_v36 = vadd.f32 %v1017_v34, %v972_v37  ;;  %v1034_v51 = vadd.f32 %v1017_v34, %v974_v46  ;;  %v3544_v49 = vld [vmem:[%s4543_s2 + $0x10] sm:$0xff] }
 0x777   :  { %v1347_v37 = vrot.slane %v3544_v49, %v3518_v24  ;;  %v1403_v46 = vrot.slane %v3523_v44, %v3528_v19  ;;  %v3554_v34 = vrot.slane %v3534_v57, %v3528_v19 }
 0x778   :  { %v2695_v9 = vpack.c.bf16 %v1032_v36, %v1028_v15  ;;  %v2703_v16 = vpack.c.bf16 %v1034_v51, %v1030_v11  ;;  %v2697_v22 = vpack.c.bf16 %v1031_v0, %v1027_v13  ;;  %v2705_v59 = vpack.c.bf16 %v1033_v14, %v1029_v31 }
 0x779   :  { %v1411_v14 = vrot.slane %v3544_v49, %v3528_v19 }
 0x77a   :  { %2696 = vmatprep.subr.bf16.mxu0 %v2695_v9  ;;  %2704 = vmatprep.subr.bf16.mxu1 %v2703_v16 }
 0x77b   :  { %2698 = vmatpush1.bf16.msra.mxu0 %v2697_v22  ;;  %2706 = vmatpush1.bf16.msra.mxu1 %v2705_v59 }
 0x77e   :  { %2679 = vmatmul.mubr.msk.f32.vlgmr.msra.gmra.mrb[10].mxu0 %vm1035_vm11, %v3418_v5  ;;  %2681 = vmatmul.mubr.msk.f32.vlgmr.msra.gmra.mrb[10].mxu1 %vm1035_vm11, %v3418_v5 }
 0x77f   :  { %1112 = vmatprep.mubr.f32.mxu0 %v4566_v47  ;;  %1189 = vmatprep.mubr.f32.mxu1 %v4566_v47 }
 0x782   :  { %2680 = vmatmul.mubr.msk.f32.gmra.mrb[12].mxu0 %vm1035_vm11, %v3428_v52  ;;  %2682 = vmatmul.mubr.msk.f32.gmra.mrb[12].mxu1 %vm1035_vm11, %v3428_v52 }
 0x783   :  { %2331 = vmatprep.mubr.f32.mxu0 %v4566_v47  ;;  %2420 = vmatprep.mubr.f32.mxu1 %v4566_v47 }
 0x851   :  { %v3437_v8 = vpop.f32.mrb[10].mxu0  ;;  %v3439_v60 = vpop.f32.mrb[10].mxu1 }
 0x852   :  { %1304 = vrot.lane.b32.xlu0 %v3437_v8, %s2823_s23  ;;  %v3443_v43 = vpop.f32.mrb[11].mxu0  ;;  %v3445_v39 = vpop.f32.mrb[11].mxu1  ;;  %v1196_v7 = vmul.f32 %v3437_v8, %v3437_v8  ;;  %v1198_v32 = vmul.f32 %v3439_v60, %v3439_v60 }
 0x853   :  { %1306 = vrot.lane.b32.xlu1 %v3443_v43, %s2823_s23  ;;  %v1204_v1 = vadd.f32 %v3443_v43, %v3437_v8  ;;  %v1197_v2 = vmul.f32 %v3443_v43, %v3443_v43  ;;  %v1199_v17 = vmul.f32 %v3445_v39, %v3445_v39 }
 0x855   :  { %v3457_v4 = vpop.f32.mrb[12].mxu0  ;;  %v3459_v45 = vpop.f32.mrb[12].mxu1  ;;  %v1205_v10 = vadd.f32 %v1204_v1, %v3439_v60  ;;  %v1214_v33 = vadd.f32 %v1197_v2, %v1196_v7 }
 0x856   :  { %1308 = vrot.lane.b32.xlu0 %v3439_v60, %s2823_s23  ;;  %v3464_v40 = vpop.f32.mrb[13].mxu0  ;;  %v3466_v18 = vpop.f32.mrb[13].mxu1  ;;  %v1200_v41 = vmul.f32 %v3457_v4, %v3457_v4  ;;  %v1202_v29 = vmul.f32 %v3459_v45, %v3459_v45 }
 0x857   :  { %4568 = vst [vmem:[#allocation5_spill] sm:$0xff] %v3466_v18  ;;  %1310 = vrot.lane.b32.xlu1 %v3445_v39, %s2823_s23  ;;  %v1209_v56 = vadd.f32 %v3464_v40, %v3457_v4  ;;  %v3477_v63 = vadd.f32 %v1205_v10, %v3445_v39  ;;  %v1201_v12 = vmul.f32 %v3464_v40, %v3464_v40 }
 0x858   :  { %v1215_v30 = vadd.f32 %v1214_v33, %v1198_v32  ;;  %v1203_v42 = vmul.f32 %v3466_v18, %v3466_v18 }
 0x859   :  { %v1210_v55 = vadd.f32 %v1209_v56, %v3459_v45  ;;  %v1219_v20 = vadd.f32 %v1201_v12, %v1200_v41 }
 0x85a   :  { %1368 = vrot.lane.b32.xlu0 %v3437_v8, %s2810_s0  ;;  %v3488_v62 = vadd.f32 %v1215_v30, %v1199_v17 }
 0x85b   :  { %1370 = vrot.lane.b32.xlu1 %v3443_v43, %s2810_s0  ;;  %v3493_v6 = vadd.f32 %v1210_v55, %v3466_v18  ;;  %v1220_v50 = vadd.f32 %v1219_v20, %v1202_v29  ;;  %v3582_v55 = vld [vmem:[%s4543_s2 + $0x18] sm:$0xff] }
 0x85d   :  { %v3495_v28 = vadd.f32 %v1220_v50, %v1203_v42  ;;  %v1351_v42 = vrot.slane %v3582_v55, %v3518_v24 }
 0x85e   :  { %1372 = vrot.lane.b32.xlu0 %v3439_v60, %s2810_s0 }
 0x85f   :  { %1376 = vrot.lane.b32.xlu1 %v3457_v4, %s2810_s0 }
 0x862   :  { %1312 = vrot.lane.b32.xlu0 %v3457_v4, %s2823_s23 }
 0x863   :  { %1380 = vrot.lane.b32.xlu1 %v3459_v45, %s2810_s0 }
 0x866   :  { %1316 = vrot.lane.b32.xlu0 %v3459_v45, %s2823_s23 }
 0x867   :  { %1314 = vrot.lane.b32.xlu1 %v3464_v40, %s2823_s23 }
 0x86a   :  { %1378 = vrot.lane.b32.xlu0 %v3464_v40, %s2810_s0 }
 0x86b   :  { %1318 = vrot.lane.b32.xlu1 %v3466_v18, %s2823_s23 }
 0x86e   :  { %1374 = vrot.lane.b32.xlu0 %v3445_v39, %s2810_s0 }
 0x86f   :  { %1382 = vrot.lane.b32.xlu1 %v3466_v18, %s2810_s0 }
 0x8c4   :  { %v1305_v53 = vpop.permute.xlu0 %1304 }
 0x8c5   :  { %v1307_v61 = vpop.permute.xlu1 %1306 }
 0x8c6   :  { %v1320_v48 = vsel %vm462_vm5, %v1305_v53, %v1307_v61 }
 0x8c7   :  { %v1352_v35 = vmul.f32 %v1339_v54, %v1320_v48 }
 0x8c8   :  { %v1309_v38 = vpop.permute.xlu0 %1308 }
 0x8c9   :  { %v1321_v27 = vsel %vm462_vm5, %v1307_v61, %v1309_v38  ;;  %v1311_v23 = vpop.permute.xlu1 %1310  ;;  %v1360_v16 = vadd.f32 %v1352_v35, %v3437_v8 }
 0x8ca   :  { %v1353_v13 = vmul.f32 %v3538_v58, %v1321_v27  ;;  %v1322_v31 = vsel %vm462_vm5, %v1309_v38, %v1311_v23  ;;  %v1334_v53 = vsel %vm462_vm5, %v1311_v23, 0.0 }
 0x8cb   :  { %v1354_v36 = vmul.f32 %v1347_v37, %v1322_v31  ;;  %v1355_v31 = vmul.f32 %v1351_v42, %v1334_v53 }
 0x8cc   :  { %v1369_v15 = vpop.permute.xlu0 %1368  ;;  %v1361_v22 = vadd.f32 %v1353_v13, %v3443_v43  ;;  %v1415_v13 = vrot.slane %v3582_v55, %v3528_v19 }
 0x8cd   :  { %v1398_v11 = vsel %vm417_vm6, 0.0, %v1369_v15  ;;  %v1371_v0 = vpop.permute.xlu1 %1370  ;;  %v1362_v41 = vadd.f32 %v1354_v36, %v3439_v60 }
 0x8ce   :  { %v1416_v51 = vmul.f32 %v1403_v46, %v1398_v11  ;;  %v1384_v9 = vsel %vm417_vm6, %v1369_v15, %v1371_v0 }
 0x8cf   :  { %v1417_v59 = vmul.f32 %v3554_v34, %v1384_v9 }
 0x8d0   :  { %v1373_v7 = vpop.permute.xlu0 %1372  ;;  %v3563_v1 = vadd.f32 %v1416_v51, %v1360_v16 }
 0x8d1   :  { %v3565_v2 = vadd.f32 %v1417_v59, %v1361_v22  ;;  %v1385_v32 = vsel %vm417_vm6, %v1371_v0, %v1373_v7  ;;  %v1377_v10 = vpop.permute.xlu1 %1376 }
 0x8d2   :  { %v1418_v33 = vmul.f32 %v1411_v14, %v1385_v32  ;;  %1440 = vrot.lane.b32.xlu0 %v3563_v1, %s2825_s25  ;;  %v1399_v20 = vsel %vm417_vm6, 0.0, %v1377_v10 }
 0x8d3   :  { %1442 = vrot.lane.b32.xlu1 %v3565_v2, %s2825_s25  ;;  %v1420_v38 = vmul.f32 %v1403_v46, %v1399_v20 }
 0x8d4   :  { %v1313_v17 = vpop.permute.xlu0 %1312  ;;  %v3573_v56 = vadd.f32 %v1418_v33, %v1362_v41 }
 0x8d5   :  { %v1381_v12 = vpop.permute.xlu1 %1380 }
 0x8d6   :  { %1444 = vrot.lane.b32.xlu0 %v3573_v56, %s2825_s25 }
 0x8d7   :  { %1506 = vrot.lane.b32.xlu1 %v3565_v2, %s2822_s22 }
 0x8d8   :  { %v1317_v29 = vpop.permute.xlu0 %1316 }
 0x8d9   :  { %v1315_v30 = vpop.permute.xlu1 %1314 }
 0x8da   :  { %v1323_v50 = vsel %vm462_vm5, %v1313_v17, %v1315_v30 }
 0x8db   :  { %v1356_v61 = vmul.f32 %v1339_v54, %v1323_v50  ;;  %v1324_v54 = vsel %vm462_vm5, %v1315_v30, %v1317_v29 }
 0x8dc   :  { %v1379_v48 = vpop.permute.xlu0 %1378  ;;  %v1357_v41 = vmul.f32 %v3538_v58, %v1324_v54 }
 0x8dd   :  { %v1364_v27 = vadd.f32 %v1356_v61, %v3457_v4  ;;  %v1319_v35 = vpop.permute.xlu1 %1318  ;;  %v1388_v15 = vsel %vm417_vm6, %v1379_v48, %v1381_v12 }
 0x8de   :  { %v1325_v11 = vsel %vm462_vm5, %v1317_v29, %v1319_v35  ;;  %v1335_v0 = vsel %vm462_vm5, %v1319_v35, 0.0  ;;  %v1422_v46 = vmul.f32 %v1411_v14, %v1388_v15  ;;  %v1387_v14 = vsel %vm417_vm6, %v1377_v10, %v1379_v48 }
 0x8df   :  { %v1358_v36 = vmul.f32 %v1347_v37, %v1325_v11  ;;  %v3595_v51 = vadd.f32 %v1420_v38, %v1364_v27  ;;  %v1359_v9 = vmul.f32 %v1351_v42, %v1335_v0  ;;  %v1363_v37 = vadd.f32 %v1355_v31, %v3445_v39 }
 0x8e0   :  { %v1375_v23 = vpop.permute.xlu0 %1374  ;;  %v1421_v42 = vmul.f32 %v3554_v34, %v1387_v14  ;;  %v3640_v48 = vsub.s32 2, %v2999_v21  ;;  %v3645_v31 = vsub.s32 3, %v2999_v21 }
 0x8e1   :  { %v1366_v16 = vadd.f32 %v1358_v36, %v3459_v45  ;;  %v1386_v22 = vsel %vm417_vm6, %v1373_v7, %v1375_v23  ;;  %1448 = vrot.lane.b32.xlu1 %v3595_v51, %s2825_s25  ;;  %v1383_v59 = vpop.permute.xlu1 %1382  ;;  %v1367_v7 = vadd.f32 %v1359_v9, %v3466_v18 }
 0x8e2   :  { %v1419_v32 = vmul.f32 %v1415_v13, %v1386_v22  ;;  %v1389_v33 = vsel %vm417_vm6, %v1381_v12, %v1383_v59  ;;  %v1365_v12 = vadd.f32 %v1357_v41, %v3464_v40  ;;  %v1475_v35 = vrot.slane %v3523_v44, %v3640_v48 }
 0x8e3   :  { %v1423_v17 = vmul.f32 %v1415_v13, %v1389_v33  ;;  %v3605_v29 = vadd.f32 %v1422_v46, %v1366_v16  ;;  %v1479_v11 = vrot.slane %v3534_v57, %v3640_v48  ;;  %v1483_v23 = vrot.slane %v3544_v49, %v3640_v48 }
 0x8e4   :  { %v3608_v30 = vadd.f32 %v1419_v32, %v1363_v37  ;;  %v3623_v10 = vadd.f32 %v1421_v42, %v1365_v12  ;;  %v1539_v46 = vrot.slane %v3523_v44, %v3645_v31  ;;  %v1543_v9 = vrot.slane %v3534_v57, %v3645_v31 }
 0x8e5   :  { %1452 = vrot.lane.b32.xlu1 %v3605_v29, %s2825_s25  ;;  %v3617_v58 = vadd.f32 %v1423_v17, %v1367_v7  ;;  %v1547_v41 = vrot.slane %v3544_v49, %v3645_v31  ;;  %v1487_v44 = vrot.slane %v3582_v55, %v3640_v48 }
 0x8e6   :  { %1446 = vrot.lane.b32.xlu0 %v3608_v30, %s2825_s25 }
 0x8e9   :  { %1454 = vrot.lane.b32.xlu1 %v3617_v58, %s2825_s25 }
 0x8ea   :  { %1504 = vrot.lane.b32.xlu0 %v3563_v1, %s2822_s22 }
 0x8ed   :  { %1514 = vrot.lane.b32.xlu1 %v3623_v10, %s2822_s22 }
 0x8ee   :  { %1508 = vrot.lane.b32.xlu0 %v3573_v56, %s2822_s22 }
 0x8f1   :  { %1516 = vrot.lane.b32.xlu1 %v3605_v29, %s2822_s22 }
 0x8f2   :  { %1450 = vrot.lane.b32.xlu0 %v3623_v10, %s2825_s25 }
 0x8f5   :  { %1518 = vrot.lane.b32.xlu1 %v3617_v58, %s2822_s22 }
 0x8f6   :  { %1512 = vrot.lane.b32.xlu0 %v3595_v51, %s2822_s22 }
 0x8fa   :  { %1510 = vrot.lane.b32.xlu0 %v3608_v30, %s2822_s22 }
 0x944   :  { %v1441_v20 = vpop.permute.xlu0 %1440 }
 0x945   :  { %v1443_v34 = vpop.permute.xlu1 %1442 }
 0x946   :  { %v1456_v15 = vsel %vm548_vm8, %v1441_v20, %v1443_v34 }
 0x947   :  { %v1488_v54 = vmul.f32 %v1475_v35, %v1456_v15 }
 0x948   :  { %v1445_v61 = vpop.permute.xlu0 %1444 }
 0x949   :  { %v1507_v50 = vpop.permute.xlu1 %1506  ;;  %v1457_v36 = vsel %vm548_vm8, %v1443_v34, %v1445_v61  ;;  %v1496_v57 = vadd.f32 %v1488_v54, %v3563_v1 }
 0x94a   :  { %v1489_v16 = vmul.f32 %v1479_v11, %v1457_v36 }
 0x94c   :  { %v1497_v34 = vadd.f32 %v1489_v16, %v3565_v2 }
 0x953   :  { %v1449_v53 = vpop.permute.xlu1 %1448 }
 0x957   :  { %v1453_v38 = vpop.permute.xlu1 %1452 }
 0x958   :  { %v1447_v27 = vpop.permute.xlu0 %1446 }
 0x959   :  { %v1458_v22 = vsel %vm548_vm8, %v1445_v61, %v1447_v27  ;;  %v1470_v20 = vsel %vm548_vm8, %v1447_v27, 0.0 }
 0x95a   :  { %v1490_v14 = vmul.f32 %v1483_v23, %v1458_v22  ;;  %v1551_v22 = vrot.slane %v3582_v55, %v3645_v31 }
 0x95b   :  { %v1455_v13 = vpop.permute.xlu1 %1454 }
 0x95c   :  { %v1505_v0 = vpop.permute.xlu0 %1504  ;;  %v1461_v37 = vsel %vm548_vm8, %v1453_v38, %v1455_v13  ;;  %v1471_v49 = vsel %vm548_vm8, %v1455_v13, 0.0  ;;  %v1498_v2 = vadd.f32 %v1490_v14, %v3573_v56 }
 0x95d   :  { %v1520_v59 = vsel %vm331_vm4, %v1505_v0, %v1507_v50  ;;  %v1534_v32 = vsel %vm331_vm4, 0.0, %v1505_v0  ;;  %v1494_v61 = vmul.f32 %v1483_v23, %v1461_v37  ;;  %v1495_v37 = vmul.f32 %v1487_v44, %v1471_v49 }
 0x95e   :  { %v1552_v7 = vmul.f32 %v1539_v46, %v1534_v32  ;;  %v1553_v12 = vmul.f32 %v1543_v9, %v1520_v59  ;;  %v1491_v32 = vmul.f32 %v1487_v44, %v1470_v20 }
 0x95f   :  { %v1515_v21 = vpop.permute.xlu1 %1514  ;;  %v1502_v13 = vadd.f32 %v1494_v61, %v3605_v29  ;;  %v1503_v14 = vadd.f32 %v1495_v37, %v3617_v58 }
 0x960   :  { %v1509_v33 = vpop.permute.xlu0 %1508  ;;  %v1560_v16 = vadd.f32 %v1552_v7, %v1496_v57  ;;  %v1561_v27 = vadd.f32 %v1553_v12, %v1497_v34 }
 0x961   :  { %v1521_v17 = vsel %vm331_vm4, %v1507_v50, %v1509_v33 }
 0x962   :  { %v1554_v36 = vmul.f32 %v1547_v41, %v1521_v17  ;;  %v3682_v57 = vmul.f32 0.25, %v1560_v16  ;;  %v3684_v44 = vmul.f32 0.25, %v1561_v27 }
 0x963   :  { %v1517_v42 = vpop.permute.xlu1 %1516 }
 0x964   :  { %v1524_v15 = vsel %vm331_vm4, %v1515_v21, %v1517_v42  ;;  %v1451_v0 = vpop.permute.xlu0 %1450  ;;  %v1562_v18 = vadd.f32 %v1554_v36, %v1498_v2  ;;  %v1584_v58 = vadd.f32 %v3684_v44, %v3682_v57 }
 0x965   :  { %v1459_v47 = vsel %vm548_vm8, %v1449_v53, %v1451_v0  ;;  %v1460_v50 = vsel %vm548_vm8, %v1451_v0, %v1453_v38  ;;  %v1558_v23 = vmul.f32 %v1547_v41, %v1524_v15  ;;  %v1576_v15 = vmul.f32 %v3682_v57, %v3682_v57 }
 0x966   :  { %v1492_v1 = vmul.f32 %v1475_v35, %v1459_v47  ;;  %v1493_v54 = vmul.f32 %v1479_v11, %v1460_v50 }
 0x967   :  { %v1519_v59 = vpop.permute.xlu1 %1518  ;;  %v1566_v29 = vadd.f32 %v1558_v23, %v1502_v13 }
 0x968   :  { %v1525_v17 = vsel %vm331_vm4, %v1517_v42, %v1519_v59  ;;  %v1513_v53 = vpop.permute.xlu0 %1512  ;;  %v1500_v47 = vadd.f32 %v1492_v1, %v3595_v51  ;;  %v1501_v56 = vadd.f32 %v1493_v54, %v3623_v10  ;;  %v1499_v51 = vadd.f32 %v1491_v32, %v3608_v30 }
 0x969   :  { %v1523_v38 = vsel %vm331_vm4, %v1513_v53, %v1515_v21  ;;  %v1535_v55 = vsel %vm331_vm4, 0.0, %v1513_v53  ;;  %v1559_v35 = vmul.f32 %v1551_v22, %v1525_v17  ;;  %v3688_v21 = vmul.f32 0.25, %v1562_v18 }
 0x96a   :  { %v1556_v11 = vmul.f32 %v1539_v46, %v1535_v55  ;;  %v1557_v41 = vmul.f32 %v1543_v9, %v1523_v38  ;;  %v3695_v61 = vmul.f32 0.25, %v1566_v29  ;;  %v1577_v18 = vmul.f32 %v3684_v44, %v3684_v44 }
 0x96b   :  { %v1567_v10 = vadd.f32 %v1559_v35, %v1503_v14  ;;  %v1585_v36 = vadd.f32 %v1584_v58, %v3688_v21 }
 0x96c   :  { %v1564_v7 = vadd.f32 %v1556_v11, %v1500_v47  ;;  %v1565_v12 = vadd.f32 %v1557_v41, %v1501_v56  ;;  %v1511_v42 = vpop.permute.xlu0 %1510  ;;  %v1594_v2 = vadd.f32 %v1577_v18, %v1576_v15  ;;  %v1582_v37 = vmul.f32 %v3695_v61, %v3695_v61 }
 0x96d   :  { %v1522_v34 = vsel %vm331_vm4, %v1509_v33, %v1511_v42  ;;  %v3710_v50 = vmul.f32 0.25, %v1567_v10 }
 0x96e   :  { %v3691_v20 = vmul.f32 0.25, %v1564_v7  ;;  %v3693_v46 = vmul.f32 0.25, %v1565_v12  ;;  %v1555_v9 = vmul.f32 %v1551_v22, %v1522_v34  ;;  %v1578_v22 = vmul.f32 %v3688_v21, %v3688_v21 }
 0x96f   :  { %v1583_v53 = vmul.f32 %v3710_v50, %v3710_v50 }
 0x970   :  { %v1563_v30 = vadd.f32 %v1555_v9, %v1499_v51  ;;  %v1589_v33 = vadd.f32 %v3693_v46, %v3691_v20  ;;  %v1580_v0 = vmul.f32 %v3691_v20, %v3691_v20  ;;  %v1581_v49 = vmul.f32 %v3693_v46, %v3693_v46 }
 0x971   :  { %v1595_v32 = vadd.f32 %v1594_v2, %v1578_v22 }
 0x972   :  { %v3712_v1 = vmul.f32 0.25, %v1563_v30  ;;  %v1590_v54 = vadd.f32 %v1589_v33, %v3695_v61  ;;  %v1599_v59 = vadd.f32 %v1581_v49, %v1580_v0 }
 0x974   :  { %v1586_v16 = vadd.f32 %v1585_v36, %v3712_v1  ;;  %v1591_v27 = vadd.f32 %v1590_v54, %v3710_v50  ;;  %v1579_v23 = vmul.f32 %v3712_v1, %v3712_v1  ;;  %v1600_v17 = vadd.f32 %v1599_v59, %v1582_v37 }
 0x976   :  { %1587 = vadd.xlane.f32.xlu0 %v1586_v16  ;;  %1592 = vadd.xlane.f32.xlu1 %v1591_v27  ;;  %v1596_v13 = vadd.f32 %v1595_v32, %v1579_v23  ;;  %v1601_v47 = vadd.f32 %v1600_v17, %v1583_v53 }
 0x97a   :  { %1597 = vadd.xlane.f32.xlu0 %v1596_v13 }
 0x97e   :  { %1602 = vadd.xlane.f32.xlu0 %v1601_v47 }
 0xa03   :  { %v1588_v38 = vpop.xlane.xlu0 %1587  ;;  %v1593_v56 = vpop.xlane.xlu1 %1592 }
 0xa04   :  { %v1604_v55 = vmul.f32 0.001953125, %v1588_v38  ;;  %v1605_v41 = vmul.f32 0.001953125, %v1593_v56 }
 0xa06   :  { %v1608_v11 = vmul.f32 %v1604_v55, %v1604_v55  ;;  %v1609_v12 = vmul.f32 %v1605_v41, %v1605_v41 }
 0xa07   :  { %v1598_v35 = vpop.xlane.xlu0 %1597 }
 0xa08   :  { %v1606_v29 = vmul.f32 0.001953125, %v1598_v35 }
 0xa0a   :  { %v1610_v14 = vsub.f32 %v1606_v29, %v1608_v11 }
 0xa0b   :  { %v1603_v7 = vpop.xlane.xlu0 %1602 }
 0xa0c   :  { %v1612_v42 = vmax.f32 %v1610_v14, 0.0  ;;  %v1607_v51 = vmul.f32 0.001953125, %v1603_v7 }
 0xa0e   :  { %v1614_v34 = vadd.f32 1e-05, %v1612_v42  ;;  %v1611_v10 = vsub.f32 %v1607_v51, %v1609_v12 }
 0xa10   :  { %2787 = vrsqrt.f32 %v1614_v34  ;;  %v1613_v9 = vmax.f32 %v1611_v10, 0.0 }
 0xa12   :  { %v1615_v58 = vadd.f32 1e-05, %v1613_v9 }
 0xa14   :  { %2789 = vrsqrt.f32 %v1615_v58 }
 0xa1a   :  { %v2788_v15 = vpop.eup %2787 }
 0xa1b   :  { %v1618_v18 = vmul.f32 %v2788_v15, %v3418_v5 }
 0xa1d   :  { %v1638_v30 = vmul.f32 %v1618_v18, %v1604_v55 }
 0xa1e   :  { %v2790_v33 = vpop.eup %2789 }
 0xa1f   :  { %1642 = vrot.lane.b32.xlu1 %v1638_v30, %s2810_s0  ;;  %v1619_v0 = vmul.f32 %v2790_v33, %v3428_v52 }
 0xa21   :  { %v1639_v49 = vmul.f32 %v1619_v0, %v1605_v41 }
 0xa23   :  { %1644 = vrot.lane.b32.xlu0 %v1639_v49, %s2810_s0 }
 0xa42   :  { %1212 = vadd.xlane.f32.xlu0 %v3493_v6 }
 0xa43   :  { %1207 = vadd.xlane.f32.xlu1 %v3477_v63 }
 0xa46   :  { %1222 = vadd.xlane.f32.xlu0 %v3495_v28 }
 0xa47   :  { %1217 = vadd.xlane.f32.xlu1 %v3488_v62 }
 0xa58   :  { %1622 = vperm.xlu1 %2763, %v1618_v18  }
 0xa5c   :  { %1627 = vperm.xlu0 %2764, %v1619_v0   ;;  %2765 = vset.pattern.permute.xlu1 %v4567_v3 }
 0xa60   :  { %2767 = vset.pattern.permute.xlu0 %v4567_v3 }
 0xa91   :  { %v1643_v54 = vpop.permute.xlu1 %1642 }
 0xa92   :  { %v1648_v29 = vsub.f32 %v3418_v5, %v1643_v54 }
 0xa95   :  { %v1645_v36 = vpop.permute.xlu0 %1644 }
 0xa96   :  { %v1649_v14 = vsub.f32 %v3428_v52, %v1645_v36 }
 0xacf   :  { %v1213_v22 = vpop.xlane.xlu0 %1212 }
 0xad0   :  { %v1225_v2 = vmul.f32 0.001953125, %v1213_v22  ;;  %v1208_v16 = vpop.xlane.xlu1 %1207 }
 0xad1   :  { %v1224_v27 = vmul.f32 0.001953125, %v1208_v16 }
 0xad2   :  { %v1229_v6 = vmul.f32 %v1225_v2, %v1225_v2 }
 0xad3   :  { %v1223_v23 = vpop.xlane.xlu0 %1222  ;;  %v1228_v32 = vmul.f32 %v1224_v27, %v1224_v27 }
 0xad4   :  { %v1227_v59 = vmul.f32 0.001953125, %v1223_v23  ;;  %v1218_v63 = vpop.xlane.xlu1 %1217 }
 0xad5   :  { %v1226_v28 = vmul.f32 0.001953125, %v1218_v63 }
 0xad6   :  { %v1231_v37 = vsub.f32 %v1227_v59, %v1229_v6 }
 0xad7   :  { %v1230_v62 = vsub.f32 %v1226_v28, %v1228_v32 }
 0xad8   :  { %v1233_v13 = vmax.f32 %v1231_v37, 0.0  ;;  %v1623_v7 = vpop.permute.xlu1 %1622 }
 0xad9   :  { %v1232_v17 = vmax.f32 %v1230_v62, 0.0  ;;  %v1630_v42 = vmul.f32 %v1623_v7, %v3682_v57  ;;  %v1632_v51 = vmul.f32 %v1623_v7, %v3688_v21  ;;  %v1631_v58 = vmul.f32 %v1623_v7, %v3684_v44 }
 0xada   :  { %v1235_v53 = vadd.f32 1e-05, %v1233_v13  ;;  %v1633_v44 = vmul.f32 %v1623_v7, %v3712_v1 }
 0xadb   :  { %v1234_v47 = vadd.f32 1e-05, %v1232_v17  ;;  %v1628_v1 = vpop.permute.xlu0 %1627 }
 0xadc   :  { %2791 = vrsqrt.f32 %v1235_v53  ;;  %v1634_v49 = vmul.f32 %v1628_v1, %v3691_v20  ;;  %v1636_v54 = vmul.f32 %v1628_v1, %v3695_v61  ;;  %v1635_v22 = vmul.f32 %v1628_v1, %v3693_v46 }
 0xadd   :  { %2793 = vrsqrt.f32 %v1234_v47  ;;  %v1637_v46 = vmul.f32 %v1628_v1, %v3710_v50  ;;  %v3851_v47 = vld [vmem:[%s4543_s2 + $0x20] sm:$0xff] }
 0xae6   :  { %v2792_v38 = vpop.eup %2791 }
 0xae7   :  { %v2794_v55 = vpop.eup %2793  ;;  %v3736_v56 = vmul.f32 %v2792_v38, %v3428_v52  ;;  %v3860_v38 = vrot.slane %v3851_v47, %v3528_v19 }
 0xae8   :  { %v3739_v35 = vmul.f32 %v2794_v55, %v3418_v5 }
 0xae9   :  { %v1259_v11 = vmul.f32 %v3736_v56, %v1225_v2 }
 0xaea   :  { %v1258_v41 = vmul.f32 %v3739_v35, %v1224_v27 }
 0xaeb   :  { %1264 = vrot.lane.b32.xlu1 %v1259_v11, %s2810_s0 }
 0xaec   :  { %1262 = vrot.lane.b32.xlu0 %v1258_v41, %s2810_s0  ;;  %v3870_v41 = vrot.slane %v3851_v47, %v3518_v24 }
 0xaef   :  { %1652 = vperm.xlu1 %2765, %v1648_v29  }
 0xaf3   :  { %1657 = vperm.xlu1 %2765, %v1649_v14  }
 0xaf7   :  { %2766 = vset.pattern.permute.xlu1 %v4565_v25 }
 0xb5d   :  { %v3748_v12 = vpop.permute.xlu1 %1264 }
 0xb5e   :  { %v1263_v59 = vpop.permute.xlu0 %1262 }
 0xb5f   :  { %v1268_v50 = vsub.f32 %v3418_v5, %v1263_v59  ;;  %v1269_v5 = vsub.f32 %v3428_v52, %v3748_v12  ;;  %v3856_v52 = vld [vmem:[%s4543_s2 + $0x28] sm:$0xff] }
 0xb60   :  { %v3864_v55 = vrot.slane %v3856_v52, %v3528_v19  ;;  %v3874_v29 = vrot.slane %v3856_v52, %v3518_v24 }
 0xb6e   :  { %v1653_v34 = vpop.permute.xlu1 %1652 }
 0xb6f   :  { %v1660_v10 = vadd.f32 %v1653_v34, %v1630_v42  ;;  %v1662_v9 = vadd.f32 %v1653_v34, %v1632_v51  ;;  %v1661_v30 = vadd.f32 %v1653_v34, %v1631_v58  ;;  %v1663_v21 = vadd.f32 %v1653_v34, %v1633_v44  ;;  %v3891_v34 = vld [vmem:[%s4543_s2 + $0x30] sm:$0xff]  ;;  %v3898_v58 = vld [vmem:[%s4543_s2 + $0x38] sm:$0xff] }
 0xb70   :  { %v3882_v42 = vrot.slane %v3851_v47, %v3640_v48  ;;  %v3886_v51 = vrot.slane %v3856_v52, %v3640_v48  ;;  %v3902_v44 = vrot.slane %v3891_v34, %v3518_v24  ;;  %v3910_v1 = vrot.slane %v3898_v58, %v3528_v19 }
 0xb71   :  { %v3753_v15 = vmax.f32 %v1660_v10, 0.0  ;;  %v3755_v18 = vmax.f32 %v1662_v9, 0.0  ;;  %v3761_v57 = vmax.f32 %v1661_v30, 0.0  ;;  %v3776_v33 = vmax.f32 %v1663_v21, 0.0 }
 0xb72   :  { %v1658_v0 = vpop.permute.xlu1 %1657  ;;  %v3906_v21 = vrot.slane %v3891_v34, %v3528_v19 }
 0xb73   :  { %1688 = vrot.lane.b32.xlu0 %v3755_v18, %s2827_s4  ;;  %1684 = vrot.lane.b32.xlu1 %v3753_v15, %s2827_s4  ;;  %v1664_v36 = vadd.f32 %v1658_v0, %v1634_v49  ;;  %v1666_v2 = vadd.f32 %v1658_v0, %v1636_v54  ;;  %v1665_v20 = vadd.f32 %v1658_v0, %v1635_v22 }
 0xb74   :  { %v1667_v23 = vadd.f32 %v1658_v0, %v1637_v46  ;;  %v3914_v0 = vrot.slane %v3851_v47, %v3645_v31  ;;  %v3921_v22 = vrot.slane %v3856_v52, %v3645_v31  ;;  %v1822_v46 = vmul.f32 %v3886_v51, %v3761_v57 }
 0xb75   :  { %v3797_v16 = vmax.f32 %v1664_v36, 0.0  ;;  %v3803_v27 = vmax.f32 %v1666_v2, 0.0  ;;  %v3805_v61 = vmax.f32 %v1665_v20, 0.0  ;;  %v3925_v2 = vrot.slane %v3898_v58, %v3518_v24 }
 0xb76   :  { %v3816_v6 = vmax.f32 %v1667_v23, 0.0  ;;  %v1821_v20 = vmul.f32 %v3882_v42, %v3753_v15 }
 0xb77   :  { %1745 = vrot.lane.b32.xlu0 %v3755_v18, %s2810_s0  ;;  %1686 = vrot.lane.b32.xlu1 %v3761_v57, %s2827_s4 }
 0xb7b   :  { %1837 = vrot.lane.b32.xlu0 %v3753_v15, %s2823_s23  ;;  %1741 = vrot.lane.b32.xlu1 %v3753_v15, %s2810_s0 }
 0xb7f   :  { %1841 = vrot.lane.b32.xlu0 %v3755_v18, %s2823_s23  ;;  %1743 = vrot.lane.b32.xlu1 %v3761_v57, %s2810_s0 }
 0xb83   :  { %1901 = vrot.lane.b32.xlu0 %v3753_v15, %s2828_s5  ;;  %1690 = vrot.lane.b32.xlu1 %v3776_v33, %s2827_s4 }
 0xb87   :  { %1905 = vrot.lane.b32.xlu0 %v3755_v18, %s2828_s5  ;;  %1747 = vrot.lane.b32.xlu1 %v3776_v33, %s2810_s0 }
 0xb8b   :  { %1843 = vrot.lane.b32.xlu0 %v3776_v33, %s2823_s23  ;;  %1839 = vrot.lane.b32.xlu1 %v3761_v57, %s2823_s23 }
 0xb8f   :  { %1907 = vrot.lane.b32.xlu0 %v3776_v33, %s2828_s5  ;;  %1903 = vrot.lane.b32.xlu1 %v3761_v57, %s2828_s5 }
 0xb93   :  { %1749 = vrot.lane.b32.xlu0 %v3797_v16, %s2810_s0  ;;  %1692 = vrot.lane.b32.xlu1 %v3797_v16, %s2827_s4 }
 0xb97   :  { %1696 = vrot.lane.b32.xlu0 %v3803_v27, %s2827_s4  ;;  %1694 = vrot.lane.b32.xlu1 %v3805_v61, %s2827_s4 }
 0xb9b   :  { %1753 = vrot.lane.b32.xlu0 %v3803_v27, %s2810_s0  ;;  %1751 = vrot.lane.b32.xlu1 %v3805_v61, %s2810_s0 }
 0xb9f   :  { %1847 = vrot.lane.b32.xlu0 %v3805_v61, %s2823_s23  ;;  %1698 = vrot.lane.b32.xlu1 %v3816_v6, %s2827_s4 }
 0xba3   :  { %1911 = vrot.lane.b32.xlu0 %v3805_v61, %s2828_s5  ;;  %1755 = vrot.lane.b32.xlu1 %v3816_v6, %s2810_s0 }
 0xba7   :  { %1272 = vperm.xlu0 %2767, %v1268_v50   ;;  %1845 = vrot.lane.b32.xlu1 %v3797_v16, %s2823_s23 }
 0xbab   :  { %2768 = vset.pattern.permute.xlu0 %v4565_v25  ;;  %1849 = vrot.lane.b32.xlu1 %v3803_v27, %s2823_s23 }
 0xbac   :  { %1242 = vperm.xlu0 %2768, %v3739_v35  }
 0xbaf   :  { %1909 = vrot.lane.b32.xlu1 %v3797_v16, %s2828_s5 }
 0xbb3   :  { %1913 = vrot.lane.b32.xlu1 %v3803_v27, %s2828_s5 }
 0xbb7   :  { %1851 = vrot.lane.b32.xlu1 %v3816_v6, %s2823_s23 }
 0xbbb   :  { %1915 = vrot.lane.b32.xlu1 %v3816_v6, %s2828_s5 }
 0xbbf   :  { %1247 = vperm.xlu1 %2766, %v3736_v56  }
 0xbc3   :  { %2769 = vset.pattern.permute.xlu1 %v4567_v3 }
 0xbc4   :  { %1277 = vperm.xlu1 %2769, %v1269_v5  }
 0xbc8   :  { %2770 = vset.pattern.permute.xlu1 %v4565_v25 }
 0xbe5   :  { %v1689_v63 = vpop.permute.xlu0 %1688  ;;  %v1685_v32 = vpop.permute.xlu1 %1684 }
 0xbe6   :  { %v1715_v14 = vsel %vm1700_vm12, 0.0, %v1685_v32 }
 0xbe7   :  { %v1733_v49 = vmul.f32 %v3870_v41, %v1715_v14 }
 0xbe9   :  { %v1746_v28 = vpop.permute.xlu0 %1745  ;;  %v1687_v37 = vpop.permute.xlu1 %1686 }
 0xbea   :  { %v1701_v7 = vsel %vm1700_vm12, %v1685_v32, %v1687_v37  ;;  %v1702_v14 = vsel %vm1700_vm12, %v1687_v37, %v1689_v63 }
 0xbeb   :  { %v1734_v36 = vmul.f32 %v3874_v29, %v1701_v7 }
 0xbed   :  { %v1838_v62 = vpop.permute.xlu0 %1837  ;;  %v1742_v13 = vpop.permute.xlu1 %1741 }
 0xbee   :  { %v1771_v35 = vsel %vm417_vm6, 0.0, %v1742_v13 }
 0xbef   :  { %v1789_v10 = vmul.f32 %v3860_v38, %v1771_v35 }
 0xbf1   :  { %v3846_v17 = vpop.permute.xlu0 %1841  ;;  %v1744_v53 = vpop.permute.xlu1 %1743  ;;  %v1797_v23 = vadd.f32 %v1789_v10, %v1733_v49  ;;  %v3946_v10 = vrot.slane %v3856_v52, %v3014_v26  ;;  %v3964_v49 = vrot.slane %v3898_v58, %v3645_v31 }
 0xbf2   :  { %v1757_v11 = vsel %vm417_vm6, %v1742_v13, %v1744_v53  ;;  %v3934_v13 = vrot.slane %v3851_v47, %v3014_v26  ;;  %v1758_v35 = vsel %vm417_vm6, %v1744_v53, %v1746_v28 }
 0xbf3   :  { %v1790_v9 = vmul.f32 %v3864_v55, %v1757_v11  ;;  %v1791_v37 = vmul.f32 %v3906_v21, %v1758_v35  ;;  %v1829_v53 = vadd.f32 %v1821_v20, %v1797_v23 }
 0xbf5   :  { %v1902_v25 = vpop.permute.xlu0 %1901  ;;  %v1691_v56 = vpop.permute.xlu1 %1690  ;;  %v1798_v59 = vadd.f32 %v1790_v9, %v1734_v36 }
 0xbf6   :  { %v1703_v50 = vsel %vm1700_vm12, %v1689_v63, %v1691_v56  ;;  %v3959_v63 = vrot.slane %v3891_v34, %v3645_v31 }
 0xbf7   :  { %v1736_v9 = vmul.f32 %v3925_v2, %v1703_v50 }
 0xbf9   :  { %v3878_v12 = vpop.permute.xlu0 %1905  ;;  %v1748_v30 = vpop.permute.xlu1 %1747 }
 0xbfa   :  { %v1759_v54 = vsel %vm417_vm6, %v1746_v28, %v1748_v30  ;;  %v3951_v28 = vrot.slane %v3891_v34, %v3640_v48  ;;  %v1830_v30 = vadd.f32 %v1822_v46, %v1798_v59 }
 0xbfb   :  { %v1792_v11 = vmul.f32 %v3910_v1, %v1759_v54  ;;  %v1735_v54 = vmul.f32 %v3902_v44, %v1702_v14 }
 0xbfd   :  { %v1840_v5 = vpop.permute.xlu1 %1839  ;;  %v1844_v32 = vpop.permute.xlu0 %1843  ;;  %v1800_v50 = vadd.f32 %v1792_v11, %v1736_v9  ;;  %v1799_v35 = vadd.f32 %v1791_v37, %v1735_v54 }
 0xbfe   :  { %v1853_v15 = vsel %vm462_vm5, %v1838_v62, %v1840_v5  ;;  %v1854_v57 = vsel %vm462_vm5, %v1840_v5, %v3846_v17  ;;  %v3955_v62 = vrot.slane %v3898_v58, %v3640_v48  ;;  %v1855_v23 = vsel %vm462_vm5, %v3846_v17, %v1844_v32 }
 0xbff   :  { %v1885_v7 = vmul.f32 %v3914_v0, %v1853_v15  ;;  %v1886_v56 = vmul.f32 %v3921_v22, %v1854_v57  ;;  %v1867_v59 = vsel %vm462_vm5, %v1844_v32, 0.0  ;;  %v1887_v37 = vmul.f32 %v3959_v63, %v1855_v23 }
 0xc00   :  { %v1824_v31 = vmul.f32 %v3955_v62, %v3776_v33  ;;  %v1823_v33 = vmul.f32 %v3951_v28, %v3755_v18 }
 0xc01   :  { %v1904_v36 = vpop.permute.xlu1 %1903  ;;  %v1893_v15 = vadd.f32 %v1885_v7, %v1829_v53  ;;  %v1894_v57 = vadd.f32 %v1886_v56, %v1830_v30  ;;  %v1908_v46 = vpop.permute.xlu0 %1907  ;;  %v3987_v7 = vrot.slane %v3898_v58, %v3014_v26 }
 0xc02   :  { %v1918_v5 = vsel %vm1917_vm13, %v1902_v25, %v1904_v36  ;;  %v1919_v48 = vsel %vm1917_vm13, %v1904_v36, %v3878_v12  ;;  %v3979_v25 = vrot.slane %v3891_v34, %v3014_v26  ;;  %v1920_v17 = vsel %vm1917_vm13, %v3878_v12, %v1908_v46 }
 0xc03   :  { %v1950_v3 = vmul.f32 %v3934_v13, %v1918_v5  ;;  %v1951_v20 = vmul.f32 %v3946_v10, %v1919_v48  ;;  %v1932_v32 = vsel %vm1917_vm13, %v1908_v46, 0.0  ;;  %v1832_v9 = vadd.f32 %v1824_v31, %v1800_v50 }
 0xc04   :  { %v1831_v26 = vadd.f32 %v1823_v33, %v1799_v35  ;;  %v1952_v18 = vmul.f32 %v3979_v25, %v1920_v17  ;;  %v1953_v53 = vmul.f32 %v3987_v7, %v1932_v32 }
 0xc05   :  { %v3981_v11 = vadd.f32 %v1950_v3, %v1893_v15  ;;  %v3983_v14 = vadd.f32 %v1951_v20, %v1894_v57  ;;  %v1693_v56 = vpop.permute.xlu1 %1692  ;;  %v1888_v3 = vmul.f32 %v3964_v49, %v1867_v59  ;;  %v1750_v12 = vpop.permute.xlu0 %1749 }
 0xc06   :  { %v1895_v36 = vadd.f32 %v1887_v37, %v1831_v26  ;;  %v1716_v23 = vsel %vm1700_vm12, 0.0, %v1693_v56  ;;  %v1772_v59 = vsel %vm417_vm6, 0.0, %v1750_v12 }
 0xc07   :  { %1974 = vrot.lane.b32.xlu1 %v3981_v11, %s2829_s13  ;;  %1976 = vrot.lane.b32.xlu0 %v3983_v14, %s2829_s13  ;;  %v1896_v54 = vadd.f32 %v1888_v3, %v1832_v9  ;;  %v1737_v32 = vmul.f32 %v3870_v41, %v1716_v23  ;;  %v1793_v9 = vmul.f32 %v3860_v38, %v1772_v59 }
 0xc08   :  { %v4006_v50 = vadd.f32 %v1952_v18, %v1895_v36 }
 0xc09   :  { %v1695_v30 = vpop.permute.xlu1 %1694  ;;  %v4008_v5 = vadd.f32 %v1953_v53, %v1896_v54  ;;  %v1697_v15 = vpop.permute.xlu0 %1696 }
 0xc0a   :  { %v1704_v17 = vsel %vm1700_vm12, %v1693_v56, %v1695_v30  ;;  %v1705_v23 = vsel %vm1700_vm12, %v1695_v30, %v1697_v15 }
 0xc0b   :  { %2030 = vrot.lane.b32.xlu1 %v3981_v11, %s2822_s22  ;;  %2032 = vrot.lane.b32.xlu0 %v3983_v14, %s2822_s22  ;;  %v1738_v26 = vmul.f32 %v3874_v29, %v1704_v17 }
 0xc0d   :  { %v1752_v48 = vpop.permute.xlu1 %1751  ;;  %v1754_v20 = vpop.permute.xlu0 %1753 }
 0xc0e   :  { %v1760_v35 = vsel %vm417_vm6, %v1750_v12, %v1752_v48  ;;  %v1801_v12 = vadd.f32 %v1793_v9, %v1737_v32  ;;  %v1761_v56 = vsel %vm417_vm6, %v1752_v48, %v1754_v20 }
 0xc0f   :  { %1980 = vrot.lane.b32.xlu0 %v4008_v5, %s2829_s13  ;;  %1978 = vrot.lane.b32.xlu1 %v4006_v50, %s2829_s13  ;;  %v1794_v37 = vmul.f32 %v3864_v55, %v1760_v35  ;;  %v1825_v55 = vmul.f32 %v3882_v42, %v3797_v16  ;;  %v1795_v48 = vmul.f32 %v3906_v21, %v1761_v56 }
 0xc11   :  { %v1699_v57 = vpop.permute.xlu1 %1698  ;;  %v1848_v33 = vpop.permute.xlu0 %1847  ;;  %v1802_v36 = vadd.f32 %v1794_v37, %v1738_v26  ;;  %v1833_v42 = vadd.f32 %v1825_v55, %v1801_v12 }
 0xc13   :  { %2036 = vrot.lane.b32.xlu0 %v4008_v5, %s2822_s22  ;;  %2034 = vrot.lane.b32.xlu1 %v4006_v50, %s2822_s22 }
 0xc15   :  { %v1756_v46 = vpop.permute.xlu1 %1755  ;;  %v1912_v54 = vpop.permute.xlu0 %1911 }
 0xc16   :  { %v1762_v38 = vsel %vm417_vm6, %v1754_v20, %v1756_v46  ;;  %v1706_v20 = vsel %vm1700_vm12, %v1697_v15, %v1699_v57 }
 0xc17   :  { %2130 = vrot.lane.b32.xlu0 %v4006_v50, %s2825_s25  ;;  %2128 = vrot.lane.b32.xlu1 %v3983_v14, %s2825_s25  ;;  %v1796_v16 = vmul.f32 %v3910_v1, %v1762_v38 }
 0xc19   :  { %v1846_v31 = vpop.permute.xlu1 %1845 }
 0xc1a   :  { %v1856_v18 = vsel %vm462_vm5, %v1846_v31, %v1848_v33  ;;  %v1826_v31 = vmul.f32 %v3886_v51, %v3805_v61  ;;  %v1740_v51 = vmul.f32 %v3925_v2, %v1706_v20 }
 0xc1b   :  { %2194 = vrot.lane.b32.xlu0 %v4006_v50, %s2830_s14  ;;  %2126 = vrot.lane.b32.xlu1 %v3981_v11, %s2825_s25  ;;  %v1889_v59 = vmul.f32 %v3914_v0, %v1856_v18  ;;  %v1739_v0 = vmul.f32 %v3902_v44, %v1705_v23  ;;  %v1827_v44 = vmul.f32 %v3951_v28, %v3803_v27 }
 0xc1c   :  { %v1834_v46 = vadd.f32 %v1826_v31, %v1802_v36  ;;  %v1804_v1 = vadd.f32 %v1796_v16, %v1740_v51 }
 0xc1d   :  { %v1850_v3 = vpop.permute.xlu1 %1849  ;;  %v1803_v21 = vadd.f32 %v1795_v48, %v1739_v0 }
 0xc1e   :  { %v1857_v53 = vsel %vm462_vm5, %v1848_v33, %v1850_v3 }
 0xc1f   :  { %2192 = vrot.lane.b32.xlu1 %v3983_v14, %s2830_s14  ;;  %v1890_v35 = vmul.f32 %v3921_v22, %v1857_v53  ;;  %v1897_v22 = vadd.f32 %v1889_v59, %v1833_v42  ;;  %v1835_v18 = vadd.f32 %v1827_v44, %v1803_v21 }
 0xc21   :  { %v1910_v41 = vpop.permute.xlu1 %1909  ;;  %v1898_v17 = vadd.f32 %v1890_v35, %v1834_v46 }
 0xc22   :  { %v1921_v29 = vsel %vm1917_vm13, %v1910_v41, %v1912_v54 }
 0xc23   :  { %2132 = vrot.lane.b32.xlu1 %v4008_v5, %s2825_s25  ;;  %v1954_v30 = vmul.f32 %v3934_v13, %v1921_v29 }
 0xc25   :  { %v1914_v33 = vpop.permute.xlu1 %1913  ;;  %v4060_v15 = vadd.f32 %v1954_v30, %v1897_v22 }
 0xc26   :  { %v1922_v61 = vsel %vm1917_vm13, %v1912_v54, %v1914_v33  ;;  %v1273_v56 = vpop.permute.xlu0 %1272 }
 0xc27   :  { %v1955_v32 = vmul.f32 %v3946_v10, %v1922_v61  ;;  %2190 = vrot.lane.b32.xlu1 %v3981_v11, %s2830_s14  ;;  %v1828_v10 = vmul.f32 %v3955_v62, %v3816_v6 }
 0xc29   :  { %v4062_v57 = vadd.f32 %v1955_v32, %v1898_v17  ;;  %v1852_v13 = vpop.permute.xlu1 %1851  ;;  %v1836_v53 = vadd.f32 %v1828_v10, %v1804_v1 }
 0xc2a   :  { %v1858_v9 = vsel %vm462_vm5, %v1850_v3, %v1852_v13  ;;  %v1868_v2 = vsel %vm462_vm5, %v1852_v13, 0.0 }
 0xc2b   :  { %v1891_v37 = vmul.f32 %v3959_v63, %v1858_v9  ;;  %v1892_v26 = vmul.f32 %v3964_v49, %v1868_v2  ;;  %1984 = vrot.lane.b32.xlu0 %v4062_v57, %s2829_s13  ;;  %1982 = vrot.lane.b32.xlu1 %v4060_v15, %s2829_s13 }
 0xc2d   :  { %v1916_v27 = vpop.permute.xlu1 %1915  ;;  %v1899_v28 = vadd.f32 %v1891_v37, %v1835_v18  ;;  %v1900_v36 = vadd.f32 %v1892_v26, %v1836_v53 }
 0xc2e   :  { %v1923_v3 = vsel %vm1917_vm13, %v1914_v33, %v1916_v27  ;;  %v1933_v12 = vsel %vm1917_vm13, %v1916_v27, 0.0 }
 0xc2f   :  { %v1956_v6 = vmul.f32 %v3979_v25, %v1923_v3  ;;  %v1957_v62 = vmul.f32 %v3987_v7, %v1933_v12  ;;  %2040 = vrot.lane.b32.xlu0 %v4062_v57, %s2822_s22  ;;  %2038 = vrot.lane.b32.xlu1 %v4060_v15, %s2822_s22  ;;  %v1243_v25 = vpop.permute.xlu0 %1242 }
 0xc30   :  { %v1250_v7 = vmul.f32 %v1243_v25, %v3437_v8  ;;  %v1251_v54 = vmul.f32 %v1243_v25, %v3443_v43  ;;  %v1252_v41 = vmul.f32 %v1243_v25, %v3439_v60  ;;  %v1253_v38 = vmul.f32 %v1243_v25, %v3445_v39  ;;  %v4570_v60 = vld [vmem:[#allocation5_spill] sm:$0xff] }
 0xc31   :  { %v4084_v63 = vadd.f32 %v1956_v6, %v1899_v28  ;;  %v4086_v49 = vadd.f32 %v1957_v62, %v1900_v36 }
 0xc32   :  { %v1280_v29 = vadd.f32 %v1273_v56, %v1250_v7  ;;  %v1282_v23 = vadd.f32 %v1273_v56, %v1252_v41  ;;  %v1281_v59 = vadd.f32 %v1273_v56, %v1251_v54  ;;  %v1283_v31 = vadd.f32 %v1273_v56, %v1253_v38  ;;  %v4571_v7 = vld [vmem:[#allocation4_spill] sm:$0xff] }
 0xc33   :  { %4569 = vst [vmem:[#allocation6_spill] sm:$0xff] %v4086_v49  ;;  %1988 = vrot.lane.b32.xlu0 %v4086_v49, %s2829_s13  ;;  %1986 = vrot.lane.b32.xlu1 %v4084_v63, %s2829_s13  ;;  %v2105_v54 = vrot.slane %v3891_v34, %v4571_v7  ;;  %v2101_v41 = vrot.slane %v3856_v52, %v4571_v7 }
 0xc34   :  { %v1288_v30 = vmax.f32 %v1280_v29, 0.0  ;;  %v1290_v33 = vmax.f32 %v1282_v23, 0.0  ;;  %v1291_v0 = vmax.f32 %v1283_v31, 0.0  ;;  %v2097_v38 = vrot.slane %v3851_v47, %v4571_v7 }
 0xc37   :  { %2044 = vrot.lane.b32.xlu0 %v4086_v49, %s2822_s22  ;;  %2042 = vrot.lane.b32.xlu1 %v4084_v63, %s2822_s22 }
 0xc3b   :  { %2138 = vrot.lane.b32.xlu0 %v4084_v63, %s2825_s25  ;;  %2136 = vrot.lane.b32.xlu1 %v4062_v57, %s2825_s25 }
 0xc3e   :  { %v1248_v55 = vpop.permute.xlu1 %1247 }
 0xc3f   :  { %2134 = vrot.lane.b32.xlu0 %v4060_v15, %s2825_s25  ;;  %2200 = vrot.lane.b32.xlu1 %v4062_v57, %s2830_s14  ;;  %v1254_v35 = vmul.f32 %v1248_v55, %v3457_v4  ;;  %v1255_v8 = vmul.f32 %v1248_v55, %v3464_v40  ;;  %v1256_v43 = vmul.f32 %v1248_v55, %v3459_v45  ;;  %v1289_v4 = vmax.f32 %v1281_v59, 0.0  ;;  %v4573_v59 = vld [vmem:[#allocation3_spill] sm:$0xff] }
 0xc40   :  { %v1257_v48 = vmul.f32 %v1248_v55, %v4570_v60  ;;  %v4164_v55 = vrot.slane %v3898_v58, %v4571_v7  ;;  %v4172_v31 = vrot.slane %v3851_v47, %v4573_v59 }
 0xc42   :  { %4572 = vst [vmem:[#allocation5_spill] sm:$0xff] %v4164_v55 }
 0xc43   :  { %v1278_v39 = vpop.permute.xlu1 %1277  ;;  %2202 = vrot.lane.b32.xlu0 %v4084_v63, %s2830_s14  ;;  %2196 = vrot.lane.b32.xlu1 %v4008_v5, %s2830_s14 }
 0xc44   :  { %v1284_v20 = vadd.f32 %v1278_v39, %v1254_v35  ;;  %v1285_v16 = vadd.f32 %v1278_v39, %v1255_v8  ;;  %v1286_v42 = vadd.f32 %v1278_v39, %v1256_v43  ;;  %v1287_v46 = vadd.f32 %v1278_v39, %v1257_v48  ;;  %v4574_v8 = vld [vmem:[#allocation2_spill] sm:$0xff] }
 0xc45   :  { %v2013_v35 = vrot.slane %v3856_v52, %v4573_v59  ;;  %v2069_v43 = vrot.slane %v3856_v52, %v4574_v8  ;;  %v4180_v60 = vrot.slane %v3851_v47, %v4574_v8  ;;  %v4186_v39 = vrot.slane %v3891_v34, %v4573_v59 }
 0xc46   :  { %v1292_v40 = vmax.f32 %v1284_v20, 0.0  ;;  %v1294_v61 = vmax.f32 %v1286_v42, 0.0  ;;  %v1293_v45 = vmax.f32 %v1285_v16, 0.0  ;;  %v1295_v51 = vmax.f32 %v1287_v46, 0.0  ;;  %v35_v16 = vld [vmem:[%s4543_s2 + $0x48] sm:$0x3] }
 0xc47   :  { %2140 = vrot.lane.b32.xlu0 %v4086_v49, %s2825_s25  ;;  %v4190_v20 = vrot.slane %v3898_v58, %v4573_v59  ;;  %v4198_v47 = vrot.slane %v3891_v34, %v4574_v8  ;;  %v4202_v42 = vrot.slane %v3898_v58, %v4574_v8  ;;  %v34_v46 = vld [vmem:[%s4543_s2 + $0x40] sm:$0x3]  ;;  %v36_v34 = vld [vmem:[%s4543_s2 + $0x50] sm:$0x3]  ;;  %v37_v58 = vld [vmem:[%s4543_s2 + $0x58] sm:$0x3] }
 0xc48   :  { %v2707_v22 = vpack.c.bf16 %v1293_v45, %v1289_v4  ;;  %v2715_v17 = vpack.c.bf16 %v1295_v51, %v1291_v0  ;;  %v2709_v32 = vpack.c.bf16 %v1292_v40, %v1288_v30  ;;  %v2717_v21 = vpack.c.bf16 %v1294_v61, %v1290_v33 }
 0xc49   :  { %v4208_v30 = vmul.f32 %v2105_v54, %v4006_v50  ;;  %v2111_v4 = vmul.f32 %v2101_v41, %v3983_v14  ;;  %v2110_v0 = vmul.f32 %v2097_v38, %v3981_v11  ;;  %v4222_v40 = vmul.f32 %v4164_v55, %v4008_v5 }
 0xc4a   :  { %2708 = vmatprep.subr.bf16.mxu0 %v2707_v22  ;;  %2716 = vmatprep.subr.bf16.mxu1 %v2715_v17  ;;  %v2165_v14 = vrot.slane %v35_v16, %v3518_v24  ;;  %v4231_v17 = vrot.slane %v34_v46, %v3518_v24  ;;  %v2230_v5 = vrot.slane %v35_v16, %v3528_v19 }
 0xc4b   :  { %2198 = vrot.lane.b32.xlu0 %v4060_v15, %s2830_s14  ;;  %2710 = vmatpush1.bf16.msra.mxu0 %v2709_v32  ;;  %4575 = vst [vmem:[#allocation4_spill] sm:$0xff] %v4222_v40  ;;  %v4248_v8 = vrot.slane %v34_v46, %v3528_v19  ;;  %v2115_v40 = vmul.f32 %v2101_v41, %v4062_v57 }
 0xc4c   :  { %2718 = vmatpush1.bf16.msra.mxu1 %v2717_v21  ;;  %v4235_v21 = vrot.slane %v36_v34, %v3518_v24  ;;  %v4255_v55 = vmul.f32 %v2097_v38, %v4060_v15 }
 0xc4f   :  { %2204 = vrot.lane.b32.xlu0 %v4086_v49, %s2830_s14 }
 0xc79   :  { %v1975_v1 = vpop.permute.xlu1 %1974  ;;  %v4122_v13 = vpop.permute.xlu0 %1976 }
 0xc7a   :  { %v1990_v33 = vsel %vm1035_vm11, %v1975_v1, %v4122_v13  ;;  %v2004_v45 = vsel %vm1035_vm11, 0.0, %v1975_v1  ;;  %v4238_v1 = vrot.slane %v37_v58, %v3518_v24 }
 0xc7b   :  { %v2023_v32 = vmul.f32 %v2013_v35, %v1990_v33  ;;  %v2022_v7 = vmul.f32 %v4172_v31, %v2004_v45 }
 0xc7d   :  { %v2031_v44 = vpop.permute.xlu1 %2030  ;;  %v4124_v9 = vpop.permute.xlu0 %2032 }
 0xc7e   :  { %v2046_v48 = vsel %vm331_vm4, %v2031_v44, %v4124_v9  ;;  %v2060_v52 = vsel %vm331_vm4, 0.0, %v2031_v44 }
 0xc7f   :  { %v2079_v51 = vmul.f32 %v2069_v43, %v2046_v48  ;;  %v2078_v22 = vmul.f32 %v4180_v60, %v2060_v52 }
 0xc81   :  { %v4126_v2 = vpop.permute.xlu1 %1978  ;;  %v4130_v37 = vpop.permute.xlu0 %1980  ;;  %v2087_v33 = vadd.f32 %v2079_v51, %v2023_v32  ;;  %v2086_v45 = vadd.f32 %v2078_v22, %v2022_v7 }
 0xc82   :  { %v1991_v51 = vsel %vm1035_vm11, %v4122_v13, %v4126_v2  ;;  %v1992_v57 = vsel %vm1035_vm11, %v4126_v2, %v4130_v37  ;;  %v4280_v2 = vrot.slane %v37_v58, %v3528_v19 }
 0xc83   :  { %v2024_v37 = vmul.f32 %v4186_v39, %v1991_v51  ;;  %v2025_v32 = vmul.f32 %v4190_v20, %v1992_v57 }
 0xc85   :  { %v4128_v10 = vpop.permute.xlu1 %2034  ;;  %v4134_v18 = vpop.permute.xlu0 %2036 }
 0xc86   :  { %v2047_v24 = vsel %vm331_vm4, %v4124_v9, %v4128_v10  ;;  %v2048_v38 = vsel %vm331_vm4, %v4128_v10, %v4134_v18 }
 0xc87   :  { %v2080_v41 = vmul.f32 %v4198_v47, %v2047_v24 }
 0xc89   :  { %v4132_v26 = vpop.permute.xlu1 %2128  ;;  %v4140_v28 = vpop.permute.xlu0 %2130 }
 0xc8a   :  { %v2143_v59 = vsel %vm548_vm8, %v4132_v26, %v4140_v28 }
 0xc8b   :  { %v2175_v9 = vmul.f32 %v2165_v14, %v2143_v59 }
 0xc8d   :  { %v4136_v53 = vpop.permute.xlu1 %2126  ;;  %v4144_v12 = vpop.permute.xlu0 %2194 }
 0xc8e   :  { %v2142_v10 = vsel %vm548_vm8, %v4136_v53, %v4132_v26 }
 0xc91   :  { %v4138_v27 = vpop.permute.xlu1 %2192 }
 0xc92   :  { %v2208_v49 = vsel %vm2206_vm14, %v4138_v27, %v4144_v12 }
 0xc93   :  { %v2240_v13 = vmul.f32 %v2230_v5, %v2208_v49 }
 0xc95   :  { %v4142_v3 = vpop.permute.xlu1 %2132 }
 0xc96   :  { %v2156_v57 = vsel %vm548_vm8, %v4142_v3, 0.0 }
 0xc99   :  { %v4146_v36 = vpop.permute.xlu1 %2190 }
 0xc9d   :  { %v4148_v6 = vpop.permute.xlu1 %1982  ;;  %v4150_v62 = vpop.permute.xlu0 %1984 }
 0xc9e   :  { %v1993_v44 = vsel %vm1035_vm11, %v4148_v6, %v4150_v62  ;;  %v2005_v49 = vsel %vm1035_vm11, 0.0, %v4148_v6 }
 0xc9f   :  { %v2027_v46 = vmul.f32 %v2013_v35, %v1993_v44 }
 0xca1   :  { %v4152_v56 = vpop.permute.xlu1 %2038  ;;  %v4154_v25 = vpop.permute.xlu0 %2040 }
 0xca2   :  { %v2049_v11 = vsel %vm331_vm4, %v4152_v56, %v4154_v25  ;;  %v2061_v22 = vsel %vm331_vm4, 0.0, %v4152_v56  ;;  %v2088_v56 = vadd.f32 %v2080_v41, %v2024_v37 }
 0xca3   :  { %v2083_v48 = vmul.f32 %v2069_v43, %v2049_v11  ;;  %v4261_v43 = vmul.f32 %v2105_v54, %v4084_v63  ;;  %v4275_v54 = vrot.slane %v36_v34, %v3528_v19  ;;  %v2119_v11 = vadd.f32 %v2111_v4, %v2087_v33 }
 0xca4   :  { %v2081_v34 = vmul.f32 %v4202_v42, %v2048_v38  ;;  %v2118_v4 = vadd.f32 %v2110_v0, %v2086_v45  ;;  %v2082_v19 = vmul.f32 %v4180_v60, %v2061_v22  ;;  %v2174_v33 = vmul.f32 %v4231_v17, %v2142_v10  ;;  %v4577_v22 = vld [vmem:[#allocation5_spill] sm:$0xff] }
 0xca5   :  { %v4166_v29 = vpop.permute.xlu1 %1986  ;;  %v4168_v23 = vpop.permute.xlu0 %1988  ;;  %v2091_v35 = vadd.f32 %v2083_v48, %v2027_v46  ;;  %v2183_v44 = vadd.f32 %v2175_v9, %v2119_v11  ;;  %v2026_v0 = vmul.f32 %v4172_v31, %v2005_v49  ;;  %v2207_v31 = vsel %vm2206_vm14, %v4146_v36, %v4138_v27 }
 0xca6   :  { %v1994_v6 = vsel %vm1035_vm11, %v4150_v62, %v4166_v29  ;;  %v2089_v51 = vadd.f32 %v2081_v34, %v2025_v32  ;;  %v2239_v9 = vmul.f32 %v4248_v8, %v2207_v31  ;;  %v2182_v41 = vadd.f32 %v2174_v33, %v2118_v4 }
 0xca7   :  { %v2123_v7 = vadd.f32 %v2115_v40, %v2091_v35  ;;  %v2248_v26 = vadd.f32 %v2240_v13, %v2183_v44  ;;  %v1995_v40 = vsel %vm1035_vm11, %v4166_v29, %v4168_v23  ;;  %v2090_v45 = vadd.f32 %v2082_v19, %v2026_v0  ;;  %v4576_v13 = vld [vmem:[#allocation6_spill] sm:$0xff] }
 0xca8   :  { %v2028_v29 = vmul.f32 %v4186_v39, %v1994_v6  ;;  %v2029_v23 = vmul.f32 %v4190_v20, %v1995_v40  ;;  %v2117_v37 = vmul.f32 %v4577_v22, %v4576_v13  ;;  %v2247_v44 = vadd.f32 %v2239_v9, %v2182_v41  ;;  %v4373_v40 = vld [vmem:[%s4542_s1 + $0x58] sm:$0xff] }
 0xca9   :  { %v2043_v50 = vpop.permute.xlu1 %2042  ;;  %v2045_v61 = vpop.permute.xlu0 %2044  ;;  %v2122_v39 = vadd.f32 %v4255_v55, %v2090_v45  ;;  %v4578_v55 = vld [vmem:[#allocation4_spill] sm:$0xff] }
 0xcaa   :  { %v2050_v58 = vsel %vm331_vm4, %v4154_v25, %v2043_v50  ;;  %v2051_v53 = vsel %vm331_vm4, %v2043_v50, %v2045_v61  ;;  %v2144_v25 = vsel %vm548_vm8, %v4140_v28, %v4142_v3  ;;  %v2120_v28 = vadd.f32 %v4208_v30, %v2088_v56 }
 0xcab   :  { %v2084_v50 = vmul.f32 %v4198_v47, %v2050_v58  ;;  %v2085_v62 = vmul.f32 %v4202_v42, %v2051_v53  ;;  %v2176_v42 = vmul.f32 %v4235_v21, %v2144_v25  ;;  %v2177_v3 = vmul.f32 %v4238_v1, %v2156_v57 }
 0xcac   :  { %v4579_v25 = vmov 0.0  }
 0xcad   :  { %v2137_v16 = vpop.permute.xlu1 %2136  ;;  %v2139_v52 = vpop.permute.xlu0 %2138  ;;  %v2093_v38 = vadd.f32 %v2085_v62, %v2029_v23  ;;  %v2184_v34 = vadd.f32 %v2176_v42, %v2120_v28 }
 0xcae   :  { %v2146_v15 = vsel %vm548_vm8, %v2137_v16, %v2139_v52 }
 0xcaf   :  { %v2179_v18 = vmul.f32 %v2165_v14, %v2146_v15  ;;  %v2092_v15 = vadd.f32 %v2084_v50, %v2028_v29  ;;  %v2125_v49 = vadd.f32 %v2117_v37, %v2093_v38 }
 0xcb1   :  { %v2135_v63 = vpop.permute.xlu0 %2134  ;;  %v2201_v59 = vpop.permute.xlu1 %2200  ;;  %v2187_v60 = vadd.f32 %v2179_v18, %v2123_v7  ;;  %v2121_v18 = vadd.f32 %v4578_v55, %v2089_v51 }
 0xcb2   :  { %v2145_v61 = vsel %vm548_vm8, %v2135_v63, %v2137_v16 }
 0xcb3   :  { %v2178_v47 = vmul.f32 %v4231_v17, %v2145_v61  ;;  %v2185_v58 = vadd.f32 %v2177_v3, %v2121_v18 }
 0xcb5   :  { %v2203_v48 = vpop.permute.xlu0 %2202  ;;  %v2197_v16 = vpop.permute.xlu1 %2196  ;;  %v2186_v11 = vadd.f32 %v2178_v47, %v2122_v39 }
 0xcb6   :  { %v2211_v14 = vsel %vm2206_vm14, %v2201_v59, %v2203_v48  ;;  %v2209_v17 = vsel %vm2206_vm14, %v4144_v12, %v2197_v16  ;;  %v2124_v12 = vadd.f32 %v4261_v43, %v2092_v15 }
 0xcb7   :  { %v2244_v24 = vmul.f32 %v2230_v5, %v2211_v14  ;;  %v2241_v4 = vmul.f32 %v4275_v54, %v2209_v17 }
 0xcb9   :  { %v2252_v5 = vadd.f32 %v2244_v24, %v2187_v60  ;;  %v2141_v46 = vpop.permute.xlu0 %2140  ;;  %v2249_v43 = vadd.f32 %v2241_v4, %v2184_v34  ;;  %v4344_v60 = vld [vmem:[%s4542_s1 + $0x40] sm:$0xff] }
 0xcba   :  { %v2147_v27 = vsel %vm548_vm8, %v2139_v52, %v2141_v46  ;;  %v2157_v30 = vsel %vm548_vm8, %v2141_v46, 0.0  ;;  %v2221_v52 = vsel %vm2206_vm14, %v2197_v16, 0.0 }
 0xcbb   :  { %v2711_v36 = vpack.c.bf16 %v2252_v5, %v2248_v26  ;;  %v2180_v35 = vmul.f32 %v4235_v21, %v2147_v27  ;;  %v2181_v32 = vmul.f32 %v4238_v1, %v2157_v30  ;;  %v2242_v21 = vmul.f32 %v4280_v2, %v2221_v52 }
 0xcbd   :  { %2712 = vmatprep.subr.bf16.mxu0 %v2711_v36  ;;  %v2199_v20 = vpop.permute.xlu0 %2198  ;;  %v2188_v7 = vadd.f32 %v2180_v35, %v2124_v12  ;;  %v2250_v14 = vadd.f32 %v2242_v21, %v2185_v58 }
 0xcbe   :  { %v2210_v63 = vsel %vm2206_vm14, %v2199_v20, %v2201_v59 }
 0xcbf   :  { %v2243_v10 = vmul.f32 %v4248_v8, %v2210_v63  ;;  %v2189_v8 = vadd.f32 %v2181_v32, %v2125_v49 }
 0xcc1   :  { %v2251_v56 = vadd.f32 %v2243_v10, %v2186_v11  ;;  %v2205_v19 = vpop.permute.xlu0 %2204 }
 0xcc2   :  { %v2212_v59 = vsel %vm2206_vm14, %v2203_v48, %v2205_v19  ;;  %v2222_v1 = vsel %vm2206_vm14, %v2205_v19, 0.0 }
 0xcc3   :  { %v2713_v33 = vpack.c.bf16 %v2251_v56, %v2247_v44  ;;  %v2245_v26 = vmul.f32 %v4275_v54, %v2212_v59  ;;  %v2246_v53 = vmul.f32 %v4280_v2, %v2222_v1  ;;  %v4352_v54 = vld [vmem:[%s4542_s1 + $0x48] sm:$0xff]  ;;  %v4362_v2 = vld [vmem:[%s4542_s1 + $0x50] sm:$0xff] }
 0xcc5   :  { %v2253_v0 = vadd.f32 %v2245_v26, %v2188_v7  ;;  %v2254_v6 = vadd.f32 %v2246_v53, %v2189_v8  ;;  %2714 = vmatpush1.bf16.msra.mxu0 %v2713_v33 }
 0xcc7   :  { %v2721_v24 = vpack.c.bf16 %v2253_v0, %v2249_v43  ;;  %v2719_v48 = vpack.c.bf16 %v2254_v6, %v2250_v14 }
 0xcc8   :  { %2683 = vmatmul.mubr.msk.f32.vlgmr.msra.gmra.mrb[14].mxu0 %vm1035_vm11, %v4344_v60 }
 0xcc9   :  { %2720 = vmatprep.subr.bf16.mxu1 %v2719_v48  ;;  %2337 = vmatprep.mubr.f32.mxu0 %v4579_v25 }
 0xcca   :  { %2722 = vmatpush1.bf16.msra.mxu1 %v2721_v24 }
 0xccc   :  { %2684 = vmatmul.mubr.msk.f32.gmra.mrb[16].mxu0 %vm1035_vm11, %v4352_v54 }
 0xccd   :  { %2687 = vmatmul.mubr.msk.f32.vlgmr.msra.gmra.mrb[14].mxu1 %vm1035_vm11, %v4344_v60  ;;  %2343 = vmatprep.mubr.f32.mxu0 %v4579_v25 }
 0xcce   :  { %2426 = vmatprep.mubr.f32.mxu1 %v4579_v25 }
 0xcd0   :  { %2685 = vmatmul.mubr.msk.f32.gmra.mrb[18].mxu0 %vm1035_vm11, %v4362_v2 }
 0xcd1   :  { %2688 = vmatmul.mubr.msk.f32.gmra.mrb[16].mxu1 %vm1035_vm11, %v4352_v54  ;;  %2349 = vmatprep.mubr.f32.mxu0 %v4579_v25 }
 0xcd2   :  { %2432 = vmatprep.mubr.f32.mxu1 %v4579_v25 }
 0xcd4   :  { %2686 = vmatmul.mubr.msk.f32.gmra.mrb[20].mxu0 %vm1035_vm11, %v4373_v40 }
 0xcd5   :  { %2689 = vmatmul.mubr.msk.f32.gmra.mrb[18].mxu1 %vm1035_vm11, %v4362_v2 }
 0xcd6   :  { %2438 = vmatprep.mubr.f32.mxu1 %v4579_v25 }
 0xcd9   :  { %2690 = vmatmul.mubr.msk.f32.gmra.mrb[20].mxu1 %vm1035_vm11, %v4373_v40 }
 0xd9b   :  { %v4383_v50 = vpop.f32.mrb[14].mxu0 }
 0xd9c   :  { %v2445_v61 = vmul.f32 %v4383_v50, %v4383_v50  ;;  %v4387_v31 = vpop.f32.mrb[15].mxu0 }
 0xd9d   :  { %v2446_v45 = vmul.f32 %v4387_v31, %v4387_v31  ;;  %v2461_v62 = vadd.f32 %v4387_v31, %v4383_v50 }
 0xd9f   :  { %v2481_v5 = vadd.f32 %v2446_v45, %v2445_v61  ;;  %v4393_v46 = vpop.f32.mrb[16].mxu0 }
 0xda0   :  { %v4395_v51 = vpop.f32.mrb[14].mxu1  ;;  %v2449_v28 = vmul.f32 %v4393_v46, %v4393_v46  ;;  %v4399_v57 = vpop.f32.mrb[17].mxu0 }
 0xda1   :  { %v2447_v29 = vmul.f32 %v4395_v51, %v4395_v51  ;;  %v2462_v23 = vadd.f32 %v2461_v62, %v4395_v51  ;;  %v4404_v47 = vpop.f32.mrb[15].mxu1  ;;  %v2450_v16 = vmul.f32 %v4399_v57, %v4399_v57  ;;  %v2466_v27 = vadd.f32 %v4399_v57, %v4393_v46 }
 0xda2   :  { %v2448_v36 = vmul.f32 %v4404_v47, %v4404_v47 }
 0xda3   :  { %v2482_v42 = vadd.f32 %v2481_v5, %v2447_v29  ;;  %v2463_v9 = vadd.f32 %v2462_v23, %v4404_v47  ;;  %v2486_v15 = vadd.f32 %v2450_v16, %v2449_v28  ;;  %v4413_v30 = vpop.f32.mrb[18].mxu0 }
 0xda4   :  { %v4415_v41 = vpop.f32.mrb[16].mxu1  ;;  %v2453_v3 = vmul.f32 %v4413_v30, %v4413_v30  ;;  %v4419_v38 = vpop.f32.mrb[19].mxu0 }
 0xda5   :  { %2464 = vadd.xlane.f32.xlu1 %v2463_v9  ;;  %v2451_v39 = vmul.f32 %v4415_v41, %v4415_v41  ;;  %v2467_v20 = vadd.f32 %v2466_v27, %v4415_v41  ;;  %v2483_v17 = vadd.f32 %v2482_v42, %v2448_v36  ;;  %v2454_v52 = vmul.f32 %v4419_v38, %v4419_v38  ;;  %v4426_v35 = vpop.f32.mrb[17].mxu1 }
 0xda6   :  { %v2471_v63 = vadd.f32 %v4419_v38, %v4413_v30  ;;  %v2452_v11 = vmul.f32 %v4426_v35, %v4426_v35 }
 0xda7   :  { %v2487_v13 = vadd.f32 %v2486_v15, %v2451_v39  ;;  %2484 = vadd.xlane.f32.xlu0 %v2483_v17  ;;  %v2491_v22 = vadd.f32 %v2454_v52, %v2453_v3  ;;  %v2468_v37 = vadd.f32 %v2467_v20, %v4426_v35  ;;  %v4433_v32 = vpop.f32.mrb[20].mxu0 }
 0xda8   :  { %v2457_v10 = vmul.f32 %v4433_v32, %v4433_v32  ;;  %v4437_v55 = vpop.f32.mrb[21].mxu0  ;;  %v4439_v18 = vpop.f32.mrb[18].mxu1 }
 0xda9   :  { %v2458_v34 = vmul.f32 %v4437_v55, %v4437_v55  ;;  %v2476_v44 = vadd.f32 %v4437_v55, %v4433_v32  ;;  %v2455_v12 = vmul.f32 %v4439_v18, %v4439_v18  ;;  %v2472_v4 = vadd.f32 %v2471_v63, %v4439_v18  ;;  %v4448_v21 = vpop.f32.mrb[19].mxu1 }
 0xdaa   :  { %v2456_v49 = vmul.f32 %v4448_v21, %v4448_v21  ;;  %v2488_v56 = vadd.f32 %v2487_v13, %v2452_v11 }
 0xdab   :  { %v2496_v19 = vadd.f32 %v2458_v34, %v2457_v10  ;;  %v2492_v58 = vadd.f32 %v2491_v22, %v2455_v12  ;;  %2469 = vadd.xlane.f32.xlu0 %v2468_v37  ;;  %v2473_v7 = vadd.f32 %v2472_v4, %v4448_v21 }
 0xdac   :  { %v4453_v59 = vpop.f32.mrb[20].mxu1  ;;  %2489 = vadd.xlane.f32.xlu1 %v2488_v56 }
 0xdad   :  { %v2459_v1 = vmul.f32 %v4453_v59, %v4453_v59  ;;  %v2477_v8 = vadd.f32 %v2476_v44, %v4453_v59  ;;  %v4458_v33 = vpop.f32.mrb[21].mxu1  ;;  %v2493_v26 = vadd.f32 %v2492_v58, %v2456_v49 }
 0xdae   :  { %v2460_v53 = vmul.f32 %v4458_v33, %v4458_v33 }
 0xdaf   :  { %v2497_v43 = vadd.f32 %v2496_v19, %v2459_v1  ;;  %v2478_v14 = vadd.f32 %v2477_v8, %v4458_v33  ;;  %2474 = vadd.xlane.f32.xlu0 %v2473_v7 }
 0xdb1   :  { %v2498_v0 = vadd.f32 %v2497_v43, %v2460_v53  ;;  %2479 = vadd.xlane.f32.xlu1 %v2478_v14 }
 0xdb3   :  { %2494 = vadd.xlane.f32.xlu0 %v2493_v26 }
 0xdb5   :  { %2499 = vadd.xlane.f32.xlu1 %v2498_v0 }
 0xe32   :  { %v2465_v6 = vpop.xlane.xlu1 %2464 }
 0xe33   :  { %v2501_v24 = vmul.f32 0.001953125, %v2465_v6  ;;  %v4580_v6 = vmov 33  }
 0xe34   :  { %v2485_v48 = vpop.xlane.xlu0 %2484 }
 0xe35   :  { %v2509_v25 = vmul.f32 %v2501_v24, %v2501_v24  ;;  %v2505_v61 = vmul.f32 0.001953125, %v2485_v48 }
 0xe37   :  { %v2513_v45 = vsub.f32 %v2505_v61, %v2509_v25 }
 0xe38   :  { %v2470_v62 = vpop.xlane.xlu0 %2469 }
 0xe39   :  { %v2517_v5 = vmax.f32 %v2513_v45, 0.0  ;;  %v2502_v28 = vmul.f32 0.001953125, %v2470_v62  ;;  %v2490_v29 = vpop.xlane.xlu1 %2489 }
 0xe3a   :  { %v2506_v27 = vmul.f32 0.001953125, %v2490_v29 }
 0xe3b   :  { %v2521_v23 = vadd.f32 1e-05, %v2517_v5  ;;  %v2510_v16 = vmul.f32 %v2502_v28, %v2502_v28 }
 0xe3c   :  { %v2475_v36 = vpop.xlane.xlu0 %2474 }
 0xe3d   :  { %2795 = vrsqrt.f32 %v2521_v23  ;;  %v2514_v42 = vsub.f32 %v2506_v27, %v2510_v16  ;;  %v2503_v9 = vmul.f32 0.001953125, %v2475_v36 }
 0xe3e   :  { %v2480_v15 = vpop.xlane.xlu1 %2479 }
 0xe3f   :  { %v2518_v3 = vmax.f32 %v2514_v42, 0.0  ;;  %v2504_v39 = vmul.f32 0.001953125, %v2480_v15  ;;  %v2511_v52 = vmul.f32 %v2503_v9, %v2503_v9 }
 0xe40   :  { %v2495_v20 = vpop.xlane.xlu0 %2494 }
 0xe41   :  { %v2522_v17 = vadd.f32 1e-05, %v2518_v3  ;;  %v2507_v63 = vmul.f32 0.001953125, %v2495_v20  ;;  %v2512_v13 = vmul.f32 %v2504_v39, %v2504_v39 }
 0xe42   :  { %v2500_v11 = vpop.xlane.xlu1 %2499 }
 0xe43   :  { %2797 = vrsqrt.f32 %v2522_v17  ;;  %v2515_v22 = vsub.f32 %v2507_v63, %v2511_v52  ;;  %v2508_v37 = vmul.f32 0.001953125, %v2500_v11 }
 0xe45   :  { %v2519_v10 = vmax.f32 %v2515_v22, 0.0  ;;  %v2516_v34 = vsub.f32 %v2508_v37, %v2512_v13 }
 0xe47   :  { %v2796_v44 = vpop.eup %2795  ;;  %v2523_v12 = vadd.f32 1e-05, %v2519_v10  ;;  %v2520_v4 = vmax.f32 %v2516_v34, 0.0 }
 0xe48   :  { %v2529_v49 = vmul.f32 %v2796_v44, %v4344_v60 }
 0xe49   :  { %2799 = vrsqrt.f32 %v2523_v12  ;;  %v2524_v56 = vadd.f32 1e-05, %v2520_v4 }
 0xe4a   :  { %v2569_v19 = vmul.f32 %v2529_v49, %v2501_v24 }
 0xe4b   :  { %2801 = vrsqrt.f32 %v2524_v56 }
 0xe4c   :  { %2577 = vrot.lane.b32.xlu0 %v2569_v19, %s2810_s0 }
 0xe4d   :  { %v2798_v58 = vpop.eup %2797 }
 0xe4e   :  { %v2530_v7 = vmul.f32 %v2798_v58, %v4352_v54 }
 0xe50   :  { %v2570_v1 = vmul.f32 %v2530_v7, %v2502_v28 }
 0xe52   :  { %2579 = vrot.lane.b32.xlu1 %v2570_v1, %s2810_s0 }
 0xe53   :  { %v2800_v8 = vpop.eup %2799 }
 0xe54   :  { %v2531_v26 = vmul.f32 %v2800_v8, %v4362_v2 }
 0xe55   :  { %v2802_v53 = vpop.eup %2801 }
 0xe56   :  { %v2571_v43 = vmul.f32 %v2531_v26, %v2503_v9  ;;  %v2532_v14 = vmul.f32 %v2802_v53, %v4373_v40 }
 0xe58   :  { %2581 = vrot.lane.b32.xlu1 %v2571_v43, %s2810_s0  ;;  %v2572_v0 = vmul.f32 %v2532_v14, %v2504_v39 }
 0xe5a   :  { %2583 = vrot.lane.b32.xlu0 %v2572_v0, %s2810_s0 }
 0xe5c   :  { %2535 = vperm.xlu1 %2770, %v2529_v49  }
 0xe5e   :  { %2540 = vperm.xlu0 %2768, %v2530_v7  }
 0xe60   :  { %2545 = vperm.xlu1 %2770, %v2531_v26  }
 0xe62   :  { %2771 = vset.pattern.permute.xlu0 %v4580_v6 }
 0xe64   :  { %2550 = vperm.xlu1 %2770, %v2532_v14  }
 0xe68   :  { %2772 = vset.pattern.permute.xlu1 %v4580_v6 }
 0xebe   :  { %v2578_v24 = vpop.permute.xlu0 %2577 }
 0xebf   :  { %v2589_v48 = vsub.f32 %v4344_v60, %v2578_v24 }
 0xec1   :  { %2595 = vperm.xlu0 %2771, %v2589_v48  }
 0xec4   :  { %v2580_v25 = vpop.permute.xlu1 %2579 }
 0xec5   :  { %v2590_v61 = vsub.f32 %v4352_v54, %v2580_v25 }
 0xec7   :  { %2600 = vperm.xlu1 %2772, %v2590_v61  }
 0xeca   :  { %v2582_v45 = vpop.permute.xlu1 %2581 }
 0xecb   :  { %v2591_v62 = vsub.f32 %v4362_v2, %v2582_v45 }
 0xecc   :  { %v2584_v5 = vpop.permute.xlu0 %2583 }
 0xecd   :  { %v2592_v28 = vsub.f32 %v4373_v40, %v2584_v5  ;;  %2605 = vperm.xlu1 %2772, %v2591_v62  }
 0xecf   :  { %2610 = vperm.xlu0 %2771, %v2592_v28  }
 0xedb   :  { %v2536_v29 = vpop.permute.xlu1 %2535 }
 0xedc   :  { %v2553_v27 = vmul.f32 %v2536_v29, %v4383_v50  ;;  %v2554_v60 = vmul.f32 %v2536_v29, %v4387_v31  ;;  %v2555_v36 = vmul.f32 %v2536_v29, %v4395_v51  ;;  %v2556_v54 = vmul.f32 %v2536_v29, %v4404_v47 }
 0xedd   :  { %v2541_v23 = vpop.permute.xlu0 %2540 }
 0xede   :  { %v2557_v63 = vmul.f32 %v2541_v23, %v4393_v46  ;;  %v2558_v50 = vmul.f32 %v2541_v23, %v4399_v57  ;;  %v2559_v31 = vmul.f32 %v2541_v23, %v4415_v41  ;;  %v2560_v51 = vmul.f32 %v2541_v23, %v4426_v35 }
 0xedf   :  { %v2546_v16 = vpop.permute.xlu1 %2545 }
 0xee0   :  { %v2561_v10 = vmul.f32 %v2546_v16, %v4413_v30  ;;  %v2562_v34 = vmul.f32 %v2546_v16, %v4419_v38  ;;  %v2563_v44 = vmul.f32 %v2546_v16, %v4439_v18  ;;  %v2564_v12 = vmul.f32 %v2546_v16, %v4448_v21 }
 0xee3   :  { %v2551_v39 = vpop.permute.xlu1 %2550 }
 0xee4   :  { %v2565_v1 = vmul.f32 %v2551_v39, %v4433_v32  ;;  %v2566_v8 = vmul.f32 %v2551_v39, %v4437_v55  ;;  %v2567_v26 = vmul.f32 %v2551_v39, %v4453_v59  ;;  %v2568_v30 = vmul.f32 %v2551_v39, %v4458_v33 }
 0xf40   :  { %v2596_v42 = vpop.permute.xlu0 %2595 }
 0xf41   :  { %v2613_v9 = vadd.f32 %v2596_v42, %v2553_v27  ;;  %v2614_v15 = vadd.f32 %v2596_v42, %v2554_v60  ;;  %v2615_v2 = vadd.f32 %v2596_v42, %v2555_v36  ;;  %v2616_v3 = vadd.f32 %v2596_v42, %v2556_v54 }
 0xf43   :  { %v2629_v40 = vmax.f32 %v2613_v9, 0.0  ;;  %v2630_v20 = vmax.f32 %v2614_v15, 0.0  ;;  %v2631_v17 = vmax.f32 %v2615_v2, 0.0  ;;  %v2632_v52 = vmax.f32 %v2616_v3, 0.0 }
 0xf45   :  { %2645 = vst [vmem:[%s4544_s3] sm:$0xff] %v2629_v40  ;;  %2646 = vst [vmem:[%s4544_s3 + $0x8] sm:$0xff] %v2630_v20 }
 0xf46   :  { %2647 = vst [vmem:[%s4544_s3 + $0x10] sm:$0xff] %v2631_v17  ;;  %2648 = vst [vmem:[%s4544_s3 + $0x18] sm:$0xff] %v2632_v52  ;;  %v2601_v46 = vpop.permute.xlu1 %2600 }
 0xf47   :  { %v2617_v57 = vadd.f32 %v2601_v46, %v2557_v63  ;;  %v2618_v47 = vadd.f32 %v2601_v46, %v2558_v50  ;;  %v2619_v41 = vadd.f32 %v2601_v46, %v2559_v31  ;;  %v2620_v35 = vadd.f32 %v2601_v46, %v2560_v51 }
 0xf49   :  { %v2633_v11 = vmax.f32 %v2617_v57, 0.0  ;;  %v2634_v13 = vmax.f32 %v2618_v47, 0.0  ;;  %v2635_v22 = vmax.f32 %v2619_v41, 0.0  ;;  %v2636_v37 = vmax.f32 %v2620_v35, 0.0 }
 0xf4b   :  { %2649 = vst [vmem:[%s4544_s3 + $0x20] sm:$0xff] %v2633_v11  ;;  %2650 = vst [vmem:[%s4544_s3 + $0x28] sm:$0xff] %v2634_v13 }
 0xf4c   :  { %2651 = vst [vmem:[%s4544_s3 + $0x30] sm:$0xff] %v2635_v22  ;;  %2652 = vst [vmem:[%s4544_s3 + $0x38] sm:$0xff] %v2636_v37  ;;  %v2606_v4 = vpop.permute.xlu1 %2605 }
 0xf4d   :  { %v2621_v49 = vadd.f32 %v2606_v4, %v2561_v10  ;;  %v2622_v56 = vadd.f32 %v2606_v4, %v2562_v34  ;;  %v2623_v19 = vadd.f32 %v2606_v4, %v2563_v44  ;;  %v2624_v58 = vadd.f32 %v2606_v4, %v2564_v12 }
 0xf4e   :  { %v2611_v7 = vpop.permute.xlu0 %2610 }
 0xf4f   :  { %v2637_v53 = vmax.f32 %v2621_v49, 0.0  ;;  %v2638_v38 = vmax.f32 %v2622_v56, 0.0  ;;  %v2639_v43 = vmax.f32 %v2623_v19, 0.0  ;;  %v2640_v18 = vmax.f32 %v2624_v58, 0.0 }
 0xf50   :  { %v2625_v14 = vadd.f32 %v2611_v7, %v2565_v1  ;;  %v2626_v21 = vadd.f32 %v2611_v7, %v2566_v8  ;;  %v2627_v0 = vadd.f32 %v2611_v7, %v2567_v26  ;;  %v2628_v6 = vadd.f32 %v2611_v7, %v2568_v30 }
 0xf51   :  { %2653 = vst [vmem:[%s4544_s3 + $0x40] sm:$0xff] %v2637_v53  ;;  %2654 = vst [vmem:[%s4544_s3 + $0x48] sm:$0xff] %v2638_v38 }
 0xf52   :  { %2655 = vst [vmem:[%s4544_s3 + $0x50] sm:$0xff] %v2639_v43  ;;  %2656 = vst [vmem:[%s4544_s3 + $0x58] sm:$0xff] %v2640_v18  ;;  %v2641_v32 = vmax.f32 %v2625_v14, 0.0  ;;  %v2642_v55 = vmax.f32 %v2626_v21, 0.0  ;;  %v2643_v59 = vmax.f32 %v2627_v0, 0.0  ;;  %v2644_v33 = vmax.f32 %v2628_v6, 0.0 }
 0xf54   :  { %2657 = vst [vmem:[%s4544_s3 + $0x60] sm:$0xff] %v2641_v32  ;;  %2658 = vst [vmem:[%s4544_s3 + $0x68] sm:$0xff] %v2642_v55 }
 0xf55   :  { %2659 = vst [vmem:[%s4544_s3 + $0x70] sm:$0xff] %v2643_v59  ;;  %2660 = vst [vmem:[%s4544_s3 + $0x78] sm:$0xff] %v2644_v33 }

</bundles_post_ra>
